<compile_context>
chip_gen: v5e
topology: v5e:2x2
jax: 0.10.0
libtpu: 0.0.40
codegen_flags: <defaults>
</compile_context>

<pallas_src>
import jax
import jax.numpy as jnp
from jax.experimental import pallas as pl
from jax.experimental.pallas import tpu as pltpu


# ----------------------------------------------------------------------------- kernel
def qbn_kernel(x_ref, sg_ref,
               wsp_ref, bsp_ref,
               ionw_ref, ionb_ref,
               emw_ref, emb_ref, pr_ref,
               qr_ref, qi_ref, bio_ref, em_ref):
    """One (TM, D) batch tile of the fused forward pass.

    The TM rows are split into two independent sub-tiles (trace-time unroll) so
    the scheduler can overlap one sub-tile's MXU work with the other's
    tanh/ReLU/cast work on the otherwise strictly serial matmul chain.
    """
    TM = x_ref.shape[0]
    D = pr_ref.shape[0]

    n_sub = 2 if (TM >= 16 and TM % 16 == 0) else 1
    sub = TM // n_sub

    for s in range(n_sub):
        rows = slice(s * sub, (s + 1) * sub)

        # --- QuantumMembrane (quantum_field already folded into wsp) ----------
        xb = x_ref[rows, :]                                       # bf16 (sub, D)
        sp = jnp.dot(xb, wsp_ref[...],
                     preferred_element_type=jnp.float32) + bsp_ref[...]  # (sub, 2D)
        qr = sp[:, :D]                                            # real part
        qr_ref[rows, :] = qr
        qi_ref[rows, :] = sp[:, D:]                               # imag part

        # --- BiologicalSynapse (operates on .real of the complex state) -------
        flow = qr
        for i in range(3):
            h = jnp.dot(flow.astype(jnp.bfloat16), ionw_ref[i],
                        preferred_element_type=jnp.float32) + ionb_ref[i]
            # TODO(synk): on v6e/v7x a bf16 tanh (bf16 EUP path) is ~2x faster;
            # kept in f32 here so numerics are identical on all generations.
            flow = jnp.tanh(h)
        bio = flow * sg_ref[rows, :]                              # sigmoid precomputed
        bio_ref[rows, :] = bio

        # --- EmergencePatterns (pattern_recognition folded into weights 1..4) -
        p = bio
        for i in range(5):
            p = jnp.maximum(
                jnp.dot(p.astype(jnp.bfloat16), emw_ref[i],
                        preferred_element_type=jnp.float32) + emb_ref[i],
                0.0)
        p = jnp.dot(p.astype(jnp.bfloat16), pr_ref[...],
                    preferred_element_type=jnp.float32)
        em_ref[rows, :] = p


# ----------------------------------------------------------------------------- helpers
def prepare_params(p):
    """One-time algebraic folding + bf16 casting of the kernel operands."""
    D = p["nt"].shape[0]
    qf = p["qf"].reshape(D, 1)                                    # (D, 1)
    wsp_fused = (qf * p["wsp_t"]).astype(jnp.bfloat16)            # (D, 2D)
    em_w = [p["em_w_t"][0]] + [p["pr"] @ p["em_w_t"][i] for i in range(1, 5)]
    return {
        "wsp": wsp_fused,                                         # (D, 2D) bf16
        "bsp": p["bsp"],                                          # (1, 2D) f32
        "ion_w": p["ion_w_t"].astype(jnp.bfloat16),               # (3, D, D) bf16
        "ion_b": p["ion_b"],                                      # (3, 1, D) f32
        "sg": jax.nn.sigmoid(p["nt"]),                            # (D, D) f32
        "em_w": jnp.stack(em_w).astype(jnp.bfloat16),             # (5, D, D) bf16
        "em_b": p["em_b"],                                        # (5, 1, D) f32
        "pr": p["pr"].astype(jnp.bfloat16),                       # (D, D) bf16
    }


def _choose_tiling(n):
    """Return (padded_n, tm).

    tm is a multiple of 8 and chosen so the batch grid has >= 2 steps whenever
    n >= 16 (keeps both v7x TensorCores busy), capped at 256 rows.  Awkward n is
    padded up to a multiple of tm instead of creating one whole-batch tile.
    """
    if n >= 512:
        tm = 256
    elif n >= 256:
        tm = 128
    elif n >= 128:
        tm = 64
    elif n >= 32:
        tm = 16
    else:
        tm = 8
    n_pad = -(-n // tm) * tm
    return n_pad, tm


# ----------------------------------------------------------------------------- wrapper
def quantum_biological_network(x, params, *, split_quantum_state=False):
    N, D = x.shape
    if N != D:
        # The reference torch module broadcasts the (N, D) ion flow against the
        # (D, D) sigmoid(neurotransmitters) gate, which requires N == D.
        raise ValueError(
            f"QuantumBiologicalNetwork requires batch == dimension (got N={N}, D={D}).")

    kp = prepare_params(params)
    n_pad, tm = _choose_tiling(N)
    grid = (n_pad // tm,)

    # Pre-cast the streamed activation to bf16 (kernel feeds it straight to the
    # MXU anyway): halves x HBM->VMEM DMA.  sg stays f32 to keep bio numerics.
    xb = x.astype(jnp.bfloat16)
    sg = kp["sg"]
    if n_pad != N:
        pad = ((0, n_pad - N), (0, 0))
        xb = jnp.pad(xb, pad)
        sg = jnp.pad(sg, pad)

    args = (xb, sg, kp["wsp"], kp["bsp"], kp["ion_w"], kp["ion_b"],
            kp["em_w"], kp["em_b"], kp["pr"])

    weight_bytes = sum(int(a.size) * a.dtype.itemsize for a in args[2:])
    tile_bytes = tm * D * (2 + 4) + 4 * tm * D * 4        # x+sg tiles + 4 f32 out tiles
    in_bytes = sum(int(a.size) * a.dtype.itemsize for a in args)
    out_bytes = 4 * n_pad * D * 4
    flops = 2 * n_pad * D * (2 * D) + 9 * 2 * n_pad * D * D
    cost = pl.CostEstimate(flops=flops,
                           transcendentals=3 * n_pad * D,
                           bytes_accessed=in_bytes + out_bytes)

    out_shape = [jax.ShapeDtypeStruct((n_pad, D), jnp.float32) for _ in range(4)]

    def run(single_buffer_weights):
        row = lambda i: (i, 0)          # batch-tiled operands
        c2 = lambda i: (0, 0)           # resident 2-D weights
        c3 = lambda i: (0, 0, 0)        # resident 3-D weight stacks

        # Constant-index-map weights never change across grid steps; single-
        # buffer them so their VMEM footprint is ~22*D^2 bytes instead of ~44*D^2.
        wkw = {}
        if single_buffer_weights and hasattr(pl, "Buffered"):
            wkw = {"pipeline_mode": pl.Buffered(1)}

        in_specs = [
            pl.BlockSpec((tm, D), row),                 # x (bf16)
            pl.BlockSpec((tm, D), row),                 # sigmoid(nt) rows (N == D)
            pl.BlockSpec((D, 2 * D), c2, **wkw),        # wsp (qf folded, bf16)
            pl.BlockSpec((1, 2 * D), c2, **wkw),        # bsp
            pl.BlockSpec((3, D, D), c3, **wkw),         # ion_w (bf16)
            pl.BlockSpec((3, 1, D), c3, **wkw),         # ion_b
            pl.BlockSpec((5, D, D), c3, **wkw),         # em_w (pr folded, bf16)
            pl.BlockSpec((5, 1, D), c3, **wkw),         # em_b
            pl.BlockSpec((D, D), c2, **wkw),            # pr (bf16)
        ]
        out_specs = [pl.BlockSpec((tm, D), row) for _ in range(4)]

        vmem_need = (weight_bytes * (1 if single_buffer_weights else 2)
                     + 2 * tile_bytes)                  # double-buffered streamed tiles
        vmem_limit = int(min(max(vmem_need + (16 << 20), 32 << 20), 56 << 20))

        return pl.pallas_call(
            qbn_kernel,
            grid=grid,
            in_specs=in_specs,
            out_specs=out_specs,
            out_shape=out_shape,
            compiler_params=pltpu.CompilerParams(
                dimension_semantics=("parallel",),
                vmem_limit_bytes=vmem_limit),
            cost_estimate=cost,
        )(*args)

    # TODO(synk): for D beyond ~1500 on v7x (64 MiB VMEM) the fully-resident
    # weight scheme (~22*D^2 bytes) overruns VMEM; switch ion/em/wsp weights to a
    # K-tiled trailing "arbitrary" grid axis with an f32 VMEM accumulator.
    try:
        qr, qi, bio, em = run(single_buffer_weights=True)
    except Exception:
        # pl.Buffered(1) rejected by this jax/Mosaic version: fall back to the
        # default double-buffered weight pipeline.
        qr, qi, bio, em = run(single_buffer_weights=False)

    if n_pad != N:
        qr, qi, bio, em = (a[:N] for a in (qr, qi, bio, em))

    if split_quantum_state:
        # Lets consumers skip the complex-formation HBM pass entirely.
        return {"quantum_state_real": qr, "quantum_state_imag": qi,
                "bio_patterns": bio, "emergence": em}
    return {"quantum_state": jax.lax.complex(qr, qi),     # torch.complex(real, imag)
            "bio_patterns": bio, "emergence": em}


# ----------------------------------------------------------------------------- params
def init_params(key, dim):
    ks = jax.random.split(key, 9)
    s = 1.0 / jnp.sqrt(dim).astype(jnp.float32)
    # stored in torch-Linear-derived layout; kernel-ready forms built in prepare_params
    wsp = jax.random.normal(ks[1], (2 * dim, dim), jnp.float32) * s
    ion_w = jax.random.normal(ks[3], (3, dim, dim), jnp.float32) * s
    em_w = jax.random.normal(ks[6], (5, dim, dim), jnp.float32) * s
    return {
        "qf": jax.random.normal(ks[0], (1, dim), jnp.float32) * 0.02,
        "wsp_t": jnp.transpose(wsp),                       # (dim, 2*dim)
        "bsp": jax.random.normal(ks[2], (1, 2 * dim), jnp.float32) * s,
        "ion_w_t": jnp.transpose(ion_w, (0, 2, 1)),        # (3, dim, dim)
        "ion_b": jax.random.normal(ks[4], (3, 1, dim), jnp.float32) * s,
        "nt": jax.random.normal(ks[5], (dim, dim), jnp.float32),
        "em_w_t": jnp.transpose(em_w, (0, 2, 1)),          # (5, dim, dim)
        "em_b": jax.random.normal(ks[7], (5, 1, dim), jnp.float32) * s,
        "pr": jax.random.normal(ks[8], (dim, dim), jnp.float32) * 0.05,
    }


def reference(x, p):
    """Pure-JAX f32 reference mirroring the torch forward pass (no folding)."""
    D = x.shape[-1]
    fi = x * p["qf"]
    sp = fi @ p["wsp_t"] + p["bsp"]
    qr, qi = sp[:, :D], sp[:, D:]
    flow = qr
    for i in range(3):
        flow = jnp.tanh(flow @ p["ion_w_t"][i] + p["ion_b"][i])
    bio = flow * jax.nn.sigmoid(p["nt"])
    pat = bio
    for i in range(5):
        pat = jnp.maximum(pat @ p["em_w_t"][i] + p["em_b"][i], 0.0)
        pat = pat @ p["pr"]
    return qr, qi, bio, pat


# ----------------------------------------------------------------------------- main
if __name__ == "__main__":
    dim = 128
    batch = dim   # reference module's (N,D)*(D,D) broadcast requires batch == dimension
    key = jax.random.PRNGKey(0)
    kx, kp = jax.random.split(key)
    x = jax.random.normal(kx, (batch, dim), jnp.float32)
    params = init_params(kp, dim)

    out = quantum_biological_network(x, params)
    jax.block_until_ready(out)

    qr, qi, bio, em = reference(x, params)
    assert jnp.allclose(out["quantum_state"].real, qr, rtol=1e-2, atol=1e-2)
    assert jnp.allclose(out["quantum_state"].imag, qi, rtol=1e-2, atol=1e-2)
    assert jnp.allclose(out["bio_patterns"], bio, rtol=1e-2, atol=1e-2)
    assert jnp.allclose(out["emergence"], em, rtol=1e-2, atol=1e-2)
    print("KERNEL_OK")
</pallas_src>

<mosaic_0001>
module attributes {stable_mosaic.version = 11 : i64} {
  func.func @qbn_kernel(%arg0: i32, %arg1: memref<64x128xbf16, #tpu.memory_space<vmem>>, %arg2: memref<64x128xf32, #tpu.memory_space<vmem>>, %arg3: memref<128x256xbf16, #tpu.memory_space<vmem>>, %arg4: memref<1x256xf32, #tpu.memory_space<vmem>>, %arg5: memref<3x128x128xbf16, #tpu.memory_space<vmem>>, %arg6: memref<3x1x128xf32, #tpu.memory_space<vmem>>, %arg7: memref<5x128x128xbf16, #tpu.memory_space<vmem>>, %arg8: memref<5x1x128xf32, #tpu.memory_space<vmem>>, %arg9: memref<128x128xbf16, #tpu.memory_space<vmem>>, %arg10: memref<64x128xf32, #tpu.memory_space<vmem>>, %arg11: memref<64x128xf32, #tpu.memory_space<vmem>>, %arg12: memref<64x128xf32, #tpu.memory_space<vmem>>, %arg13: memref<64x128xf32, #tpu.memory_space<vmem>>) attributes {dimension_semantics = [#tpu.dimension_semantics<parallel>], iteration_bounds = array<i64: 2>, scalar_prefetch = 0 : i64, scratch_operands = 0 : i64, tpu.core_type = #tpu.core_type<tc>, window_params = [{transform_indices = @transform_0, window_bounds = array<i64: 64, 128>}, {transform_indices = @transform_1, window_bounds = array<i64: 64, 128>}, {pipeline_mode = #tpu.pipeline_mode<synchronous>, transform_indices = @transform_2, window_bounds = array<i64: 128, 256>}, {pipeline_mode = #tpu.pipeline_mode<synchronous>, transform_indices = @transform_3, window_bounds = array<i64: 1, 256>}, {pipeline_mode = #tpu.pipeline_mode<synchronous>, transform_indices = @transform_4, window_bounds = array<i64: 3, 128, 128>}, {pipeline_mode = #tpu.pipeline_mode<synchronous>, transform_indices = @transform_5, window_bounds = array<i64: 3, 1, 128>}, {pipeline_mode = #tpu.pipeline_mode<synchronous>, transform_indices = @transform_6, window_bounds = array<i64: 5, 128, 128>}, {pipeline_mode = #tpu.pipeline_mode<synchronous>, transform_indices = @transform_7, window_bounds = array<i64: 5, 1, 128>}, {pipeline_mode = #tpu.pipeline_mode<synchronous>, transform_indices = @transform_8, window_bounds = array<i64: 128, 128>}, {transform_indices = @transform_9, window_bounds = array<i64: 64, 128>}, {transform_indices = @transform_10, window_bounds = array<i64: 64, 128>}, {transform_indices = @transform_11, window_bounds = array<i64: 64, 128>}, {transform_indices = @transform_12, window_bounds = array<i64: 64, 128>}]} {
    %c0 = arith.constant 0 : index
    %c0_0 = arith.constant 0 : index
    %0 = vector.load %arg1[%c0, %c0_0] : memref<64x128xbf16, #tpu.memory_space<vmem>>, vector<32x128xbf16>
    %c0_1 = arith.constant 0 : index
    %c0_2 = arith.constant 0 : index
    %1 = vector.load %arg3[%c0_1, %c0_2] : memref<128x256xbf16, #tpu.memory_space<vmem>>, vector<128x256xbf16>
    %cst = arith.constant dense<0.000000e+00> : vector<32x256xf32>
    %2 = tpu.matmul %0, %1, %cst {dimension_numbers = #tpu.dot_dimension_numbers<[1], [0], [0], [1], [0, 0, 1, 1], [], []>} : vector<32x128xbf16>, vector<128x256xbf16>, vector<32x256xf32> -> vector<32x256xf32>
    %c0_3 = arith.constant 0 : index
    %c0_4 = arith.constant 0 : index
    %3 = vector.load %arg4[%c0_3, %c0_4] : memref<1x256xf32, #tpu.memory_space<vmem>>, vector<1x256xf32>
    %4 = vector.broadcast %3 : vector<1x256xf32> to vector<32x256xf32>
    %5 = arith.addf %2, %4 : vector<32x256xf32>
    %6 = vector.extract_strided_slice %5 {offsets = [0, 0], sizes = [32, 128], strides = [1, 1]} : vector<32x256xf32> to vector<32x128xf32>
    %c0_5 = arith.constant 0 : index
    %c0_6 = arith.constant 0 : index
    %7 = vector.load %arg10[%c0_5, %c0_6] : memref<64x128xf32, #tpu.memory_space<vmem>>, vector<32x128xf32>
    tpu.vector_store %arg10[%c0_5, %c0_6], %6 {strides = array<i32>} : memref<64x128xf32, #tpu.memory_space<vmem>>, vector<32x128xf32>,
    %8 = vector.extract_strided_slice %5 {offsets = [0, 128], sizes = [32, 128], strides = [1, 1]} : vector<32x256xf32> to vector<32x128xf32>
    %c0_7 = arith.constant 0 : index
    %c0_8 = arith.constant 0 : index
    %9 = vector.load %arg11[%c0_7, %c0_8] : memref<64x128xf32, #tpu.memory_space<vmem>>, vector<32x128xf32>
    tpu.vector_store %arg11[%c0_7, %c0_8], %8 {strides = array<i32>} : memref<64x128xf32, #tpu.memory_space<vmem>>, vector<32x128xf32>,
    %10 = arith.truncf %6 : vector<32x128xf32> to vector<32x128xbf16>
    %c0_9 = arith.constant 0 : index
    %c0_10 = arith.constant 0 : index
    %c0_11 = arith.constant 0 : index
    %11 = vector.load %arg5[%c0_9, %c0_10, %c0_11] : memref<3x128x128xbf16, #tpu.memory_space<vmem>>, vector<1x128x128xbf16>
    %12 = vector.shape_cast %11 : vector<1x128x128xbf16> to vector<128x128xbf16>
    %cst_12 = arith.constant dense<0.000000e+00> : vector<32x128xf32>
    %13 = tpu.matmul %10, %12, %cst_12 {dimension_numbers = #tpu.dot_dimension_numbers<[1], [0], [0], [1], [0, 0, 1, 1], [], []>} : vector<32x128xbf16>, vector<128x128xbf16>, vector<32x128xf32> -> vector<32x128xf32>
    %c0_13 = arith.constant 0 : index
    %c0_14 = arith.constant 0 : index
    %c0_15 = arith.constant 0 : index
    %14 = vector.load %arg6[%c0_13, %c0_14, %c0_15] : memref<3x1x128xf32, #tpu.memory_space<vmem>>, vector<1x1x128xf32>
    %15 = vector.shape_cast %14 : vector<1x1x128xf32> to vector<1x128xf32>
    %16 = vector.broadcast %15 : vector<1x128xf32> to vector<32x128xf32>
    %17 = arith.addf %13, %16 : vector<32x128xf32>
    %18 = math.tanh %17 : vector<32x128xf32>
    %19 = arith.truncf %18 : vector<32x128xf32> to vector<32x128xbf16>
    %c1 = arith.constant 1 : index
    %c0_16 = arith.constant 0 : index
    %c0_17 = arith.constant 0 : index
    %20 = vector.load %arg5[%c1, %c0_16, %c0_17] : memref<3x128x128xbf16, #tpu.memory_space<vmem>>, vector<1x128x128xbf16>
    %21 = vector.shape_cast %20 : vector<1x128x128xbf16> to vector<128x128xbf16>
    %cst_18 = arith.constant dense<0.000000e+00> : vector<32x128xf32>
    %22 = tpu.matmul %19, %21, %cst_18 {dimension_numbers = #tpu.dot_dimension_numbers<[1], [0], [0], [1], [0, 0, 1, 1], [], []>} : vector<32x128xbf16>, vector<128x128xbf16>, vector<32x128xf32> -> vector<32x128xf32>
    %c1_19 = arith.constant 1 : index
    %c0_20 = arith.constant 0 : index
    %c0_21 = arith.constant 0 : index
    %23 = vector.load %arg6[%c1_19, %c0_20, %c0_21] : memref<3x1x128xf32, #tpu.memory_space<vmem>>, vector<1x1x128xf32>
    %24 = vector.shape_cast %23 : vector<1x1x128xf32> to vector<1x128xf32>
    %25 = vector.broadcast %24 : vector<1x128xf32> to vector<32x128xf32>
    %26 = arith.addf %22, %25 : vector<32x128xf32>
    %27 = math.tanh %26 : vector<32x128xf32>
    %28 = arith.truncf %27 : vector<32x128xf32> to vector<32x128xbf16>
    %c2 = arith.constant 2 : index
    %c0_22 = arith.constant 0 : index
    %c0_23 = arith.constant 0 : index
    %29 = vector.load %arg5[%c2, %c0_22, %c0_23] : memref<3x128x128xbf16, #tpu.memory_space<vmem>>, vector<1x128x128xbf16>
    %30 = vector.shape_cast %29 : vector<1x128x128xbf16> to vector<128x128xbf16>
    %cst_24 = arith.constant dense<0.000000e+00> : vector<32x128xf32>
    %31 = tpu.matmul %28, %30, %cst_24 {dimension_numbers = #tpu.dot_dimension_numbers<[1], [0], [0], [1], [0, 0, 1, 1], [], []>} : vector<32x128xbf16>, vector<128x128xbf16>, vector<32x128xf32> -> vector<32x128xf32>
    %c2_25 = arith.constant 2 : index
    %c0_26 = arith.constant 0 : index
    %c0_27 = arith.constant 0 : index
    %32 = vector.load %arg6[%c2_25, %c0_26, %c0_27] : memref<3x1x128xf32, #tpu.memory_space<vmem>>, vector<1x1x128xf32>
    %33 = vector.shape_cast %32 : vector<1x1x128xf32> to vector<1x128xf32>
    %34 = vector.broadcast %33 : vector<1x128xf32> to vector<32x128xf32>
    %35 = arith.addf %31, %34 : vector<32x128xf32>
    %36 = math.tanh %35 : vector<32x128xf32>
    %c0_28 = arith.constant 0 : index
    %c0_29 = arith.constant 0 : index
    %37 = vector.load %arg2[%c0_28, %c0_29] : memref<64x128xf32, #tpu.memory_space<vmem>>, vector<32x128xf32>
    %38 = arith.mulf %36, %37 : vector<32x128xf32>
    %c0_30 = arith.constant 0 : index
    %c0_31 = arith.constant 0 : index
    %39 = vector.load %arg12[%c0_30, %c0_31] : memref<64x128xf32, #tpu.memory_space<vmem>>, vector<32x128xf32>
    tpu.vector_store %arg12[%c0_30, %c0_31], %38 {strides = array<i32>} : memref<64x128xf32, #tpu.memory_space<vmem>>, vector<32x128xf32>,
    %40 = arith.truncf %38 : vector<32x128xf32> to vector<32x128xbf16>
    %c0_32 = arith.constant 0 : index
    %c0_33 = arith.constant 0 : index
    %c0_34 = arith.constant 0 : index
    %41 = vector.load %arg7[%c0_32, %c0_33, %c0_34] : memref<5x128x128xbf16, #tpu.memory_space<vmem>>, vector<1x128x128xbf16>
    %42 = vector.shape_cast %41 : vector<1x128x128xbf16> to vector<128x128xbf16>
    %cst_35 = arith.constant dense<0.000000e+00> : vector<32x128xf32>
    %43 = tpu.matmul %40, %42, %cst_35 {dimension_numbers = #tpu.dot_dimension_numbers<[1], [0], [0], [1], [0, 0, 1, 1], [], []>} : vector<32x128xbf16>, vector<128x128xbf16>, vector<32x128xf32> -> vector<32x128xf32>
    %c0_36 = arith.constant 0 : index
    %c0_37 = arith.constant 0 : index
    %c0_38 = arith.constant 0 : index
    %44 = vector.load %arg8[%c0_36, %c0_37, %c0_38] : memref<5x1x128xf32, #tpu.memory_space<vmem>>, vector<1x1x128xf32>
    %45 = vector.shape_cast %44 : vector<1x1x128xf32> to vector<1x128xf32>
    %46 = vector.broadcast %45 : vector<1x128xf32> to vector<32x128xf32>
    %47 = arith.addf %43, %46 : vector<32x128xf32>
    %cst_39 = arith.constant 0.000000e+00 : f32
    %48 = vector.broadcast %cst_39 : f32 to vector<32x128xf32>
    %49 = arith.maximumf %47, %48 : vector<32x128xf32>
    %50 = arith.truncf %49 : vector<32x128xf32> to vector<32x128xbf16>
    %c1_40 = arith.constant 1 : index
    %c0_41 = arith.constant 0 : index
    %c0_42 = arith.constant 0 : index
    %51 = vector.load %arg7[%c1_40, %c0_41, %c0_42] : memref<5x128x128xbf16, #tpu.memory_space<vmem>>, vector<1x128x128xbf16>
    %52 = vector.shape_cast %51 : vector<1x128x128xbf16> to vector<128x128xbf16>
    %cst_43 = arith.constant dense<0.000000e+00> : vector<32x128xf32>
    %53 = tpu.matmul %50, %52, %cst_43 {dimension_numbers = #tpu.dot_dimension_numbers<[1], [0], [0], [1], [0, 0, 1, 1], [], []>} : vector<32x128xbf16>, vector<128x128xbf16>, vector<32x128xf32> -> vector<32x128xf32>
    %c1_44 = arith.constant 1 : index
    %c0_45 = arith.constant 0 : index
    %c0_46 = arith.constant 0 : index
    %54 = vector.load %arg8[%c1_44, %c0_45, %c0_46] : memref<5x1x128xf32, #tpu.memory_space<vmem>>, vector<1x1x128xf32>
    %55 = vector.shape_cast %54 : vector<1x1x128xf32> to vector<1x128xf32>
    %56 = vector.broadcast %55 : vector<1x128xf32> to vector<32x128xf32>
    %57 = arith.addf %53, %56 : vector<32x128xf32>
    %cst_47 = arith.constant 0.000000e+00 : f32
    %58 = vector.broadcast %cst_47 : f32 to vector<32x128xf32>
    %59 = arith.maximumf %57, %58 : vector<32x128xf32>
    %60 = arith.truncf %59 : vector<32x128xf32> to vector<32x128xbf16>
    %c2_48 = arith.constant 2 : index
    %c0_49 = arith.constant 0 : index
    %c0_50 = arith.constant 0 : index
    %61 = vector.load %arg7[%c2_48, %c0_49, %c0_50] : memref<5x128x128xbf16, #tpu.memory_space<vmem>>, vector<1x128x128xbf16>
    %62 = vector.shape_cast %61 : vector<1x128x128xbf16> to vector<128x128xbf16>
    %cst_51 = arith.constant dense<0.000000e+00> : vector<32x128xf32>
    %63 = tpu.matmul %60, %62, %cst_51 {dimension_numbers = #tpu.dot_dimension_numbers<[1], [0], [0], [1], [0, 0, 1, 1], [], []>} : vector<32x128xbf16>, vector<128x128xbf16>, vector<32x128xf32> -> vector<32x128xf32>
    %c2_52 = arith.constant 2 : index
    %c0_53 = arith.constant 0 : index
    %c0_54 = arith.constant 0 : index
    %64 = vector.load %arg8[%c2_52, %c0_53, %c0_54] : memref<5x1x128xf32, #tpu.memory_space<vmem>>, vector<1x1x128xf32>
    %65 = vector.shape_cast %64 : vector<1x1x128xf32> to vector<1x128xf32>
    %66 = vector.broadcast %65 : vector<1x128xf32> to vector<32x128xf32>
    %67 = arith.addf %63, %66 : vector<32x128xf32>
    %cst_55 = arith.constant 0.000000e+00 : f32
    %68 = vector.broadcast %cst_55 : f32 to vector<32x128xf32>
    %69 = arith.maximumf %67, %68 : vector<32x128xf32>
    %70 = arith.truncf %69 : vector<32x128xf32> to vector<32x128xbf16>
    %c3 = arith.constant 3 : index
    %c0_56 = arith.constant 0 : index
    %c0_57 = arith.constant 0 : index
    %71 = vector.load %arg7[%c3, %c0_56, %c0_57] : memref<5x128x128xbf16, #tpu.memory_space<vmem>>, vector<1x128x128xbf16>
    %72 = vector.shape_cast %71 : vector<1x128x128xbf16> to vector<128x128xbf16>
    %cst_58 = arith.constant dense<0.000000e+00> : vector<32x128xf32>
    %73 = tpu.matmul %70, %72, %cst_58 {dimension_numbers = #tpu.dot_dimension_numbers<[1], [0], [0], [1], [0, 0, 1, 1], [], []>} : vector<32x128xbf16>, vector<128x128xbf16>, vector<32x128xf32> -> vector<32x128xf32>
    %c3_59 = arith.constant 3 : index
    %c0_60 = arith.constant 0 : index
    %c0_61 = arith.constant 0 : index
    %74 = vector.load %arg8[%c3_59, %c0_60, %c0_61] : memref<5x1x128xf32, #tpu.memory_space<vmem>>, vector<1x1x128xf32>
    %75 = vector.shape_cast %74 : vector<1x1x128xf32> to vector<1x128xf32>
    %76 = vector.broadcast %75 : vector<1x128xf32> to vector<32x128xf32>
    %77 = arith.addf %73, %76 : vector<32x128xf32>
    %cst_62 = arith.constant 0.000000e+00 : f32
    %78 = vector.broadcast %cst_62 : f32 to vector<32x128xf32>
    %79 = arith.maximumf %77, %78 : vector<32x128xf32>
    %80 = arith.truncf %79 : vector<32x128xf32> to vector<32x128xbf16>
    %c4 = arith.constant 4 : index
    %c0_63 = arith.constant 0 : index
    %c0_64 = arith.constant 0 : index
    %81 = vector.load %arg7[%c4, %c0_63, %c0_64] : memref<5x128x128xbf16, #tpu.memory_space<vmem>>, vector<1x128x128xbf16>
    %82 = vector.shape_cast %81 : vector<1x128x128xbf16> to vector<128x128xbf16>
    %cst_65 = arith.constant dense<0.000000e+00> : vector<32x128xf32>
    %83 = tpu.matmul %80, %82, %cst_65 {dimension_numbers = #tpu.dot_dimension_numbers<[1], [0], [0], [1], [0, 0, 1, 1], [], []>} : vector<32x128xbf16>, vector<128x128xbf16>, vector<32x128xf32> -> vector<32x128xf32>
    %c4_66 = arith.constant 4 : index
    %c0_67 = arith.constant 0 : index
    %c0_68 = arith.constant 0 : index
    %84 = vector.load %arg8[%c4_66, %c0_67, %c0_68] : memref<5x1x128xf32, #tpu.memory_space<vmem>>, vector<1x1x128xf32>
    %85 = vector.shape_cast %84 : vector<1x1x128xf32> to vector<1x128xf32>
    %86 = vector.broadcast %85 : vector<1x128xf32> to vector<32x128xf32>
    %87 = arith.addf %83, %86 : vector<32x128xf32>
    %cst_69 = arith.constant 0.000000e+00 : f32
    %88 = vector.broadcast %cst_69 : f32 to vector<32x128xf32>
    %89 = arith.maximumf %87, %88 : vector<32x128xf32>
    %90 = arith.truncf %89 : vector<32x128xf32> to vector<32x128xbf16>
    %c0_70 = arith.constant 0 : index
    %c0_71 = arith.constant 0 : index
    %91 = vector.load %arg9[%c0_70, %c0_71] : memref<128x128xbf16, #tpu.memory_space<vmem>>, vector<128x128xbf16>
    %cst_72 = arith.constant dense<0.000000e+00> : vector<32x128xf32>
    %92 = tpu.matmul %90, %91, %cst_72 {dimension_numbers = #tpu.dot_dimension_numbers<[1], [0], [0], [1], [0, 0, 1, 1], [], []>} : vector<32x128xbf16>, vector<128x128xbf16>, vector<32x128xf32> -> vector<32x128xf32>
    %c0_73 = arith.constant 0 : index
    %c0_74 = arith.constant 0 : index
    %93 = vector.load %arg13[%c0_73, %c0_74] : memref<64x128xf32, #tpu.memory_space<vmem>>, vector<32x128xf32>
    tpu.vector_store %arg13[%c0_73, %c0_74], %92 {strides = array<i32>} : memref<64x128xf32, #tpu.memory_space<vmem>>, vector<32x128xf32>,
    %c32 = arith.constant 32 : index
    %c0_75 = arith.constant 0 : index
    %94 = vector.load %arg1[%c32, %c0_75] : memref<64x128xbf16, #tpu.memory_space<vmem>>, vector<32x128xbf16>
    %c0_76 = arith.constant 0 : index
    %c0_77 = arith.constant 0 : index
    %95 = vector.load %arg3[%c0_76, %c0_77] : memref<128x256xbf16, #tpu.memory_space<vmem>>, vector<128x256xbf16>
    %cst_78 = arith.constant dense<0.000000e+00> : vector<32x256xf32>
    %96 = tpu.matmul %94, %95, %cst_78 {dimension_numbers = #tpu.dot_dimension_numbers<[1], [0], [0], [1], [0, 0, 1, 1], [], []>} : vector<32x128xbf16>, vector<128x256xbf16>, vector<32x256xf32> -> vector<32x256xf32>
    %c0_79 = arith.constant 0 : index
    %c0_80 = arith.constant 0 : index
    %97 = vector.load %arg4[%c0_79, %c0_80] : memref<1x256xf32, #tpu.memory_space<vmem>>, vector<1x256xf32>
    %98 = vector.broadcast %97 : vector<1x256xf32> to vector<32x256xf32>
    %99 = arith.addf %96, %98 : vector<32x256xf32>
    %100 = vector.extract_strided_slice %99 {offsets = [0, 0], sizes = [32, 128], strides = [1, 1]} : vector<32x256xf32> to vector<32x128xf32>
    %c32_81 = arith.constant 32 : index
    %c0_82 = arith.constant 0 : index
    %101 = vector.load %arg10[%c32_81, %c0_82] : memref<64x128xf32, #tpu.memory_space<vmem>>, vector<32x128xf32>
    tpu.vector_store %arg10[%c32_81, %c0_82], %100 {strides = array<i32>} : memref<64x128xf32, #tpu.memory_space<vmem>>, vector<32x128xf32>,
    %102 = vector.extract_strided_slice %99 {offsets = [0, 128], sizes = [32, 128], strides = [1, 1]} : vector<32x256xf32> to vector<32x128xf32>
    %c32_83 = arith.constant 32 : index
    %c0_84 = arith.constant 0 : index
    %103 = vector.load %arg11[%c32_83, %c0_84] : memref<64x128xf32, #tpu.memory_space<vmem>>, vector<32x128xf32>
    tpu.vector_store %arg11[%c32_83, %c0_84], %102 {strides = array<i32>} : memref<64x128xf32, #tpu.memory_space<vmem>>, vector<32x128xf32>,
    %104 = arith.truncf %100 : vector<32x128xf32> to vector<32x128xbf16>
    %c0_85 = arith.constant 0 : index
    %c0_86 = arith.constant 0 : index
    %c0_87 = arith.constant 0 : index
    %105 = vector.load %arg5[%c0_85, %c0_86, %c0_87] : memref<3x128x128xbf16, #tpu.memory_space<vmem>>, vector<1x128x128xbf16>
    %106 = vector.shape_cast %105 : vector<1x128x128xbf16> to vector<128x128xbf16>
    %cst_88 = arith.constant dense<0.000000e+00> : vector<32x128xf32>
    %107 = tpu.matmul %104, %106, %cst_88 {dimension_numbers = #tpu.dot_dimension_numbers<[1], [0], [0], [1], [0, 0, 1, 1], [], []>} : vector<32x128xbf16>, vector<128x128xbf16>, vector<32x128xf32> -> vector<32x128xf32>
    %c0_89 = arith.constant 0 : index
    %c0_90 = arith.constant 0 : index
    %c0_91 = arith.constant 0 : index
    %108 = vector.load %arg6[%c0_89, %c0_90, %c0_91] : memref<3x1x128xf32, #tpu.memory_space<vmem>>, vector<1x1x128xf32>
    %109 = vector.shape_cast %108 : vector<1x1x128xf32> to vector<1x128xf32>
    %110 = vector.broadcast %109 : vector<1x128xf32> to vector<32x128xf32>
    %111 = arith.addf %107, %110 : vector<32x128xf32>
    %112 = math.tanh %111 : vector<32x128xf32>
    %113 = arith.truncf %112 : vector<32x128xf32> to vector<32x128xbf16>
    %c1_92 = arith.constant 1 : index
    %c0_93 = arith.constant 0 : index
    %c0_94 = arith.constant 0 : index
    %114 = vector.load %arg5[%c1_92, %c0_93, %c0_94] : memref<3x128x128xbf16, #tpu.memory_space<vmem>>, vector<1x128x128xbf16>
    %115 = vector.shape_cast %114 : vector<1x128x128xbf16> to vector<128x128xbf16>
    %cst_95 = arith.constant dense<0.000000e+00> : vector<32x128xf32>
    %116 = tpu.matmul %113, %115, %cst_95 {dimension_numbers = #tpu.dot_dimension_numbers<[1], [0], [0], [1], [0, 0, 1, 1], [], []>} : vector<32x128xbf16>, vector<128x128xbf16>, vector<32x128xf32> -> vector<32x128xf32>
    %c1_96 = arith.constant 1 : index
    %c0_97 = arith.constant 0 : index
    %c0_98 = arith.constant 0 : index
    %117 = vector.load %arg6[%c1_96, %c0_97, %c0_98] : memref<3x1x128xf32, #tpu.memory_space<vmem>>, vector<1x1x128xf32>
    %118 = vector.shape_cast %117 : vector<1x1x128xf32> to vector<1x128xf32>
    %119 = vector.broadcast %118 : vector<1x128xf32> to vector<32x128xf32>
    %120 = arith.addf %116, %119 : vector<32x128xf32>
    %121 = math.tanh %120 : vector<32x128xf32>
    %122 = arith.truncf %121 : vector<32x128xf32> to vector<32x128xbf16>
    %c2_99 = arith.constant 2 : index
    %c0_100 = arith.constant 0 : index
    %c0_101 = arith.constant 0 : index
    %123 = vector.load %arg5[%c2_99, %c0_100, %c0_101] : memref<3x128x128xbf16, #tpu.memory_space<vmem>>, vector<1x128x128xbf16>
    %124 = vector.shape_cast %123 : vector<1x128x128xbf16> to vector<128x128xbf16>
    %cst_102 = arith.constant dense<0.000000e+00> : vector<32x128xf32>
    %125 = tpu.matmul %122, %124, %cst_102 {dimension_numbers = #tpu.dot_dimension_numbers<[1], [0], [0], [1], [0, 0, 1, 1], [], []>} : vector<32x128xbf16>, vector<128x128xbf16>, vector<32x128xf32> -> vector<32x128xf32>
    %c2_103 = arith.constant 2 : index
    %c0_104 = arith.constant 0 : index
    %c0_105 = arith.constant 0 : index
    %126 = vector.load %arg6[%c2_103, %c0_104, %c0_105] : memref<3x1x128xf32, #tpu.memory_space<vmem>>, vector<1x1x128xf32>
    %127 = vector.shape_cast %126 : vector<1x1x128xf32> to vector<1x128xf32>
    %128 = vector.broadcast %127 : vector<1x128xf32> to vector<32x128xf32>
    %129 = arith.addf %125, %128 : vector<32x128xf32>
    %130 = math.tanh %129 : vector<32x128xf32>
    %c32_106 = arith.constant 32 : index
    %c0_107 = arith.constant 0 : index
    %131 = vector.load %arg2[%c32_106, %c0_107] : memref<64x128xf32, #tpu.memory_space<vmem>>, vector<32x128xf32>
    %132 = arith.mulf %130, %131 : vector<32x128xf32>
    %c32_108 = arith.constant 32 : index
    %c0_109 = arith.constant 0 : index
    %133 = vector.load %arg12[%c32_108, %c0_109] : memref<64x128xf32, #tpu.memory_space<vmem>>, vector<32x128xf32>
    tpu.vector_store %arg12[%c32_108, %c0_109], %132 {strides = array<i32>} : memref<64x128xf32, #tpu.memory_space<vmem>>, vector<32x128xf32>,
    %134 = arith.truncf %132 : vector<32x128xf32> to vector<32x128xbf16>
    %c0_110 = arith.constant 0 : index
    %c0_111 = arith.constant 0 : index
    %c0_112 = arith.constant 0 : index
    %135 = vector.load %arg7[%c0_110, %c0_111, %c0_112] : memref<5x128x128xbf16, #tpu.memory_space<vmem>>, vector<1x128x128xbf16>
    %136 = vector.shape_cast %135 : vector<1x128x128xbf16> to vector<128x128xbf16>
    %cst_113 = arith.constant dense<0.000000e+00> : vector<32x128xf32>
    %137 = tpu.matmul %134, %136, %cst_113 {dimension_numbers = #tpu.dot_dimension_numbers<[1], [0], [0], [1], [0, 0, 1, 1], [], []>} : vector<32x128xbf16>, vector<128x128xbf16>, vector<32x128xf32> -> vector<32x128xf32>
    %c0_114 = arith.constant 0 : index
    %c0_115 = arith.constant 0 : index
    %c0_116 = arith.constant 0 : index
    %138 = vector.load %arg8[%c0_114, %c0_115, %c0_116] : memref<5x1x128xf32, #tpu.memory_space<vmem>>, vector<1x1x128xf32>
    %139 = vector.shape_cast %138 : vector<1x1x128xf32> to vector<1x128xf32>
    %140 = vector.broadcast %139 : vector<1x128xf32> to vector<32x128xf32>
    %141 = arith.addf %137, %140 : vector<32x128xf32>
    %cst_117 = arith.constant 0.000000e+00 : f32
    %142 = vector.broadcast %cst_117 : f32 to vector<32x128xf32>
    %143 = arith.maximumf %141, %142 : vector<32x128xf32>
    %144 = arith.truncf %143 : vector<32x128xf32> to vector<32x128xbf16>
    %c1_118 = arith.constant 1 : index
    %c0_119 = arith.constant 0 : index
    %c0_120 = arith.constant 0 : index
    %145 = vector.load %arg7[%c1_118, %c0_119, %c0_120] : memref<5x128x128xbf16, #tpu.memory_space<vmem>>, vector<1x128x128xbf16>
    %146 = vector.shape_cast %145 : vector<1x128x128xbf16> to vector<128x128xbf16>
    %cst_121 = arith.constant dense<0.000000e+00> : vector<32x128xf32>
    %147 = tpu.matmul %144, %146, %cst_121 {dimension_numbers = #tpu.dot_dimension_numbers<[1], [0], [0], [1], [0, 0, 1, 1], [], []>} : vector<32x128xbf16>, vector<128x128xbf16>, vector<32x128xf32> -> vector<32x128xf32>
    %c1_122 = arith.constant 1 : index
    %c0_123 = arith.constant 0 : index
    %c0_124 = arith.constant 0 : index
    %148 = vector.load %arg8[%c1_122, %c0_123, %c0_124] : memref<5x1x128xf32, #tpu.memory_space<vmem>>, vector<1x1x128xf32>
    %149 = vector.shape_cast %148 : vector<1x1x128xf32> to vector<1x128xf32>
    %150 = vector.broadcast %149 : vector<1x128xf32> to vector<32x128xf32>
    %151 = arith.addf %147, %150 : vector<32x128xf32>
    %cst_125 = arith.constant 0.000000e+00 : f32
    %152 = vector.broadcast %cst_125 : f32 to vector<32x128xf32>
    %153 = arith.maximumf %151, %152 : vector<32x128xf32>
    %154 = arith.truncf %153 : vector<32x128xf32> to vector<32x128xbf16>
    %c2_126 = arith.constant 2 : index
    %c0_127 = arith.constant 0 : index
    %c0_128 = arith.constant 0 : index
    %155 = vector.load %arg7[%c2_126, %c0_127, %c0_128] : memref<5x128x128xbf16, #tpu.memory_space<vmem>>, vector<1x128x128xbf16>
    %156 = vector.shape_cast %155 : vector<1x128x128xbf16> to vector<128x128xbf16>
    %cst_129 = arith.constant dense<0.000000e+00> : vector<32x128xf32>
    %157 = tpu.matmul %154, %156, %cst_129 {dimension_numbers = #tpu.dot_dimension_numbers<[1], [0], [0], [1], [0, 0, 1, 1], [], []>} : vector<32x128xbf16>, vector<128x128xbf16>, vector<32x128xf32> -> vector<32x128xf32>
    %c2_130 = arith.constant 2 : index
    %c0_131 = arith.constant 0 : index
    %c0_132 = arith.constant 0 : index
    %158 = vector.load %arg8[%c2_130, %c0_131, %c0_132] : memref<5x1x128xf32, #tpu.memory_space<vmem>>, vector<1x1x128xf32>
    %159 = vector.shape_cast %158 : vector<1x1x128xf32> to vector<1x128xf32>
    %160 = vector.broadcast %159 : vector<1x128xf32> to vector<32x128xf32>
    %161 = arith.addf %157, %160 : vector<32x128xf32>
    %cst_133 = arith.constant 0.000000e+00 : f32
    %162 = vector.broadcast %cst_133 : f32 to vector<32x128xf32>
    %163 = arith.maximumf %161, %162 : vector<32x128xf32>
    %164 = arith.truncf %163 : vector<32x128xf32> to vector<32x128xbf16>
    %c3_134 = arith.constant 3 : index
    %c0_135 = arith.constant 0 : index
    %c0_136 = arith.constant 0 : index
    %165 = vector.load %arg7[%c3_134, %c0_135, %c0_136] : memref<5x128x128xbf16, #tpu.memory_space<vmem>>, vector<1x128x128xbf16>
    %166 = vector.shape_cast %165 : vector<1x128x128xbf16> to vector<128x128xbf16>
    %cst_137 = arith.constant dense<0.000000e+00> : vector<32x128xf32>
    %167 = tpu.matmul %164, %166, %cst_137 {dimension_numbers = #tpu.dot_dimension_numbers<[1], [0], [0], [1], [0, 0, 1, 1], [], []>} : vector<32x128xbf16>, vector<128x128xbf16>, vector<32x128xf32> -> vector<32x128xf32>
    %c3_138 = arith.constant 3 : index
    %c0_139 = arith.constant 0 : index
    %c0_140 = arith.constant 0 : index
    %168 = vector.load %arg8[%c3_138, %c0_139, %c0_140] : memref<5x1x128xf32, #tpu.memory_space<vmem>>, vector<1x1x128xf32>
    %169 = vector.shape_cast %168 : vector<1x1x128xf32> to vector<1x128xf32>
    %170 = vector.broadcast %169 : vector<1x128xf32> to vector<32x128xf32>
    %171 = arith.addf %167, %170 : vector<32x128xf32>
    %cst_141 = arith.constant 0.000000e+00 : f32
    %172 = vector.broadcast %cst_141 : f32 to vector<32x128xf32>
    %173 = arith.maximumf %171, %172 : vector<32x128xf32>
    %174 = arith.truncf %173 : vector<32x128xf32> to vector<32x128xbf16>
    %c4_142 = arith.constant 4 : index
    %c0_143 = arith.constant 0 : index
    %c0_144 = arith.constant 0 : index
    %175 = vector.load %arg7[%c4_142, %c0_143, %c0_144] : memref<5x128x128xbf16, #tpu.memory_space<vmem>>, vector<1x128x128xbf16>
    %176 = vector.shape_cast %175 : vector<1x128x128xbf16> to vector<128x128xbf16>
    %cst_145 = arith.constant dense<0.000000e+00> : vector<32x128xf32>
    %177 = tpu.matmul %174, %176, %cst_145 {dimension_numbers = #tpu.dot_dimension_numbers<[1], [0], [0], [1], [0, 0, 1, 1], [], []>} : vector<32x128xbf16>, vector<128x128xbf16>, vector<32x128xf32> -> vector<32x128xf32>
    %c4_146 = arith.constant 4 : index
    %c0_147 = arith.constant 0 : index
    %c0_148 = arith.constant 0 : index
    %178 = vector.load %arg8[%c4_146, %c0_147, %c0_148] : memref<5x1x128xf32, #tpu.memory_space<vmem>>, vector<1x1x128xf32>
    %179 = vector.shape_cast %178 : vector<1x1x128xf32> to vector<1x128xf32>
    %180 = vector.broadcast %179 : vector<1x128xf32> to vector<32x128xf32>
    %181 = arith.addf %177, %180 : vector<32x128xf32>
    %cst_149 = arith.constant 0.000000e+00 : f32
    %182 = vector.broadcast %cst_149 : f32 to vector<32x128xf32>
    %183 = arith.maximumf %181, %182 : vector<32x128xf32>
    %184 = arith.truncf %183 : vector<32x128xf32> to vector<32x128xbf16>
    %c0_150 = arith.constant 0 : index
    %c0_151 = arith.constant 0 : index
    %185 = vector.load %arg9[%c0_150, %c0_151] : memref<128x128xbf16, #tpu.memory_space<vmem>>, vector<128x128xbf16>
    %cst_152 = arith.constant dense<0.000000e+00> : vector<32x128xf32>
    %186 = tpu.matmul %184, %185, %cst_152 {dimension_numbers = #tpu.dot_dimension_numbers<[1], [0], [0], [1], [0, 0, 1, 1], [], []>} : vector<32x128xbf16>, vector<128x128xbf16>, vector<32x128xf32> -> vector<32x128xf32>
    %c32_153 = arith.constant 32 : index
    %c0_154 = arith.constant 0 : index
    %187 = vector.load %arg13[%c32_153, %c0_154] : memref<64x128xf32, #tpu.memory_space<vmem>>, vector<32x128xf32>
    tpu.vector_store %arg13[%c32_153, %c0_154], %186 {strides = array<i32>} : memref<64x128xf32, #tpu.memory_space<vmem>>, vector<32x128xf32>,
    return
  }
  func.func @transform_0(%arg0: i32) -> (i32, i32) {
    %c0_i32 = arith.constant 0 : i32
    %c0_i32_0 = arith.constant 0 : i32
    return %arg0, %c0_i32 : i32, i32
  }
  func.func @transform_1(%arg0: i32) -> (i32, i32) {
    %c0_i32 = arith.constant 0 : i32
    %c0_i32_0 = arith.constant 0 : i32
    return %arg0, %c0_i32 : i32, i32
  }
  func.func @transform_2(%arg0: i32) -> (i32, i32) {
    %c0_i32 = arith.constant 0 : i32
    %c0_i32_0 = arith.constant 0 : i32
    %c0_i32_1 = arith.constant 0 : i32
    return %c0_i32, %c0_i32_0 : i32, i32
  }
  func.func @transform_3(%arg0: i32) -> (i32, i32) {
    %c0_i32 = arith.constant 0 : i32
    %c0_i32_0 = arith.constant 0 : i32
    %c0_i32_1 = arith.constant 0 : i32
    return %c0_i32, %c0_i32_0 : i32, i32
  }
  func.func @transform_4(%arg0: i32) -> (i32, i32, i32) {
    %c0_i32 = arith.constant 0 : i32
    %c0_i32_0 = arith.constant 0 : i32
    %c0_i32_1 = arith.constant 0 : i32
    %c0_i32_2 = arith.constant 0 : i32
    return %c0_i32, %c0_i32_0, %c0_i32_1 : i32, i32, i32
  }
  func.func @transform_5(%arg0: i32) -> (i32, i32, i32) {
    %c0_i32 = arith.constant 0 : i32
    %c0_i32_0 = arith.constant 0 : i32
    %c0_i32_1 = arith.constant 0 : i32
    %c0_i32_2 = arith.constant 0 : i32
    return %c0_i32, %c0_i32_0, %c0_i32_1 : i32, i32, i32
  }
  func.func @transform_6(%arg0: i32) -> (i32, i32, i32) {
    %c0_i32 = arith.constant 0 : i32
    %c0_i32_0 = arith.constant 0 : i32
    %c0_i32_1 = arith.constant 0 : i32
    %c0_i32_2 = arith.constant 0 : i32
    return %c0_i32, %c0_i32_0, %c0_i32_1 : i32, i32, i32
  }
  func.func @transform_7(%arg0: i32) -> (i32, i32, i32) {
    %c0_i32 = arith.constant 0 : i32
    %c0_i32_0 = arith.constant 0 : i32
    %c0_i32_1 = arith.constant 0 : i32
    %c0_i32_2 = arith.constant 0 : i32
    return %c0_i32, %c0_i32_0, %c0_i32_1 : i32, i32, i32
  }
  func.func @transform_8(%arg0: i32) -> (i32, i32) {
    %c0_i32 = arith.constant 0 : i32
    %c0_i32_0 = arith.constant 0 : i32
    %c0_i32_1 = arith.constant 0 : i32
    return %c0_i32, %c0_i32_0 : i32, i32
  }
  func.func @transform_9(%arg0: i32) -> (i32, i32) {
    %c0_i32 = arith.constant 0 : i32
    %c0_i32_0 = arith.constant 0 : i32
    return %arg0, %c0_i32 : i32, i32
  }
  func.func @transform_10(%arg0: i32) -> (i32, i32) {
    %c0_i32 = arith.constant 0 : i32
    %c0_i32_0 = arith.constant 0 : i32
    return %arg0, %c0_i32 : i32, i32
  }
  func.func @transform_11(%arg0: i32) -> (i32, i32) {
    %c0_i32 = arith.constant 0 : i32
    %c0_i32_0 = arith.constant 0 : i32
    return %arg0, %c0_i32 : i32, i32
  }
  func.func @transform_12(%arg0: i32) -> (i32, i32) {
    %c0_i32 = arith.constant 0 : i32
    %c0_i32_0 = arith.constant 0 : i32
    return %arg0, %c0_i32 : i32, i32
  }
}

module attributes {stable_mosaic.version = 11 : i64} {
  func.func @qbn_kernel(%arg0: i32, %arg1: memref<64x128xbf16, #tpu.memory_space<vmem>>, %arg2: memref<64x128xf32, #tpu.memory_space<vmem>>, %arg3: memref<128x256xbf16, #tpu.memory_space<vmem>>, %arg4: memref<1x256xf32, #tpu.memory_space<vmem>>, %arg5: memref<3x128x128xbf16, #tpu.memory_space<vmem>>, %arg6: memref<3x1x128xf32, #tpu.memory_space<vmem>>, %arg7: memref<5x128x128xbf16, #tpu.memory_space<vmem>>, %arg8: memref<5x1x128xf32, #tpu.memory_space<vmem>>, %arg9: memref<128x128xbf16, #tpu.memory_space<vmem>>, %arg10: memref<64x128xf32, #tpu.memory_space<vmem>>, %arg11: memref<64x128xf32, #tpu.memory_space<vmem>>, %arg12: memref<64x128xf32, #tpu.memory_space<vmem>>, %arg13: memref<64x128xf32, #tpu.memory_space<vmem>>) attributes {dimension_semantics = [#tpu.dimension_semantics<parallel>], iteration_bounds = array<i64: 2>, scalar_prefetch = 0 : i64, scratch_operands = 0 : i64, tpu.core_type = #tpu.core_type<tc>, window_params = [{transform_indices = @transform_0, window_bounds = array<i64: 64, 128>}, {transform_indices = @transform_1, window_bounds = array<i64: 64, 128>}, {pipeline_mode = #tpu.pipeline_mode<synchronous>, transform_indices = @transform_2, window_bounds = array<i64: 128, 256>}, {pipeline_mode = #tpu.pipeline_mode<synchronous>, transform_indices = @transform_3, window_bounds = array<i64: 1, 256>}, {pipeline_mode = #tpu.pipeline_mode<synchronous>, transform_indices = @transform_4, window_bounds = array<i64: 3, 128, 128>}, {pipeline_mode = #tpu.pipeline_mode<synchronous>, transform_indices = @transform_5, window_bounds = array<i64: 3, 1, 128>}, {pipeline_mode = #tpu.pipeline_mode<synchronous>, transform_indices = @transform_6, window_bounds = array<i64: 5, 128, 128>}, {pipeline_mode = #tpu.pipeline_mode<synchronous>, transform_indices = @transform_7, window_bounds = array<i64: 5, 1, 128>}, {pipeline_mode = #tpu.pipeline_mode<synchronous>, transform_indices = @transform_8, window_bounds = array<i64: 128, 128>}, {transform_indices = @transform_9, window_bounds = array<i64: 64, 128>}, {transform_indices = @transform_10, window_bounds = array<i64: 64, 128>}, {transform_indices = @transform_11, window_bounds = array<i64: 64, 128>}, {transform_indices = @transform_12, window_bounds = array<i64: 64, 128>}]} {
    %c0 = arith.constant 0 : index
    %c0_0 = arith.constant 0 : index
    %0 = vector.load %arg1[%c0, %c0_0] : memref<64x128xbf16, #tpu.memory_space<vmem>>, vector<32x128xbf16>
    %c0_1 = arith.constant 0 : index
    %c0_2 = arith.constant 0 : index
    %1 = vector.load %arg3[%c0_1, %c0_2] : memref<128x256xbf16, #tpu.memory_space<vmem>>, vector<128x256xbf16>
    %cst = arith.constant dense<0.000000e+00> : vector<32x256xf32>
    %2 = tpu.matmul %0, %1, %cst {dimension_numbers = #tpu.dot_dimension_numbers<[1], [0], [0], [1], [0, 0, 1, 1], [], []>} : vector<32x128xbf16>, vector<128x256xbf16>, vector<32x256xf32> -> vector<32x256xf32>
    %c0_3 = arith.constant 0 : index
    %c0_4 = arith.constant 0 : index
    %3 = vector.load %arg4[%c0_3, %c0_4] : memref<1x256xf32, #tpu.memory_space<vmem>>, vector<1x256xf32>
    %4 = vector.broadcast %3 : vector<1x256xf32> to vector<32x256xf32>
    %5 = arith.addf %2, %4 : vector<32x256xf32>
    %6 = vector.extract_strided_slice %5 {offsets = [0, 0], sizes = [32, 128], strides = [1, 1]} : vector<32x256xf32> to vector<32x128xf32>
    %c0_5 = arith.constant 0 : index
    %c0_6 = arith.constant 0 : index
    %7 = vector.load %arg10[%c0_5, %c0_6] : memref<64x128xf32, #tpu.memory_space<vmem>>, vector<32x128xf32>
    tpu.vector_store %arg10[%c0_5, %c0_6], %6 {strides = array<i32>} : memref<64x128xf32, #tpu.memory_space<vmem>>, vector<32x128xf32>,
    %8 = vector.extract_strided_slice %5 {offsets = [0, 128], sizes = [32, 128], strides = [1, 1]} : vector<32x256xf32> to vector<32x128xf32>
    %c0_7 = arith.constant 0 : index
    %c0_8 = arith.constant 0 : index
    %9 = vector.load %arg11[%c0_7, %c0_8] : memref<64x128xf32, #tpu.memory_space<vmem>>, vector<32x128xf32>
    tpu.vector_store %arg11[%c0_7, %c0_8], %8 {strides = array<i32>} : memref<64x128xf32, #tpu.memory_space<vmem>>, vector<32x128xf32>,
    %10 = arith.truncf %6 : vector<32x128xf32> to vector<32x128xbf16>
    %c0_9 = arith.constant 0 : index
    %c0_10 = arith.constant 0 : index
    %c0_11 = arith.constant 0 : index
    %11 = vector.load %arg5[%c0_9, %c0_10, %c0_11] : memref<3x128x128xbf16, #tpu.memory_space<vmem>>, vector<1x128x128xbf16>
    %12 = vector.shape_cast %11 : vector<1x128x128xbf16> to vector<128x128xbf16>
    %cst_12 = arith.constant dense<0.000000e+00> : vector<32x128xf32>
    %13 = tpu.matmul %10, %12, %cst_12 {dimension_numbers = #tpu.dot_dimension_numbers<[1], [0], [0], [1], [0, 0, 1, 1], [], []>} : vector<32x128xbf16>, vector<128x128xbf16>, vector<32x128xf32> -> vector<32x128xf32>
    %c0_13 = arith.constant 0 : index
    %c0_14 = arith.constant 0 : index
    %c0_15 = arith.constant 0 : index
    %14 = vector.load %arg6[%c0_13, %c0_14, %c0_15] : memref<3x1x128xf32, #tpu.memory_space<vmem>>, vector<1x1x128xf32>
    %15 = vector.shape_cast %14 : vector<1x1x128xf32> to vector<1x128xf32>
    %16 = vector.broadcast %15 : vector<1x128xf32> to vector<32x128xf32>
    %17 = arith.addf %13, %16 : vector<32x128xf32>
    %18 = math.tanh %17 : vector<32x128xf32>
    %19 = arith.truncf %18 : vector<32x128xf32> to vector<32x128xbf16>
    %c1 = arith.constant 1 : index
    %c0_16 = arith.constant 0 : index
    %c0_17 = arith.constant 0 : index
    %20 = vector.load %arg5[%c1, %c0_16, %c0_17] : memref<3x128x128xbf16, #tpu.memory_space<vmem>>, vector<1x128x128xbf16>
    %21 = vector.shape_cast %20 : vector<1x128x128xbf16> to vector<128x128xbf16>
    %cst_18 = arith.constant dense<0.000000e+00> : vector<32x128xf32>
    %22 = tpu.matmul %19, %21, %cst_18 {dimension_numbers = #tpu.dot_dimension_numbers<[1], [0], [0], [1], [0, 0, 1, 1], [], []>} : vector<32x128xbf16>, vector<128x128xbf16>, vector<32x128xf32> -> vector<32x128xf32>
    %c1_19 = arith.constant 1 : index
    %c0_20 = arith.constant 0 : index
    %c0_21 = arith.constant 0 : index
    %23 = vector.load %arg6[%c1_19, %c0_20, %c0_21] : memref<3x1x128xf32, #tpu.memory_space<vmem>>, vector<1x1x128xf32>
    %24 = vector.shape_cast %23 : vector<1x1x128xf32> to vector<1x128xf32>
    %25 = vector.broadcast %24 : vector<1x128xf32> to vector<32x128xf32>
    %26 = arith.addf %22, %25 : vector<32x128xf32>
    %27 = math.tanh %26 : vector<32x128xf32>
    %28 = arith.truncf %27 : vector<32x128xf32> to vector<32x128xbf16>
    %c2 = arith.constant 2 : index
    %c0_22 = arith.constant 0 : index
    %c0_23 = arith.constant 0 : index
    %29 = vector.load %arg5[%c2, %c0_22, %c0_23] : memref<3x128x128xbf16, #tpu.memory_space<vmem>>, vector<1x128x128xbf16>
    %30 = vector.shape_cast %29 : vector<1x128x128xbf16> to vector<128x128xbf16>
    %cst_24 = arith.constant dense<0.000000e+00> : vector<32x128xf32>
    %31 = tpu.matmul %28, %30, %cst_24 {dimension_numbers = #tpu.dot_dimension_numbers<[1], [0], [0], [1], [0, 0, 1, 1], [], []>} : vector<32x128xbf16>, vector<128x128xbf16>, vector<32x128xf32> -> vector<32x128xf32>
    %c2_25 = arith.constant 2 : index
    %c0_26 = arith.constant 0 : index
    %c0_27 = arith.constant 0 : index
    %32 = vector.load %arg6[%c2_25, %c0_26, %c0_27] : memref<3x1x128xf32, #tpu.memory_space<vmem>>, vector<1x1x128xf32>
    %33 = vector.shape_cast %32 : vector<1x1x128xf32> to vector<1x128xf32>
    %34 = vector.broadcast %33 : vector<1x128xf32> to vector<32x128xf32>
    %35 = arith.addf %31, %34 : vector<32x128xf32>
    %36 = math.tanh %35 : vector<32x128xf32>
    %c0_28 = arith.constant 0 : index
    %c0_29 = arith.constant 0 : index
    %37 = vector.load %arg2[%c0_28, %c0_29] : memref<64x128xf32, #tpu.memory_space<vmem>>, vector<32x128xf32>
    %38 = arith.mulf %36, %37 : vector<32x128xf32>
    %c0_30 = arith.constant 0 : index
    %c0_31 = arith.constant 0 : index
    %39 = vector.load %arg12[%c0_30, %c0_31] : memref<64x128xf32, #tpu.memory_space<vmem>>, vector<32x128xf32>
    tpu.vector_store %arg12[%c0_30, %c0_31], %38 {strides = array<i32>} : memref<64x128xf32, #tpu.memory_space<vmem>>, vector<32x128xf32>,
    %40 = arith.truncf %38 : vector<32x128xf32> to vector<32x128xbf16>
    %c0_32 = arith.constant 0 : index
    %c0_33 = arith.constant 0 : index
    %c0_34 = arith.constant 0 : index
    %41 = vector.load %arg7[%c0_32, %c0_33, %c0_34] : memref<5x128x128xbf16, #tpu.memory_space<vmem>>, vector<1x128x128xbf16>
    %42 = vector.shape_cast %41 : vector<1x128x128xbf16> to vector<128x128xbf16>
    %cst_35 = arith.constant dense<0.000000e+00> : vector<32x128xf32>
    %43 = tpu.matmul %40, %42, %cst_35 {dimension_numbers = #tpu.dot_dimension_numbers<[1], [0], [0], [1], [0, 0, 1, 1], [], []>} : vector<32x128xbf16>, vector<128x128xbf16>, vector<32x128xf32> -> vector<32x128xf32>
    %c0_36 = arith.constant 0 : index
    %c0_37 = arith.constant 0 : index
    %c0_38 = arith.constant 0 : index
    %44 = vector.load %arg8[%c0_36, %c0_37, %c0_38] : memref<5x1x128xf32, #tpu.memory_space<vmem>>, vector<1x1x128xf32>
    %45 = vector.shape_cast %44 : vector<1x1x128xf32> to vector<1x128xf32>
    %46 = vector.broadcast %45 : vector<1x128xf32> to vector<32x128xf32>
    %47 = arith.addf %43, %46 : vector<32x128xf32>
    %cst_39 = arith.constant 0.000000e+00 : f32
    %48 = vector.broadcast %cst_39 : f32 to vector<32x128xf32>
    %49 = arith.maximumf %47, %48 : vector<32x128xf32>
    %50 = arith.truncf %49 : vector<32x128xf32> to vector<32x128xbf16>
    %c1_40 = arith.constant 1 : index
    %c0_41 = arith.constant 0 : index
    %c0_42 = arith.constant 0 : index
    %51 = vector.load %arg7[%c1_40, %c0_41, %c0_42] : memref<5x128x128xbf16, #tpu.memory_space<vmem>>, vector<1x128x128xbf16>
    %52 = vector.shape_cast %51 : vector<1x128x128xbf16> to vector<128x128xbf16>
    %cst_43 = arith.constant dense<0.000000e+00> : vector<32x128xf32>
    %53 = tpu.matmul %50, %52, %cst_43 {dimension_numbers = #tpu.dot_dimension_numbers<[1], [0], [0], [1], [0, 0, 1, 1], [], []>} : vector<32x128xbf16>, vector<128x128xbf16>, vector<32x128xf32> -> vector<32x128xf32>
    %c1_44 = arith.constant 1 : index
    %c0_45 = arith.constant 0 : index
    %c0_46 = arith.constant 0 : index
    %54 = vector.load %arg8[%c1_44, %c0_45, %c0_46] : memref<5x1x128xf32, #tpu.memory_space<vmem>>, vector<1x1x128xf32>
    %55 = vector.shape_cast %54 : vector<1x1x128xf32> to vector<1x128xf32>
    %56 = vector.broadcast %55 : vector<1x128xf32> to vector<32x128xf32>
    %57 = arith.addf %53, %56 : vector<32x128xf32>
    %cst_47 = arith.constant 0.000000e+00 : f32
    %58 = vector.broadcast %cst_47 : f32 to vector<32x128xf32>
    %59 = arith.maximumf %57, %58 : vector<32x128xf32>
    %60 = arith.truncf %59 : vector<32x128xf32> to vector<32x128xbf16>
    %c2_48 = arith.constant 2 : index
    %c0_49 = arith.constant 0 : index
    %c0_50 = arith.constant 0 : index
    %61 = vector.load %arg7[%c2_48, %c0_49, %c0_50] : memref<5x128x128xbf16, #tpu.memory_space<vmem>>, vector<1x128x128xbf16>
    %62 = vector.shape_cast %61 : vector<1x128x128xbf16> to vector<128x128xbf16>
    %cst_51 = arith.constant dense<0.000000e+00> : vector<32x128xf32>
    %63 = tpu.matmul %60, %62, %cst_51 {dimension_numbers = #tpu.dot_dimension_numbers<[1], [0], [0], [1], [0, 0, 1, 1], [], []>} : vector<32x128xbf16>, vector<128x128xbf16>, vector<32x128xf32> -> vector<32x128xf32>
    %c2_52 = arith.constant 2 : index
    %c0_53 = arith.constant 0 : index
    %c0_54 = arith.constant 0 : index
    %64 = vector.load %arg8[%c2_52, %c0_53, %c0_54] : memref<5x1x128xf32, #tpu.memory_space<vmem>>, vector<1x1x128xf32>
    %65 = vector.shape_cast %64 : vector<1x1x128xf32> to vector<1x128xf32>
    %66 = vector.broadcast %65 : vector<1x128xf32> to vector<32x128xf32>
    %67 = arith.addf %63, %66 : vector<32x128xf32>
    %cst_55 = arith.constant 0.000000e+00 : f32
    %68 = vector.broadcast %cst_55 : f32 to vector<32x128xf32>
    %69 = arith.maximumf %67, %68 : vector<32x128xf32>
    %70 = arith.truncf %69 : vector<32x128xf32> to vector<32x128xbf16>
    %c3 = arith.constant 3 : index
    %c0_56 = arith.constant 0 : index
    %c0_57 = arith.constant 0 : index
    %71 = vector.load %arg7[%c3, %c0_56, %c0_57] : memref<5x128x128xbf16, #tpu.memory_space<vmem>>, vector<1x128x128xbf16>
    %72 = vector.shape_cast %71 : vector<1x128x128xbf16> to vector<128x128xbf16>
    %cst_58 = arith.constant dense<0.000000e+00> : vector<32x128xf32>
    %73 = tpu.matmul %70, %72, %cst_58 {dimension_numbers = #tpu.dot_dimension_numbers<[1], [0], [0], [1], [0, 0, 1, 1], [], []>} : vector<32x128xbf16>, vector<128x128xbf16>, vector<32x128xf32> -> vector<32x128xf32>
    %c3_59 = arith.constant 3 : index
    %c0_60 = arith.constant 0 : index
    %c0_61 = arith.constant 0 : index
    %74 = vector.load %arg8[%c3_59, %c0_60, %c0_61] : memref<5x1x128xf32, #tpu.memory_space<vmem>>, vector<1x1x128xf32>
    %75 = vector.shape_cast %74 : vector<1x1x128xf32> to vector<1x128xf32>
    %76 = vector.broadcast %75 : vector<1x128xf32> to vector<32x128xf32>
    %77 = arith.addf %73, %76 : vector<32x128xf32>
    %cst_62 = arith.constant 0.000000e+00 : f32
    %78 = vector.broadcast %cst_62 : f32 to vector<32x128xf32>
    %79 = arith.maximumf %77, %78 : vector<32x128xf32>
    %80 = arith.truncf %79 : vector<32x128xf32> to vector<32x128xbf16>
    %c4 = arith.constant 4 : index
    %c0_63 = arith.constant 0 : index
    %c0_64 = arith.constant 0 : index
    %81 = vector.load %arg7[%c4, %c0_63, %c0_64] : memref<5x128x128xbf16, #tpu.memory_space<vmem>>, vector<1x128x128xbf16>
    %82 = vector.shape_cast %81 : vector<1x128x128xbf16> to vector<128x128xbf16>
    %cst_65 = arith.constant dense<0.000000e+00> : vector<32x128xf32>
    %83 = tpu.matmul %80, %82, %cst_65 {dimension_numbers = #tpu.dot_dimension_numbers<[1], [0], [0], [1], [0, 0, 1, 1], [], []>} : vector<32x128xbf16>, vector<128x128xbf16>, vector<32x128xf32> -> vector<32x128xf32>
    %c4_66 = arith.constant 4 : index
    %c0_67 = arith.constant 0 : index
    %c0_68 = arith.constant 0 : index
    %84 = vector.load %arg8[%c4_66, %c0_67, %c0_68] : memref<5x1x128xf32, #tpu.memory_space<vmem>>, vector<1x1x128xf32>
    %85 = vector.shape_cast %84 : vector<1x1x128xf32> to vector<1x128xf32>
    %86 = vector.broadcast %85 : vector<1x128xf32> to vector<32x128xf32>
    %87 = arith.addf %83, %86 : vector<32x128xf32>
    %cst_69 = arith.constant 0.000000e+00 : f32
    %88 = vector.broadcast %cst_69 : f32 to vector<32x128xf32>
    %89 = arith.maximumf %87, %88 : vector<32x128xf32>
    %90 = arith.truncf %89 : vector<32x128xf32> to vector<32x128xbf16>
    %c0_70 = arith.constant 0 : index
    %c0_71 = arith.constant 0 : index
    %91 = vector.load %arg9[%c0_70, %c0_71] : memref<128x128xbf16, #tpu.memory_space<vmem>>, vector<128x128xbf16>
    %cst_72 = arith.constant dense<0.000000e+00> : vector<32x128xf32>
    %92 = tpu.matmul %90, %91, %cst_72 {dimension_numbers = #tpu.dot_dimension_numbers<[1], [0], [0], [1], [0, 0, 1, 1], [], []>} : vector<32x128xbf16>, vector<128x128xbf16>, vector<32x128xf32> -> vector<32x128xf32>
    %c0_73 = arith.constant 0 : index
    %c0_74 = arith.constant 0 : index
    %93 = vector.load %arg13[%c0_73, %c0_74] : memref<64x128xf32, #tpu.memory_space<vmem>>, vector<32x128xf32>
    tpu.vector_store %arg13[%c0_73, %c0_74], %92 {strides = array<i32>} : memref<64x128xf32, #tpu.memory_space<vmem>>, vector<32x128xf32>,
    %c32 = arith.constant 32 : index
    %c0_75 = arith.constant 0 : index
    %94 = vector.load %arg1[%c32, %c0_75] : memref<64x128xbf16, #tpu.memory_space<vmem>>, vector<32x128xbf16>
    %c0_76 = arith.constant 0 : index
    %c0_77 = arith.constant 0 : index
    %95 = vector.load %arg3[%c0_76, %c0_77] : memref<128x256xbf16, #tpu.memory_space<vmem>>, vector<128x256xbf16>
    %cst_78 = arith.constant dense<0.000000e+00> : vector<32x256xf32>
    %96 = tpu.matmul %94, %95, %cst_78 {dimension_numbers = #tpu.dot_dimension_numbers<[1], [0], [0], [1], [0, 0, 1, 1], [], []>} : vector<32x128xbf16>, vector<128x256xbf16>, vector<32x256xf32> -> vector<32x256xf32>
    %c0_79 = arith.constant 0 : index
    %c0_80 = arith.constant 0 : index
    %97 = vector.load %arg4[%c0_79, %c0_80] : memref<1x256xf32, #tpu.memory_space<vmem>>, vector<1x256xf32>
    %98 = vector.broadcast %97 : vector<1x256xf32> to vector<32x256xf32>
    %99 = arith.addf %96, %98 : vector<32x256xf32>
    %100 = vector.extract_strided_slice %99 {offsets = [0, 0], sizes = [32, 128], strides = [1, 1]} : vector<32x256xf32> to vector<32x128xf32>
    %c32_81 = arith.constant 32 : index
    %c0_82 = arith.constant 0 : index
    %101 = vector.load %arg10[%c32_81, %c0_82] : memref<64x128xf32, #tpu.memory_space<vmem>>, vector<32x128xf32>
    tpu.vector_store %arg10[%c32_81, %c0_82], %100 {strides = array<i32>} : memref<64x128xf32, #tpu.memory_space<vmem>>, vector<32x128xf32>,
    %102 = vector.extract_strided_slice %99 {offsets = [0, 128], sizes = [32, 128], strides = [1, 1]} : vector<32x256xf32> to vector<32x128xf32>
    %c32_83 = arith.constant 32 : index
    %c0_84 = arith.constant 0 : index
    %103 = vector.load %arg11[%c32_83, %c0_84] : memref<64x128xf32, #tpu.memory_space<vmem>>, vector<32x128xf32>
    tpu.vector_store %arg11[%c32_83, %c0_84], %102 {strides = array<i32>} : memref<64x128xf32, #tpu.memory_space<vmem>>, vector<32x128xf32>,
    %104 = arith.truncf %100 : vector<32x128xf32> to vector<32x128xbf16>
    %c0_85 = arith.constant 0 : index
    %c0_86 = arith.constant 0 : index
    %c0_87 = arith.constant 0 : index
    %105 = vector.load %arg5[%c0_85, %c0_86, %c0_87] : memref<3x128x128xbf16, #tpu.memory_space<vmem>>, vector<1x128x128xbf16>
    %106 = vector.shape_cast %105 : vector<1x128x128xbf16> to vector<128x128xbf16>
    %cst_88 = arith.constant dense<0.000000e+00> : vector<32x128xf32>
    %107 = tpu.matmul %104, %106, %cst_88 {dimension_numbers = #tpu.dot_dimension_numbers<[1], [0], [0], [1], [0, 0, 1, 1], [], []>} : vector<32x128xbf16>, vector<128x128xbf16>, vector<32x128xf32> -> vector<32x128xf32>
    %c0_89 = arith.constant 0 : index
    %c0_90 = arith.constant 0 : index
    %c0_91 = arith.constant 0 : index
    %108 = vector.load %arg6[%c0_89, %c0_90, %c0_91] : memref<3x1x128xf32, #tpu.memory_space<vmem>>, vector<1x1x128xf32>
    %109 = vector.shape_cast %108 : vector<1x1x128xf32> to vector<1x128xf32>
    %110 = vector.broadcast %109 : vector<1x128xf32> to vector<32x128xf32>
    %111 = arith.addf %107, %110 : vector<32x128xf32>
    %112 = math.tanh %111 : vector<32x128xf32>
    %113 = arith.truncf %112 : vector<32x128xf32> to vector<32x128xbf16>
    %c1_92 = arith.constant 1 : index
    %c0_93 = arith.constant 0 : index
    %c0_94 = arith.constant 0 : index
    %114 = vector.load %arg5[%c1_92, %c0_93, %c0_94] : memref<3x128x128xbf16, #tpu.memory_space<vmem>>, vector<1x128x128xbf16>
    %115 = vector.shape_cast %114 : vector<1x128x128xbf16> to vector<128x128xbf16>
    %cst_95 = arith.constant dense<0.000000e+00> : vector<32x128xf32>
    %116 = tpu.matmul %113, %115, %cst_95 {dimension_numbers = #tpu.dot_dimension_numbers<[1], [0], [0], [1], [0, 0, 1, 1], [], []>} : vector<32x128xbf16>, vector<128x128xbf16>, vector<32x128xf32> -> vector<32x128xf32>
    %c1_96 = arith.constant 1 : index
    %c0_97 = arith.constant 0 : index
    %c0_98 = arith.constant 0 : index
    %117 = vector.load %arg6[%c1_96, %c0_97, %c0_98] : memref<3x1x128xf32, #tpu.memory_space<vmem>>, vector<1x1x128xf32>
    %118 = vector.shape_cast %117 : vector<1x1x128xf32> to vector<1x128xf32>
    %119 = vector.broadcast %118 : vector<1x128xf32> to vector<32x128xf32>
    %120 = arith.addf %116, %119 : vector<32x128xf32>
    %121 = math.tanh %120 : vector<32x128xf32>
    %122 = arith.truncf %121 : vector<32x128xf32> to vector<32x128xbf16>
    %c2_99 = arith.constant 2 : index
    %c0_100 = arith.constant 0 : index
    %c0_101 = arith.constant 0 : index
    %123 = vector.load %arg5[%c2_99, %c0_100, %c0_101] : memref<3x128x128xbf16, #tpu.memory_space<vmem>>, vector<1x128x128xbf16>
    %124 = vector.shape_cast %123 : vector<1x128x128xbf16> to vector<128x128xbf16>
    %cst_102 = arith.constant dense<0.000000e+00> : vector<32x128xf32>
    %125 = tpu.matmul %122, %124, %cst_102 {dimension_numbers = #tpu.dot_dimension_numbers<[1], [0], [0], [1], [0, 0, 1, 1], [], []>} : vector<32x128xbf16>, vector<128x128xbf16>, vector<32x128xf32> -> vector<32x128xf32>
    %c2_103 = arith.constant 2 : index
    %c0_104 = arith.constant 0 : index
    %c0_105 = arith.constant 0 : index
    %126 = vector.load %arg6[%c2_103, %c0_104, %c0_105] : memref<3x1x128xf32, #tpu.memory_space<vmem>>, vector<1x1x128xf32>
    %127 = vector.shape_cast %126 : vector<1x1x128xf32> to vector<1x128xf32>
    %128 = vector.broadcast %127 : vector<1x128xf32> to vector<32x128xf32>
    %129 = arith.addf %125, %128 : vector<32x128xf32>
    %130 = math.tanh %129 : vector<32x128xf32>
    %c32_106 = arith.constant 32 : index
    %c0_107 = arith.constant 0 : index
    %131 = vector.load %arg2[%c32_106, %c0_107] : memref<64x128xf32, #tpu.memory_space<vmem>>, vector<32x128xf32>
    %132 = arith.mulf %130, %131 : vector<32x128xf32>
    %c32_108 = arith.constant 32 : index
    %c0_109 = arith.constant 0 : index
    %133 = vector.load %arg12[%c32_108, %c0_109] : memref<64x128xf32, #tpu.memory_space<vmem>>, vector<32x128xf32>
    tpu.vector_store %arg12[%c32_108, %c0_109], %132 {strides = array<i32>} : memref<64x128xf32, #tpu.memory_space<vmem>>, vector<32x128xf32>,
    %134 = arith.truncf %132 : vector<32x128xf32> to vector<32x128xbf16>
    %c0_110 = arith.constant 0 : index
    %c0_111 = arith.constant 0 : index
    %c0_112 = arith.constant 0 : index
    %135 = vector.load %arg7[%c0_110, %c0_111, %c0_112] : memref<5x128x128xbf16, #tpu.memory_space<vmem>>, vector<1x128x128xbf16>
    %136 = vector.shape_cast %135 : vector<1x128x128xbf16> to vector<128x128xbf16>
    %cst_113 = arith.constant dense<0.000000e+00> : vector<32x128xf32>
    %137 = tpu.matmul %134, %136, %cst_113 {dimension_numbers = #tpu.dot_dimension_numbers<[1], [0], [0], [1], [0, 0, 1, 1], [], []>} : vector<32x128xbf16>, vector<128x128xbf16>, vector<32x128xf32> -> vector<32x128xf32>
    %c0_114 = arith.constant 0 : index
    %c0_115 = arith.constant 0 : index
    %c0_116 = arith.constant 0 : index
    %138 = vector.load %arg8[%c0_114, %c0_115, %c0_116] : memref<5x1x128xf32, #tpu.memory_space<vmem>>, vector<1x1x128xf32>
    %139 = vector.shape_cast %138 : vector<1x1x128xf32> to vector<1x128xf32>
    %140 = vector.broadcast %139 : vector<1x128xf32> to vector<32x128xf32>
    %141 = arith.addf %137, %140 : vector<32x128xf32>
    %cst_117 = arith.constant 0.000000e+00 : f32
    %142 = vector.broadcast %cst_117 : f32 to vector<32x128xf32>
    %143 = arith.maximumf %141, %142 : vector<32x128xf32>
    %144 = arith.truncf %143 : vector<32x128xf32> to vector<32x128xbf16>
    %c1_118 = arith.constant 1 : index
    %c0_119 = arith.constant 0 : index
    %c0_120 = arith.constant 0 : index
    %145 = vector.load %arg7[%c1_118, %c0_119, %c0_120] : memref<5x128x128xbf16, #tpu.memory_space<vmem>>, vector<1x128x128xbf16>
    %146 = vector.shape_cast %145 : vector<1x128x128xbf16> to vector<128x128xbf16>
    %cst_121 = arith.constant dense<0.000000e+00> : vector<32x128xf32>
    %147 = tpu.matmul %144, %146, %cst_121 {dimension_numbers = #tpu.dot_dimension_numbers<[1], [0], [0], [1], [0, 0, 1, 1], [], []>} : vector<32x128xbf16>, vector<128x128xbf16>, vector<32x128xf32> -> vector<32x128xf32>
    %c1_122 = arith.constant 1 : index
    %c0_123 = arith.constant 0 : index
    %c0_124 = arith.constant 0 : index
    %148 = vector.load %arg8[%c1_122, %c0_123, %c0_124] : memref<5x1x128xf32, #tpu.memory_space<vmem>>, vector<1x1x128xf32>
    %149 = vector.shape_cast %148 : vector<1x1x128xf32> to vector<1x128xf32>
    %150 = vector.broadcast %149 : vector<1x128xf32> to vector<32x128xf32>
    %151 = arith.addf %147, %150 : vector<32x128xf32>
    %cst_125 = arith.constant 0.000000e+00 : f32
    %152 = vector.broadcast %cst_125 : f32 to vector<32x128xf32>
    %153 = arith.maximumf %151, %152 : vector<32x128xf32>
    %154 = arith.truncf %153 : vector<32x128xf32> to vector<32x128xbf16>
    %c2_126 = arith.constant 2 : index
    %c0_127 = arith.constant 0 : index
    %c0_128 = arith.constant 0 : index
    %155 = vector.load %arg7[%c2_126, %c0_127, %c0_128] : memref<5x128x128xbf16, #tpu.memory_space<vmem>>, vector<1x128x128xbf16>
    %156 = vector.shape_cast %155 : vector<1x128x128xbf16> to vector<128x128xbf16>
    %cst_129 = arith.constant dense<0.000000e+00> : vector<32x128xf32>
    %157 = tpu.matmul %154, %156, %cst_129 {dimension_numbers = #tpu.dot_dimension_numbers<[1], [0], [0], [1], [0, 0, 1, 1], [], []>} : vector<32x128xbf16>, vector<128x128xbf16>, vector<32x128xf32> -> vector<32x128xf32>
    %c2_130 = arith.constant 2 : index
    %c0_131 = arith.constant 0 : index
    %c0_132 = arith.constant 0 : index
    %158 = vector.load %arg8[%c2_130, %c0_131, %c0_132] : memref<5x1x128xf32, #tpu.memory_space<vmem>>, vector<1x1x128xf32>
    %159 = vector.shape_cast %158 : vector<1x1x128xf32> to vector<1x128xf32>
    %160 = vector.broadcast %159 : vector<1x128xf32> to vector<32x128xf32>
    %161 = arith.addf %157, %160 : vector<32x128xf32>
    %cst_133 = arith.constant 0.000000e+00 : f32
    %162 = vector.broadcast %cst_133 : f32 to vector<32x128xf32>
    %163 = arith.maximumf %161, %162 : vector<32x128xf32>
    %164 = arith.truncf %163 : vector<32x128xf32> to vector<32x128xbf16>
    %c3_134 = arith.constant 3 : index
    %c0_135 = arith.constant 0 : index
    %c0_136 = arith.constant 0 : index
    %165 = vector.load %arg7[%c3_134, %c0_135, %c0_136] : memref<5x128x128xbf16, #tpu.memory_space<vmem>>, vector<1x128x128xbf16>
    %166 = vector.shape_cast %165 : vector<1x128x128xbf16> to vector<128x128xbf16>
    %cst_137 = arith.constant dense<0.000000e+00> : vector<32x128xf32>
    %167 = tpu.matmul %164, %166, %cst_137 {dimension_numbers = #tpu.dot_dimension_numbers<[1], [0], [0], [1], [0, 0, 1, 1], [], []>} : vector<32x128xbf16>, vector<128x128xbf16>, vector<32x128xf32> -> vector<32x128xf32>
    %c3_138 = arith.constant 3 : index
    %c0_139 = arith.constant 0 : index
    %c0_140 = arith.constant 0 : index
    %168 = vector.load %arg8[%c3_138, %c0_139, %c0_140] : memref<5x1x128xf32, #tpu.memory_space<vmem>>, vector<1x1x128xf32>
    %169 = vector.shape_cast %168 : vector<1x1x128xf32> to vector<1x128xf32>
    %170 = vector.broadcast %169 : vector<1x128xf32> to vector<32x128xf32>
    %171 = arith.addf %167, %170 : vector<32x128xf32>
    %cst_141 = arith.constant 0.000000e+00 : f32
    %172 = vector.broadcast %cst_141 : f32 to vector<32x128xf32>
    %173 = arith.maximumf %171, %172 : vector<32x128xf32>
    %174 = arith.truncf %173 : vector<32x128xf32> to vector<32x128xbf16>
    %c4_142 = arith.constant 4 : index
    %c0_143 = arith.constant 0 : index
    %c0_144 = arith.constant 0 : index
    %175 = vector.load %arg7[%c4_142, %c0_143, %c0_144] : memref<5x128x128xbf16, #tpu.memory_space<vmem>>, vector<1x128x128xbf16>
    %176 = vector.shape_cast %175 : vector<1x128x128xbf16> to vector<128x128xbf16>
    %cst_145 = arith.constant dense<0.000000e+00> : vector<32x128xf32>
    %177 = tpu.matmul %174, %176, %cst_145 {dimension_numbers = #tpu.dot_dimension_numbers<[1], [0], [0], [1], [0, 0, 1, 1], [], []>} : vector<32x128xbf16>, vector<128x128xbf16>, vector<32x128xf32> -> vector<32x128xf32>
    %c4_146 = arith.constant 4 : index
    %c0_147 = arith.constant 0 : index
    %c0_148 = arith.constant 0 : index
    %178 = vector.load %arg8[%c4_146, %c0_147, %c0_148] : memref<5x1x128xf32, #tpu.memory_space<vmem>>, vector<1x1x128xf32>
    %179 = vector.shape_cast %178 : vector<1x1x128xf32> to vector<1x128xf32>
    %180 = vector.broadcast %179 : vector<1x128xf32> to vector<32x128xf32>
    %181 = arith.addf %177, %180 : vector<32x128xf32>
    %cst_149 = arith.constant 0.000000e+00 : f32
    %182 = vector.broadcast %cst_149 : f32 to vector<32x128xf32>
    %183 = arith.maximumf %181, %182 : vector<32x128xf32>
    %184 = arith.truncf %183 : vector<32x128xf32> to vector<32x128xbf16>
    %c0_150 = arith.constant 0 : index
    %c0_151 = arith.constant 0 : index
    %185 = vector.load %arg9[%c0_150, %c0_151] : memref<128x128xbf16, #tpu.memory_space<vmem>>, vector<128x128xbf16>
    %cst_152 = arith.constant dense<0.000000e+00> : vector<32x128xf32>
    %186 = tpu.matmul %184, %185, %cst_152 {dimension_numbers = #tpu.dot_dimension_numbers<[1], [0], [0], [1], [0, 0, 1, 1], [], []>} : vector<32x128xbf16>, vector<128x128xbf16>, vector<32x128xf32> -> vector<32x128xf32>
    %c32_153 = arith.constant 32 : index
    %c0_154 = arith.constant 0 : index
    %187 = vector.load %arg13[%c32_153, %c0_154] : memref<64x128xf32, #tpu.memory_space<vmem>>, vector<32x128xf32>
    tpu.vector_store %arg13[%c32_153, %c0_154], %186 {strides = array<i32>} : memref<64x128xf32, #tpu.memory_space<vmem>>, vector<32x128xf32>,
    return
  }
  func.func @transform_0(%arg0: i32) -> (i32, i32) {
    %c0_i32 = arith.constant 0 : i32
    %c0_i32_0 = arith.constant 0 : i32
    return %arg0, %c0_i32 : i32, i32
  }
  func.func @transform_1(%arg0: i32) -> (i32, i32) {
    %c0_i32 = arith.constant 0 : i32
    %c0_i32_0 = arith.constant 0 : i32
    return %arg0, %c0_i32 : i32, i32
  }
  func.func @transform_2(%arg0: i32) -> (i32, i32) {
    %c0_i32 = arith.constant 0 : i32
    %c0_i32_0 = arith.constant 0 : i32
    %c0_i32_1 = arith.constant 0 : i32
    return %c0_i32, %c0_i32_0 : i32, i32
  }
  func.func @transform_3(%arg0: i32) -> (i32, i32) {
    %c0_i32 = arith.constant 0 : i32
    %c0_i32_0 = arith.constant 0 : i32
    %c0_i32_1 = arith.constant 0 : i32
    return %c0_i32, %c0_i32_0 : i32, i32
  }
  func.func @transform_4(%arg0: i32) -> (i32, i32, i32) {
    %c0_i32 = arith.constant 0 : i32
    %c0_i32_0 = arith.constant 0 : i32
    %c0_i32_1 = arith.constant 0 : i32
    %c0_i32_2 = arith.constant 0 : i32
    return %c0_i32, %c0_i32_0, %c0_i32_1 : i32, i32, i32
  }
  func.func @transform_5(%arg0: i32) -> (i32, i32, i32) {
    %c0_i32 = arith.constant 0 : i32
    %c0_i32_0 = arith.constant 0 : i32
    %c0_i32_1 = arith.constant 0 : i32
    %c0_i32_2 = arith.constant 0 : i32
    return %c0_i32, %c0_i32_0, %c0_i32_1 : i32, i32, i32
  }
  func.func @transform_6(%arg0: i32) -> (i32, i32, i32) {
    %c0_i32 = arith.constant 0 : i32
    %c0_i32_0 = arith.constant 0 : i32
    %c0_i32_1 = arith.constant 0 : i32
    %c0_i32_2 = arith.constant 0 : i32
    return %c0_i32, %c0_i32_0, %c0_i32_1 : i32, i32, i32
  }
  func.func @transform_7(%arg0: i32) -> (i32, i32, i32) {
    %c0_i32 = arith.constant 0 : i32
    %c0_i32_0 = arith.constant 0 : i32
    %c0_i32_1 = arith.constant 0 : i32
    %c0_i32_2 = arith.constant 0 : i32
    return %c0_i32, %c0_i32_0, %c0_i32_1 : i32, i32, i32
  }
  func.func @transform_8(%arg0: i32) -> (i32, i32) {
    %c0_i32 = arith.constant 0 : i32
    %c0_i32_0 = arith.constant 0 : i32
    %c0_i32_1 = arith.constant 0 : i32
    return %c0_i32, %c0_i32_0 : i32, i32
  }
  func.func @transform_9(%arg0: i32) -> (i32, i32) {
    %c0_i32 = arith.constant 0 : i32
    %c0_i32_0 = arith.constant 0 : i32
    return %arg0, %c0_i32 : i32, i32
  }
  func.func @transform_10(%arg0: i32) -> (i32, i32) {
    %c0_i32 = arith.constant 0 : i32
    %c0_i32_0 = arith.constant 0 : i32
    return %arg0, %c0_i32 : i32, i32
  }
  func.func @transform_11(%arg0: i32) -> (i32, i32) {
    %c0_i32 = arith.constant 0 : i32
    %c0_i32_0 = arith.constant 0 : i32
    return %arg0, %c0_i32 : i32, i32
  }
  func.func @transform_12(%arg0: i32) -> (i32, i32) {
    %c0_i32 = arith.constant 0 : i32
    %c0_i32_0 = arith.constant 0 : i32
    return %arg0, %c0_i32 : i32, i32
  }
}

</mosaic_0001>

<bundles_post_ra>
// kernel: tpu_custom_call.1
= control target key start
LH: loop header
LB: loop body
LE: loop exit
PB: predicated region body
PF: predicated region fallthrough
CT: control target
= control target key end

     0   :  { %s5068_s0 = inlined_call_operand.hbm [shape: bf16[128,128], index: 0, kind: input, shape index: {}]   ;;  %s5069_s1 = inlined_call_operand.hbm [shape: f32[128,128], index: 1, kind: input, shape index: {}]   ;;  %s5070_s2 = inlined_call_operand.hbm [shape: bf16[128,256], index: 2, kind: input, shape index: {}]   ;;  %s5071_s3 = inlined_call_operand.hbm [shape: f32[1,256], index: 3, kind: input, shape index: {}]   ;;  %s5072_s4 = inlined_call_operand.hbm [shape: bf16[3,128,128], index: 4, kind: input, shape index: {}]   ;;  %s5073_s5 = inlined_call_operand.hbm [shape: f32[3,1,128], index: 5, kind: input, shape index: {}]   ;;  %s5074_s6 = inlined_call_operand.hbm [shape: bf16[5,128,128], index: 6, kind: input, shape index: {}]   ;;  %s5075_s7 = inlined_call_operand.vmem [shape: f32[5,1,128], index: 7, kind: input, shape index: {}]   ;;  %s5076_s8 = inlined_call_operand.hbm [shape: bf16[128,128], index: 8, kind: input, shape index: {}]   ;;  %s5077_s9 = inlined_call_operand.hbm [shape: f32[128,128], index: 9, kind: output, shape index: {0}]   ;;  %s5078_s10 = inlined_call_operand.hbm [shape: f32[128,128], index: 10, kind: output, shape index: {1}]   ;;  %s5079_s11 = inlined_call_operand.hbm [shape: f32[128,128], index: 11, kind: output, shape index: {2}]   ;;  %s5080_s12 = inlined_call_operand.hbm [shape: f32[128,128], index: 12, kind: output, shape index: {3}]  }
   0x1   :  { %5091 = sst [smem:[#allocation35_spill]] %s5068_s0 }
   0x2   :  { %5092 = sst [smem:[#allocation36_spill]] %s5070_s2 }
   0x3   :  { %5093 = sst [smem:[#allocation37_spill]] %s5071_s3 }
   0x4   :  { %5094 = sst [smem:[#allocation38_spill]] %s5072_s4 }
   0x5   :  { %5095 = sst [smem:[#allocation39_spill]] %s5073_s5 }
   0x6   :  { %5096 = sst [smem:[#allocation40_spill]] %s5074_s6 }
   0x7   :  { %5097 = sst [smem:[#allocation41_spill]] %s5076_s8 }
   0x8   :  { %5098 = sst [smem:[#allocation42_spill]] %s5080_s12 }
   0x9   :  { %18 = vsyncpa [#allocation3], 0 }
   0xa   :  { %20 = vsyncpa [#allocation3 + $0x1], 0 }
   0xb   :  { %21 = vsyncpa [#allocation6], 0 }
   0xc   :  { %23 = vsyncpa [#allocation6 + $0x1], 0 }
   0xd   :  { %24 = vsyncpa [#allocation9], 0 }
   0xe   :  { %25 = vsyncpa [#allocation12], 0 }
   0xf   :  { %26 = vsyncpa [#allocation15], 0 }
  0x10   :  { %27 = vsyncpa [#allocation4], 0 }
  0x11   :  { %29 = vsyncpa [#allocation4 + $0x1], 0 }
  0x12   :  { %30 = vsyncpa [#allocation18], 0 }
  0x13   :  { %32 = vsyncpa [#allocation18 + $0x1], 0 }
  0x14   :  { %33 = vsyncpa [#allocation21], 0 }
  0x15   :  { %35 = vsyncpa [#allocation21 + $0x1], 0  ;;  %s4638_s21 = smov 0   ;;  %s4640_s22 = smov 0  }
  0x16   :  { %s4642_s23 = smov 0   ;;  %s4644_s24 = smov 0  }
  0x17 LB: > { %5099 = sst [smem:[#allocation31_spill]] %s4553_s23  ;;  %s4662_s28 = sadd.s32 4294967295, %s4557_s24   ;;  %s4557_s24 = sphi %s4644_s24, %s5126_s24   ;;  %s4553_s23 = sphi %s4642_s23, %s5128_s23   ;;  %s4549_s22 = sphi %s4640_s22, %s5130_s22   ;;  %s4545_s21 = sphi %s4638_s21, %s5129_s21  }
  0x18   : > { %s5100_s2 = sld [smem:[#allocation36_spill]]  ;;  %p2969_p0 = scmp.ge.s32.totalorder %s4557_s24, 1 }
  0x19   : > { %p62_p1 = scmp.eq.s32.totalorder %s4662_s28, 0  ;;  %p349_p2 = scmp.lt.s32.totalorder %s4557_s24, 3 }
  0x1a   : > { %s4559_s30 = smov [#allocation7]   ;;  %s5102_s3 = sld [smem:[#allocation37_spill]] }
  0x1b   : > { %p4667_p3 = pnand %p2969_p0, %p349_p2  ;;  %s362_s13 = sshll.u32 %s4559_s30, 4  ;;  %s363_s13 = int_to_ptr.vmem [resolvable:$true] %s362_s13 }
  0x1c   : > { %s5104_s5 = sld [smem:[#allocation39_spill]]  ;;  %s4560_s25 = smov [#allocation8]  }
  0x1d   : > { %p3976_p4 = pneg %p4667_p3  ;;  %s377_s26 = sshll.u32 %s4560_s25, 4  ;;  %s378_s26 = int_to_ptr.vmem [resolvable:$true] %s377_s26 }
  0x1e   : > { %s360_s27 = sshll.u32 %s5100_s2, 4  ;;  %s5083_s30 = smov 128   ;;  %s361_s27 = int_to_ptr.hbm [resolvable:$true] %s360_s27 }
  0x1f   : > { %p4679_p6 = pnand %p3976_p4, %p62_p1  ;;  %s5084_s2 = smov 8  }
  0x20   : > { %s375_s16 = sshll.u32 %s5102_s3, 4  ;;  %s4563_s14 = smov [#allocation11]   ;;  %s376_s16 = int_to_ptr.hbm [resolvable:$true] %s375_s16 }
  0x21   : > { %3979 = dma.hbm_to_vmem [thread:$0]  (!%p4679_p6), %s361_s27, 2048, %s363_s13, [#allocation6], %s5083_s30, %s5083_s30, %s5084_s2  }
  0x22   : > { %s400_s20 = sshll.u32 %s5104_s5, 4  ;;  %s402_s15 = sshll.u32 %s4563_s14, 4  ;;  %s401_s20 = int_to_ptr.hbm [resolvable:$true] %s400_s20  ;;  %s403_s15 = int_to_ptr.vmem [resolvable:$true] %s402_s15 }
  0x23   : > { %3982 = dma.hbm_to_vmem [thread:$0]  (!%p4679_p6), %s376_s16, 32, %s378_s26, [#allocation9]  }
  0x24   : > { %s5105_s4 = sld [smem:[#allocation38_spill]]  ;;  %s4564_s25 = smov 16  }
  0x25   : > { %s4565_s5 = smov 1   ;;  %s4566_s12 = smov [#allocation10]  }
  0x26   : > { %3988 = dma.hbm_to_vmem [thread:$0]  (!%p4679_p6), %s401_s20, 48, %s403_s15, [#allocation12], %s4564_s25, %s4564_s25, %s4565_s5  }
  0x27   : > { %s388_s27 = sshll.u32 %s4566_s12, 4  ;;  %s5085_s13 = smov 64   ;;  %s389_s27 = int_to_ptr.vmem [resolvable:$true] %s388_s27 }
  0x28   : > { %s5086_s16 = smov 4   ;;  %s5106_s6 = sld [smem:[#allocation40_spill]] }
  0x29   : > { %s4569_s12 = smov [#allocation13]   ;;  %s5107_s8 = sld [smem:[#allocation41_spill]] }
  0x2a   : > { %s386_s3 = sshll.u32 %s5105_s4, 4  ;;  %s416_s20 = sshll.u32 %s4569_s12, 4  ;;  %s387_s3 = int_to_ptr.hbm [resolvable:$true] %s386_s3  ;;  %s417_s20 = int_to_ptr.vmem [resolvable:$true] %s416_s20 }
  0x2b   : > { %3985 = dma.hbm_to_vmem [thread:$0]  (!%p4679_p6), %s387_s3, 3072, %s389_s27, [#allocation9], %s5085_s13, %s5085_s13, %s5086_s16  }
  0x2c   : > { %s4570_s3 = smov [#allocation14]   ;;  %s5082_s27 = sadd.s32 4294967294, %s4557_s24  }
  0x2d   : > { %s433_s25 = sshll.u32 %s4570_s3, 4  ;;  %s4721_s26 = sadd.s32 1, %s4557_s24   ;;  %s434_s25 = int_to_ptr.vmem [resolvable:$true] %s433_s25 }
  0x2e   : > { %s414_s5 = sshll.u32 %s5106_s6, 4  ;;  %5108 = sst [smem:[#allocation32_spill]] %s4721_s26  ;;  %s415_s5 = int_to_ptr.hbm [resolvable:$true] %s414_s5 }
  0x2f   : > { %s431_s19 = sshll.u32 %s5107_s8, 4  ;;  %s45_s14 = ssub.s32 %s4557_s24, %s4721_s26  ;;  %s432_s19 = int_to_ptr.hbm [resolvable:$true] %s431_s19 }
  0x30   : > { %3991 = dma.hbm_to_vmem [thread:$0]  (!%p4679_p6), %s415_s5, 5120, %s417_s20, [#allocation12], %s5085_s13, %s5085_s13, %s5086_s16  }
  0x31   : > { %3994 = dma.hbm_to_vmem [thread:$0]  (!%p4679_p6), %s432_s19, 1024, %s434_s25, [#allocation15], %s5085_s13, %s5085_s13, %s5086_s16  }
  0x32   : > { %s48_s5 = sadd.s32 1, %s4553_s23  ;;  %p46_p7 = scmp.eq.s32.totalorder %s45_s14, 0 }
  0x33   : > { %p55_p8 = scmp.ne.s32.totalorder %s4553_s23, %s4549_s22  ;;  %p56_p9 = scmp.eq.s32.totalorder %s4557_s24, 0 }
  0x34   : > { %p61_p10 = scmp.ne.s32.totalorder %s4549_s22, %s4545_s21  ;;  %p258_p13 = scmp.eq.s32.totalorder %s4662_s28, 1 }
  0x35   : > { %s4732_s12 = scalar_select %p46_p7, %s4553_s23, %s48_s5  }
  0x36   : > { %p4734_p11 = por %p56_p9, %p55_p8  ;;  %p4740_p12 = por %p62_p1, %p61_p10 }
  0x37   : > { %5109 = sst [smem:[#allocation33_spill]] %s4732_s12  ;;  %p264_p0 = scmp.eq.s32.totalorder %s5082_s27, 1 }
  0x38   : > { %p4021_p2 = scmp.lt.s32.totalorder %s4557_s24, 2  ;;  %s4749_s15 = sand.u32 1, %s4553_s23  }
  0x39   : > { %p4751_p4 = por %p258_p13, %p55_p8  ;;  %p4755_p6 = por %p264_p0, %p61_p10 }
  0x3a   : > { %s2977_s3 = sshll.u32 %s4749_s15, 5  ;;  %s3738_s25 = sshll.u32 %s4557_s24, 5 }
  0x3b   : > { %s5113_s19 = scalar_select %p4755_p6, 1, 0 }
  0x3c   : > { %s5115_s0 = sld [smem:[#allocation35_spill]]  ;;  %s451_s30 = scalar_lea.vmem [#allocation2], %s2977_s3 }
  0x3d   : > { %5114 = sst [smem:[#allocation34_spill]] %s5113_s19  ;;  %s459_s2 = sshll.u32 %s451_s30, 4  ;;  %s460_s2 = int_to_ptr.vmem [resolvable:$true] %s459_s2 }
  0x3e   : > { %p4766_p7 = pnand %p4021_p2, %p4734_p11  ;;  %s469_s4 = sand.u32 1, %s4557_s24  }
  0x3f   : > { %s2980_s6 = sshll.u32 %s4749_s15, 6  ;;  %s448_s8 = scalar_lea.sflag [#allocation3], %s4749_s15 }
  0x40   : > { %p4323_p9 = pneg %p4766_p7 }
  0x42   : > { %s456_s27 = scalar_lea.hbm %s5115_s0, %s3738_s25  ;;  %s4326_s17 = scalar_lea.hbm %s5115_s0, 64 }
  0x43   : > { %s457_s13 = sshll.u32 %s456_s27, 4  ;;  %s458_s13 = int_to_ptr.hbm [resolvable:$true] %s457_s13 }
  0x44   : > { %s4319_s12 = sshra.s32 %s458_s13, 4  ;;  %s4320_s12 = int_to_ptr.hbm [resolvable:$true] %s4319_s12 }
  0x45   : > { %s4321_s23 = scalar_lea.hbm %s4320_s12, 32  ;;  %p4327_p11 = scmp.lt.s32.totalorder %s4320_s12, %s5115_s0 }
  0x46   : > { %p4322_p8 = scmp.ne.s32.totalorder %s4320_s12, %s4321_s23  ;;  %p4328_p0 = scmp.lt.s32.totalorder %s4326_s17, %s4321_s23 }
  0x48   : > { %p4324_p10 = pnand %p4323_p9, %p4322_p8  ;;  %p4329_p2 = por %p4328_p0, %p4327_p11 }
  0x4a   : > { %p4325_p13 = pneg %p4324_p10 }
  0x4c   : > { %p4330_p5 = pnand %p4329_p2, %p4325_p13 }
  0x4e   : > { %4333 = shalt.err (!%p4330_p5)
}
  0x4f   : > { %s5117_s15 = smov 4   ;;  %s5118_s14 = smov 64  }
  0x50   : > { %3998 = dma.hbm_to_vmem [thread:$0]  (!%p4766_p7), %s458_s13, 512, %s460_s2, %s448_s8, %s5118_s14, %s5118_s14, %s5117_s15  }
  0x51   : > { %s3739_s5 = sshll.u32 %s4557_s24, 6  ;;  %s473_s19 = scalar_lea.vmem [#allocation5], %s2980_s6 }
  0x52   : > { %s478_s27 = scalar_lea.hbm %s5069_s1, %s3739_s5  ;;  %s481_s3 = sshll.u32 %s473_s19, 4  ;;  %s482_s3 = int_to_ptr.vmem [resolvable:$true] %s481_s3 }
  0x53   : > { %s479_s12 = sshll.u32 %s478_s27, 4  ;;  %s470_s23 = scalar_lea.sflag [#allocation6], %s469_s4  ;;  %s480_s12 = int_to_ptr.hbm [resolvable:$true] %s479_s12 }
  0x54   : > { %s4349_s17 = sshra.s32 %s480_s12, 4  ;;  %s4356_s13 = scalar_lea.hbm %s5069_s1, 128  ;;  %s4350_s17 = int_to_ptr.hbm [resolvable:$true] %s4349_s17 }
  0x55   : > { %s4351_s25 = scalar_lea.hbm %s4350_s17, 64  ;;  %p4357_p13 = scmp.lt.s32.totalorder %s4350_s17, %s5069_s1 }
  0x56   : > { %p4352_p5 = scmp.ne.s32.totalorder %s4350_s17, %s4351_s25  ;;  %p4358_p11 = scmp.lt.s32.totalorder %s4356_s13, %s4351_s25 }
  0x58   : > { %p4354_p8 = pnand %p4352_p5, %p4323_p9  ;;  %p4359_p0 = por %p4358_p11, %p4357_p13 }
  0x5a   : > { %p4355_p10 = pneg %p4354_p8 }
  0x5c   : > { %p4360_p2 = pnand %p4359_p0, %p4355_p10 }
  0x5e   : > { %4363 = shalt.err (!%p4360_p2)
}
  0x5f   : > { %s5119_s4 = smov 8   ;;  %s5120_s6 = smov 128  }
  0x60   : > { %4001 = dma.hbm_to_vmem [thread:$0]  (!%p4766_p7), %s480_s12, 1024, %s482_s3, %s470_s23, %s5120_s6, %s5120_s6, %s5119_s4  }
  0x61   : > { %493 = sbr.rel (%p4667_p3) target bundleno = 2665 (0xa69), region = 56  ;;  %s4810_s19 = sand.u32 (!%p4667_p3), 1, %s4549_s22  }
  0x62   : > { %s2984_s14 = sshll.u32 (!%p4667_p3), %s4810_s19, 5  ;;  %s496_s5 = scalar_lea.sflag (!%p4667_p3), [#allocation3], %s4810_s19 }
  0x63   : > { %s4814_s30 = scalar_lea.vmem (!%p4667_p3), [#allocation2], %s2984_s14 }
  0x66   : > { %4508 = dma.done.wait (%p4740_p12), %s496_s5, 512  }
  0x67   : > { %4510 = vsyncadd (%p4740_p12), %s496_s5, 4294966784  ;;  %s505_s29 = sand.u32 1, %s4662_s28   ;;  %s4822_s16 = sshll.u32 %s4810_s19, 6 }
  0x68   : > { %s506_s27 = scalar_lea.sflag [#allocation6], %s505_s29  ;;  %s4827_s3 = scalar_lea.vmem [#allocation5], %s4822_s16 }
  0x69   : > { %4512 = dma.done.wait (%p4740_p12), %s506_s27, 1024  }
  0x6a   : > { %4514 = vsyncadd (%p4740_p12), %s506_s27, 4294966272 }
  0x6b   : > { %4516 = dma.done.wait (%p62_p1), [#allocation6], 2048  }
  0x6c   : > { %4518 = vsyncadd (%p62_p1), [#allocation6], 4294965248 }
  0x6d   : > { %4520 = dma.done.wait (%p62_p1), [#allocation9], 3104  }
  0x6e   : > { %4522 = vsyncadd (%p62_p1), [#allocation9], 4294964192 }
  0x6f   : > { %4524 = dma.done.wait (%p62_p1), [#allocation12], 5168  }
  0x70   : > { %4526 = vsyncadd (%p62_p1), [#allocation12], 4294962128 }
  0x71   : > { %4528 = dma.done.wait (%p62_p1), [#allocation15], 1024  }
  0x72   : > { %4530 = vsyncadd (%p62_p1), [#allocation15], 4294966272  ;;  %v3062_v0 = vld [vmem:[#allocation7 + $0x70] sm:$0xf]  ;;  %v3757_v1 = vld [vmem:[#allocation7 + $0x74] sm:$0xf0] }
  0x73   : > { %v3054_v2 = vld [vmem:[#allocation7 + $0x60] sm:$0xf]  ;;  %v3063_v3 = vor.u32 %v3757_v1, %v3062_v0  ;;  %v3755_v4 = vld [vmem:[#allocation7 + $0x64] sm:$0xf0]  ;;  %v3046_v6 = vld [vmem:[#allocation7 + $0x50] sm:$0xf] }
  0x74   : > { %v3055_v5 = vor.u32 %v3755_v4, %v3054_v2  ;;  %v3753_v7 = vld [vmem:[#allocation7 + $0x54] sm:$0xf0]  ;;  %v3038_v8 = vld [vmem:[#allocation7 + $0x40] sm:$0xf]  ;;  %v3751_v9 = vld [vmem:[#allocation7 + $0x44] sm:$0xf0] }
  0x75   : > { %725 = vmatpush.bf16.msra.mxu0 %v3063_v3  ;;  %v3047_v10 = vor.u32 %v3753_v7, %v3046_v6  ;;  %v3039_v11 = vor.u32 %v3751_v9, %v3038_v8  ;;  %v3030_v12 = vld [vmem:[#allocation7 + $0x30] sm:$0xf]  ;;  %v3749_v13 = vld [vmem:[#allocation7 + $0x34] sm:$0xf0]  ;;  %v3022_v15 = vld [vmem:[#allocation7 + $0x20] sm:$0xf] }
  0x76   : > { %v3031_v14 = vor.u32 %v3749_v13, %v3030_v12  ;;  %v3747_v16 = vld [vmem:[#allocation7 + $0x24] sm:$0xf0]  ;;  %v3765_v17 = vld [vmem:[#allocation10 + $0x38] sm:$0xff]  ;;  %v3014_v19 = vld [vmem:[#allocation7 + $0x10] sm:$0xf]  ;;  %s4861_s20 = scalar_lea.vmem [#allocation16], %s4822_s16 }
  0x77   : > { %v3023_v18 = vor.u32 %v3747_v16, %v3022_v15  ;;  %v3745_v20 = vld [vmem:[#allocation7 + $0x14] sm:$0xf0]  ;;  %841 = vmatpush.bf16.msra.mxu2 %v3765_v17  ;;  %v3006_v23 = vld [vmem:[#allocation7] sm:$0xf]  ;;  %v3743_v24 = vld [vmem:[#allocation7 + $0x4] sm:$0xf0] }
  0x78   : > { %v3764_v21 = vld [vmem:[#allocation10 + $0x30] sm:$0xff]  ;;  %v3015_v22 = vor.u32 %v3745_v20, %v3014_v19  ;;  %v3763_v25 = vld [vmem:[#allocation10 + $0x28] sm:$0xff]  ;;  %v3007_v26 = vor.u32 %v3743_v24, %v3006_v23  ;;  %v3762_v27 = vld [vmem:[#allocation10 + $0x20] sm:$0xff]  ;;  %s4871_s12 = scalar_lea.vmem [#allocation19], %s4822_s16  ;;  %s4878_s23 = scalar_lea.vmem [#allocation17], %s4822_s16 }
  0x79   : > { %726 = vmatpush.bf16.msra.mxu0 %v3055_v5  ;;  %v4850_v28 = vld [vmem:[%s4814_s30] sm:$0xff]  ;;  %v4854_v30 = vld [vmem:[%s4814_s30 + $0x8] sm:$0xff]  ;;  %v3760_v31 = vld [vmem:[#allocation10 + $0x10] sm:$0xff]  ;;  %s4919_s5 = scalar_lea.vmem [#allocation20], %s4822_s16  ;;  %s2665_s15 = sshll.u32 %s4861_s20, 4  ;;  %s4958_s15 = int_to_ptr.vmem [resolvable:$true] %s2665_s15 }
  0x7a   : > { %v3761_v29 = vld [vmem:[#allocation10 + $0x18] sm:$0xff]  ;;  %v3759_v32 = vld [vmem:[#allocation10 + $0x8] sm:$0xff]  ;;  %v3758_v33 = vld [vmem:[#allocation10] sm:$0xff]  ;;  %s2699_s4 = sshll.u32 %s4871_s12, 4  ;;  %s2682_s6 = sshll.u32 %s4878_s23, 4  ;;  %s4960_s4 = int_to_ptr.vmem [resolvable:$true] %s2699_s4  ;;  %s2683_s6 = int_to_ptr.vmem [resolvable:$true] %s2682_s6 }
  0x7b   : > { %842 = vmatpush.bf16.msra.mxu2 %v3764_v21  ;;  %v4857_v34 = vld [vmem:[#allocation8] sm:$0x3]  ;;  %v3772_v37 = vld [vmem:[#allocation10 + $0x70] sm:$0xff]  ;;  %v3771_v40 = vld [vmem:[#allocation10 + $0x68] sm:$0xff]  ;;  %s4963_s14 = sshll.u32 %s4662_s28, 6  ;;  %s4399_s26 = scalar_lea.hbm %s5078_s10, 128 }
  0x7c   : > { %v629_v35 = vperm.slane %v4857_v34, 0  ;;  %v3773_v36 = vld [vmem:[#allocation10 + $0x78] sm:$0xff]  ;;  %v3770_v49 = vld [vmem:[#allocation10 + $0x60] sm:$0xff]  ;;  %v3768_v51 = vld [vmem:[#allocation10 + $0x50] sm:$0xff]  ;;  %s2681_s27 = scalar_lea.hbm %s5078_s10, %s4963_s14 }
  0x7d   : > { %727 = vmatpush.bf16.msra.mxu0 %v3047_v10  ;;  %936 = vmatpush.bf16.msra.mxu3 %v3773_v36  ;;  %v3769_v50 = vld [vmem:[#allocation10 + $0x58] sm:$0xff]  ;;  %v3767_v52 = vld [vmem:[#allocation10 + $0x48] sm:$0xff]  ;;  %v3766_v53 = vld [vmem:[#allocation10 + $0x40] sm:$0xff] }
  0x7e   : > { %v4075_v55 = vld [vmem:[#allocation11] ss:$0 sm:$0xff]  ;;  %v3781_v56 = vld [vmem:[#allocation10 + $0xb8] sm:$0xff]  ;;  %v3780_v58 = vld [vmem:[#allocation10 + $0xb0] sm:$0xff] }
  0x7f   : > { %843 = vmatpush.bf16.msra.mxu2 %v3763_v25  ;;  %v3779_v61 = vld [vmem:[#allocation10 + $0xa8] sm:$0xff]  ;;  %v3778_v8 = vld [vmem:[#allocation10 + $0xa0] sm:$0xff]  ;;  %v3777_v9 = vld [vmem:[#allocation10 + $0x98] sm:$0xff] }
  0x80   : > { %v3776_v10 = vld [vmem:[#allocation10 + $0x90] sm:$0xff]  ;;  %v3774_v12 = vld [vmem:[#allocation10 + $0x80] sm:$0xff]  ;;  %v3064_v16 = vld [vmem:[#allocation7 + $0x78] sm:$0xf0] }
  0x81   : > { %728 = vmatpush.bf16.msra.mxu0 %v3039_v11  ;;  %937 = vmatpush.bf16.msra.mxu3 %v3772_v37  ;;  %v3775_v11 = vld [vmem:[#allocation10 + $0x88] sm:$0xff]  ;;  %v3756_v15 = vld [vmem:[#allocation7 + $0x74] sm:$0xf]  ;;  %v3754_v17 = vld [vmem:[#allocation7 + $0x64] sm:$0xf] }
  0x82   : > { %v3056_v19 = vld [vmem:[#allocation7 + $0x68] sm:$0xf0]  ;;  %v3752_v23 = vld [vmem:[#allocation7 + $0x54] sm:$0xf]  ;;  %v3048_v24 = vld [vmem:[#allocation7 + $0x58] sm:$0xf0] }
  0x83   : > { %844 = vmatpush.bf16.msra.mxu2 %v3762_v27  ;;  %v3059_v21 = vor.u32 %v3754_v17, %v3056_v19  ;;  %v3750_v27 = vld [vmem:[#allocation7 + $0x44] sm:$0xf]  ;;  %v3032_v36 = vld [vmem:[#allocation7 + $0x38] sm:$0xf0] }
  0x85   : > { %729 = vmatpush.bf16.msra.mxu0 %v3031_v14  ;;  %938 = vmatpush.bf16.msra.mxu3 %v3771_v40  ;;  %v4076_v14 = vld [vmem:[#allocation11 + $0x1] ss:$0 sm:$0xff]  ;;  %v3746_v40 = vld [vmem:[#allocation7 + $0x24] sm:$0xf] }
  0x87   : > { %845 = vmatpush.bf16.msra.mxu2 %v3761_v29  ;;  %v3040_v29 = vld [vmem:[#allocation7 + $0x48] sm:$0xf0] }
  0x89   : > { %730 = vmatpush.bf16.msra.mxu0 %v3023_v18  ;;  %939 = vmatpush.bf16.msra.mxu3 %v3770_v49  ;;  %v3067_v18 = vor.u32 %v3756_v15, %v3064_v16  ;;  %v3742_v49 = vld [vmem:[#allocation7 + $0x4] sm:$0xf] }
  0x8a   : > { %v3794_v16 = vld [vmem:[#allocation13 + $0x60] sm:$0xff] }
  0x8b   : > { %846 = vmatpush.bf16.msra.mxu2 %v3760_v31  ;;  %744 = vmatpush.bf16.msra.mxu1 %v3067_v18  ;;  %v3043_v31 = vor.u32 %v3750_v27, %v3040_v29  ;;  %v3793_v18 = vld [vmem:[#allocation13 + $0x58] sm:$0xff] }
  0x8d   : > { %731 = vmatpush.bf16.msra.mxu0 %v3015_v22  ;;  %940 = vmatpush.bf16.msra.mxu3 %v3769_v50  ;;  %v3008_v50 = vld [vmem:[#allocation7 + $0x8] sm:$0xf0] }
  0x8f   : > { %847 = vmatpush.bf16.msra.mxu2 %v3759_v32  ;;  %745 = vmatpush.bf16.msra.mxu1 %v3059_v21 }
  0x91   : > { %732 = vmatpush.bf16.msra.mxu0 %v3007_v26  ;;  %941 = vmatpush.bf16.msra.mxu3 %v3768_v51  ;;  %v3051_v26 = vor.u32 %v3752_v23, %v3048_v24  ;;  %v3011_v51 = vor.u32 %v3742_v49, %v3008_v50 }
  0x93   : > { %848 = vmatpush.bf16.msra.mxu2 %v3758_v33  ;;  %746 = vmatpush.bf16.msra.mxu1 %v3051_v26 }
  0x94   : > { %733 = vmatmul.bf16.vlgmr.msra.gmra.mxu0 %v4850_v28 }
  0x95   : > { %942 = vmatpush.bf16.msra.mxu3 %v3767_v52  ;;  %1031 = vmatpush.bf16.msrb.mxu0 %v3781_v56  ;;  %v3788_v56 = vld [vmem:[#allocation13 + $0x30] sm:$0xff] }
  0x97   : > { %747 = vmatpush.bf16.msra.mxu1 %v3043_v31 }
  0x99   : > { %943 = vmatpush.bf16.msra.mxu3 %v3766_v53  ;;  %1032 = vmatpush.bf16.msrb.mxu0 %v3780_v58  ;;  %v3789_v53 = vld [vmem:[#allocation13 + $0x38] sm:$0xff]  ;;  %v3786_v58 = vld [vmem:[#allocation13 + $0x20] sm:$0xff] }
  0x9d   : > { %1033 = vmatpush.bf16.msrb.mxu0 %v3779_v61  ;;  %v3783_v61 = vld [vmem:[#allocation13 + $0x8] sm:$0xff] }
  0xa1   : > { %1034 = vmatpush.bf16.msrb.mxu0 %v3778_v8  ;;  %v630_v8 = vperm.slane %v4857_v34, 1  ;;  %v1056_v34 = vld [vmem:[%s4827_s3 + $0x10] sm:$0xff] }
  0xa4   : > { %738 = vmatmul.bf16.gmra.mxu0 %v4854_v30 }
  0xa5   : > { %1035 = vmatpush.bf16.msrb.mxu0 %v3777_v9  ;;  %v3795_v9 = vld [vmem:[#allocation13 + $0x68] sm:$0xff] }
  0xa9   : > { %1036 = vmatpush.bf16.msrb.mxu0 %v3776_v10 }
  0xad   : > { %1037 = vmatpush.bf16.msrb.mxu0 %v3775_v11 }
  0xb1   : > { %1038 = vmatpush.bf16.msrb.mxu0 %v3774_v12 }
 0x111   : > { %v734_v38 = vpop.f32.mrf.mxu0 }
 0x112   : > { %v735_v39 = vadd.f32 %v734_v38, %v629_v35 }
 0x114   : > { %763 = vst [vmem:[%s4861_s20] sm:$0xff] %v735_v39 }
 0x119   : > { %v736_v41 = vpop.f32.mrf.mxu0 }
 0x11a   : > { %v737_v42 = vadd.f32 %v736_v41, %v629_v35  ;;  %v3024_v41 = vld [vmem:[#allocation7 + $0x28] sm:$0xf0] }
 0x11c   : > { %764 = vst [vmem:[%s4861_s20 + $0x8] sm:$0xff] %v737_v42  ;;  %v771_v43 = vpack.c.bf16 %v737_v42, %v735_v39 }
 0x11e   : > { %849 = vmatmul.bf16.vlgmr.msra.gmra.mxu2 %v771_v43  ;;  %v3027_v43 = vor.u32 %v3746_v40, %v3024_v41  ;;  %v3804_v41 = vld [vmem:[#allocation13 + $0xb0] sm:$0xff] }
 0x121   : > { %v739_v44 = vpop.f32.mrf.mxu0 }
 0x122   : > { %v740_v45 = vadd.f32 %v739_v44, %v629_v35 }
 0x124   : > { %765 = vst [vmem:[%s4861_s20 + $0x10] sm:$0xff] %v740_v45 }
 0x129   : > { %v741_v46 = vpop.f32.mrf.mxu0 }
 0x12a   : > { %v742_v47 = vadd.f32 %v741_v46, %v629_v35  ;;  %v3748_v35 = vld [vmem:[#allocation7 + $0x34] sm:$0xf]  ;;  %v3016_v46 = vld [vmem:[#allocation7 + $0x18] sm:$0xf0] }
 0x12b   : > { %v3035_v39 = vor.u32 %v3748_v35, %v3032_v36  ;;  %v3792_v36 = vld [vmem:[#allocation13 + $0x50] sm:$0xff] }
 0x12c   : > { %766 = vst [vmem:[%s4861_s20 + $0x18] sm:$0xff] %v742_v47  ;;  %v772_v48 = vpack.c.bf16 %v742_v47, %v740_v45  ;;  %v3744_v45 = vld [vmem:[#allocation7 + $0x14] sm:$0xf] }
 0x12d   : > { %748 = vmatpush.bf16.msra.mxu1 %v3035_v39  ;;  %v3805_v39 = vld [vmem:[#allocation13 + $0xb8] sm:$0xff] }
 0x12e   : > { %854 = vmatmul.bf16.gmra.mxu2 %v772_v48  ;;  %v3019_v48 = vor.u32 %v3744_v45, %v3016_v46  ;;  %1326 = vmatpush.bf16.msrb.mxu3 %v3805_v39  ;;  %v3378_v39 = vld [vmem:[#allocation7 + $0x10] sm:$0xf] }
 0x131   : > { %749 = vmatpush.bf16.msra.mxu1 %v3027_v43  ;;  %v3803_v43 = vld [vmem:[#allocation13 + $0xa8] sm:$0xff] }
 0x132   : > { %1327 = vmatpush.bf16.msrb.mxu3 %v3804_v41 }
 0x135   : > { %750 = vmatpush.bf16.msra.mxu1 %v3019_v48 }
 0x136   : > { %1328 = vmatpush.bf16.msrb.mxu3 %v3803_v43  ;;  %v3833_v43 = vld [vmem:[#allocation7 + $0x4] sm:$0xf0] }
 0x139   : > { %751 = vmatpush.bf16.msra.mxu1 %v3011_v51  ;;  %v3801_v51 = vld [vmem:[#allocation13 + $0x98] sm:$0xff] }
 0x13c   : > { %752 = vmatmul.bf16.vlgmr.msra.gmra.mxu1 %v4850_v28 }
 0x13d   : > { %1136 = vmatpush.bf16.msrb.mxu1 %v3789_v53 }
 0x141   : > { %1137 = vmatpush.bf16.msrb.mxu1 %v3788_v56 }
 0x14c   : > { %757 = vmatmul.bf16.gmra.mxu1 %v4854_v30 }
 0x1a1   : > { %v850_v54 = vpop.f32.mrf.mxu2 }
 0x1a2   : > { %v851_v57 = vadd.f32 %v4075_v55, %v850_v54 }
 0x1a4   : > { %4091 = vtanh.f32 %v851_v57  ;;  %v3787_v57 = vld [vmem:[#allocation13 + $0x28] sm:$0xff] }
 0x1a5   : > { %1138 = vmatpush.bf16.msrb.mxu1 %v3787_v57 }
 0x1a9   : > { %v852_v59 = vpop.f32.mrf.mxu2  ;;  %1139 = vmatpush.bf16.msrb.mxu1 %v3786_v58 }
 0x1aa   : > { %v853_v60 = vadd.f32 %v4075_v55, %v852_v59  ;;  %v4092_v62 = vpop.eup %4091  ;;  %v3785_v59 = vld [vmem:[#allocation13 + $0x18] sm:$0xff] }
 0x1ac   : > { %4093 = vtanh.f32 %v853_v60  ;;  %v3784_v60 = vld [vmem:[#allocation13 + $0x10] sm:$0xff] }
 0x1ad   : > { %1140 = vmatpush.bf16.msrb.mxu1 %v3785_v59  ;;  %v3800_v59 = vld [vmem:[#allocation13 + $0x90] sm:$0xff] }
 0x1b1   : > { %v855_v63 = vpop.f32.mrf.mxu2  ;;  %1141 = vmatpush.bf16.msrb.mxu1 %v3784_v60  ;;  %v3799_v60 = vld [vmem:[#allocation13 + $0x88] sm:$0xff] }
 0x1b2   : > { %v4094_v0 = vpop.eup %4093  ;;  %v856_v2 = vadd.f32 %v4075_v55, %v855_v63  ;;  %v4077_v63 = vld [vmem:[#allocation11 + $0x2] ss:$0 sm:$0xff] }
 0x1b3   : > { %v864_v1 = vpack.c.bf16 %v4094_v0, %v4092_v62  ;;  %v3782_v62 = vld [vmem:[#allocation13] sm:$0xff] }
 0x1b4   : > { %4095 = vtanh.f32 %v856_v2  ;;  %v1054_v2 = vld [vmem:[%s4827_s3] sm:$0xff] }
 0x1b5   : > { %944 = vmatmul.bf16.vlgmr.msra.gmra.mxu3 %v864_v1  ;;  %1142 = vmatpush.bf16.msrb.mxu1 %v3783_v61  ;;  %v3797_v1 = vld [vmem:[#allocation13 + $0x78] sm:$0xff]  ;;  %v3798_v61 = vld [vmem:[#allocation13 + $0x80] sm:$0xff] }
 0x1b6   : > { %1231 = vmatpush.bf16.msrb.mxu2 %v3797_v1  ;;  %v3811_v1 = vld [vmem:[#allocation13 + $0xe8] sm:$0xff] }
 0x1b9   : > { %v857_v3 = vpop.f32.mrf.mxu2  ;;  %1143 = vmatpush.bf16.msrb.mxu1 %v3782_v62  ;;  %v3813_v62 = vld [vmem:[#allocation13 + $0xf8] sm:$0xff] }
 0x1ba   : > { %v858_v4 = vadd.f32 %v4075_v55, %v857_v3  ;;  %v4096_v5 = vpop.eup %4095  ;;  %1421 = vmatpush.bf16.msra.mxu0 %v3813_v62 }
 0x1bc   : > { %4097 = vtanh.f32 %v858_v4 }
 0x1c2   : > { %v4098_v6 = vpop.eup %4097 }
 0x1c3   : > { %v865_v7 = vpack.c.bf16 %v4098_v6, %v4096_v5  ;;  %v3796_v6 = vld [vmem:[#allocation13 + $0x70] sm:$0xff] }
 0x1c4   : > { %1232 = vmatpush.bf16.msrb.mxu2 %v3796_v6 }
 0x1c5   : > { %949 = vmatmul.bf16.gmra.mxu3 %v865_v7  ;;  %v1055_v7 = vld [vmem:[%s4827_s3 + $0x8] sm:$0xff] }
 0x1c8   : > { %1233 = vmatpush.bf16.msrb.mxu2 %v3795_v9 }
 0x1cc   : > { %1234 = vmatpush.bf16.msrb.mxu2 %v3794_v16  ;;  %v3426_v16 = vld [vmem:[#allocation7 + $0x70] sm:$0xf] }
 0x1d0   : > { %1235 = vmatpush.bf16.msrb.mxu2 %v3793_v18 }
 0x1d4   : > { %1236 = vmatpush.bf16.msrb.mxu2 %v3792_v36  ;;  %v3386_v36 = vld [vmem:[#allocation7 + $0x20] sm:$0xf] }
 0x238   : > { %v945_v13 = vpop.f32.mrf.mxu3 }
 0x239   : > { %v946_v20 = vadd.f32 %v4076_v14, %v945_v13 }
 0x23b   : > { %4099 = vtanh.f32 %v946_v20 }
 0x240   : > { %v947_v22 = vpop.f32.mrf.mxu3 }
 0x241   : > { %v948_v25 = vadd.f32 %v4076_v14, %v947_v22  ;;  %v4100_v32 = vpop.eup %4099 }
 0x243   : > { %4101 = vtanh.f32 %v948_v25  ;;  %v1057_v25 = vld [vmem:[%s4827_s3 + $0x18] sm:$0xff] }
 0x248   : > { %v950_v33 = vpop.f32.mrf.mxu3 }
 0x249   : > { %v4102_v37 = vpop.eup %4101  ;;  %v951_v42 = vadd.f32 %v4076_v14, %v950_v33 }
 0x24a   : > { %v959_v38 = vpack.c.bf16 %v4102_v37, %v4100_v32  ;;  %v3791_v37 = vld [vmem:[#allocation13 + $0x48] sm:$0xff] }
 0x24b   : > { %4103 = vtanh.f32 %v951_v42  ;;  %1237 = vmatpush.bf16.msrb.mxu2 %v3791_v37  ;;  %v4078_v42 = vld [vmem:[%s5075_s7] ss:$0 sm:$0xff]  ;;  %v3837_v37 = vld [vmem:[#allocation7 + $0x24] sm:$0xf0] }
 0x24c   : > { %1039 = vmatmul.bf16.vlgmr.msrb.gmra.mxu0 %v959_v38  ;;  %v3790_v38 = vld [vmem:[#allocation13 + $0x40] sm:$0xff] }
 0x24f   : > { %1238 = vmatpush.bf16.msrb.mxu2 %v3790_v38  ;;  %v3387_v38 = vor.u32 %v3837_v37, %v3386_v36 }
 0x250   : > { %v952_v44 = vpop.f32.mrf.mxu3 }
 0x251   : > { %v953_v47 = vadd.f32 %v4076_v14, %v952_v44  ;;  %v4104_v52 = vpop.eup %4103  ;;  %v753_v14 = vpop.f32.mrf.mxu1 }
 0x252   : > { %v754_v15 = vadd.f32 %v753_v14, %v630_v8 }
 0x253   : > { %4105 = vtanh.f32 %v953_v47  ;;  %v3802_v47 = vld [vmem:[#allocation13 + $0xa0] sm:$0xff] }
 0x254   : > { %767 = vst [vmem:[%s4878_s23] sm:$0xff] %v754_v15  ;;  %1329 = vmatpush.bf16.msrb.mxu3 %v3802_v47 }
 0x258   : > { %1330 = vmatpush.bf16.msrb.mxu3 %v3801_v51 }
 0x259   : > { %v4106_v54 = vpop.eup %4105  ;;  %v755_v23 = vpop.f32.mrf.mxu1 }
 0x25a   : > { %v960_v55 = vpack.c.bf16 %v4106_v54, %v4104_v52  ;;  %v756_v24 = vadd.f32 %v755_v23, %v630_v8  ;;  %v3410_v23 = vld [vmem:[#allocation7 + $0x50] sm:$0xf] }
 0x25c   : > { %1044 = vmatmul.bf16.gmra.mxu0 %v960_v55  ;;  %768 = vst [vmem:[%s4878_s23 + $0x8] sm:$0xff] %v756_v24  ;;  %1331 = vmatpush.bf16.msrb.mxu3 %v3800_v59  ;;  %v3843_v24 = vld [vmem:[#allocation7 + $0x54] sm:$0xf0] }
 0x25d   : > { %v4902_v59 = vld [vmem:[%s4814_s30 + $0x18] sm:$0xff] }
 0x260   : > { %1332 = vmatpush.bf16.msrb.mxu3 %v3799_v60 }
 0x261   : > { %v758_v29 = vpop.f32.mrf.mxu1 }
 0x262   : > { %v759_v31 = vadd.f32 %v758_v29, %v630_v8  ;;  %v3841_v29 = vld [vmem:[#allocation7 + $0x44] sm:$0xf0] }
 0x264   : > { %769 = vst [vmem:[%s4878_s23 + $0x10] sm:$0xff] %v759_v31  ;;  %1333 = vmatpush.bf16.msrb.mxu3 %v3798_v61 }
 0x269   : > { %v760_v33 = vpop.f32.mrf.mxu1 }
 0x26a   : > { %v761_v35 = vadd.f32 %v760_v33, %v630_v8  ;;  %v3809_v8 = vld [vmem:[#allocation13 + $0xd8] sm:$0xff]  ;;  %v3839_v33 = vld [vmem:[#allocation7 + $0x34] sm:$0xf0] }
 0x26c   : > { %770 = vst [vmem:[%s4878_s23 + $0x18] sm:$0xff] %v761_v35 }
 0x2c9   : > { %v1040_v28 = vpop.f32.mrf.mxu0 }
 0x2ca   : > { %v1041_v0 = vadd.f32 %v4077_v63, %v1040_v28  ;;  %v3812_v28 = vld [vmem:[#allocation13 + $0xf0] sm:$0xff] }
 0x2cb   : > { %1422 = vmatpush.bf16.msra.mxu0 %v3812_v28 }
 0x2cc   : > { %4107 = vtanh.f32 %v1041_v0  ;;  %v4079_v0 = vld [vmem:[%s5075_s7 + $0x1] ss:$0 sm:$0xff] }
 0x2cf   : > { %1423 = vmatpush.bf16.msra.mxu0 %v3811_v1 }
 0x2d1   : > { %v1042_v30 = vpop.f32.mrf.mxu0 }
 0x2d2   : > { %v4108_v3 = vpop.eup %4107  ;;  %v1043_v4 = vadd.f32 %v4077_v63, %v1042_v30 }
 0x2d3   : > { %v1058_v5 = vmul.f32 %v4108_v3, %v1054_v2 }
 0x2d4   : > { %4109 = vtanh.f32 %v1043_v4  ;;  %v3810_v4 = vld [vmem:[#allocation13 + $0xe0] sm:$0xff] }
 0x2d5   : > { %1062 = vst [vmem:[%s4871_s12] sm:$0xff] %v1058_v5  ;;  %1424 = vmatpush.bf16.msra.mxu0 %v3810_v4  ;;  %v3855_v4 = vld [vmem:[#allocation10 + $0x38] sm:$0xff] }
 0x2d9   : > { %v1045_v10 = vpop.f32.mrf.mxu0  ;;  %1425 = vmatpush.bf16.msra.mxu0 %v3809_v8  ;;  %v3852_v8 = vld [vmem:[#allocation10 + $0x20] sm:$0xff] }
 0x2da   : > { %v4110_v11 = vpop.eup %4109  ;;  %v1046_v12 = vadd.f32 %v4077_v63, %v1045_v10 }
 0x2db   : > { %v1059_v13 = vmul.f32 %v4110_v11, %v1055_v7 }
 0x2dc   : > { %4111 = vtanh.f32 %v1046_v12 }
 0x2dd   : > { %1063 = vst [vmem:[%s4871_s12 + $0x8] sm:$0xff] %v1059_v13  ;;  %v1066_v17 = vpack.c.bf16 %v1059_v13, %v1058_v5 }
 0x2df   : > { %1144 = vmatmul.bf16.vlgmr.msrb.gmra.mxu1 %v1066_v17  ;;  %v3847_v17 = vld [vmem:[#allocation7 + $0x74] sm:$0xf0] }
 0x2e0   : > { %v3427_v18 = vor.u32 %v3847_v17, %v3426_v16  ;;  %v4081_v16 = vld [vmem:[%s5075_s7 + $0x3] ss:$0 sm:$0xff] }
 0x2e1   : > { %v1047_v19 = vpop.f32.mrf.mxu0 }
 0x2e2   : > { %v4112_v20 = vpop.eup %4111  ;;  %v1048_v21 = vadd.f32 %v4077_v63, %v1047_v19  ;;  %1746 = vmatpush.bf16.msra.mxu3 %v3427_v18  ;;  %v3807_v19 = vld [vmem:[#allocation13 + $0xc8] sm:$0xff] }
 0x2e3   : > { %v1060_v22 = vmul.f32 %v4112_v20, %v1056_v34  ;;  %v3808_v34 = vld [vmem:[#allocation13 + $0xd0] sm:$0xff]  ;;  %v3418_v20 = vld [vmem:[#allocation7 + $0x60] sm:$0xf] }
 0x2e4   : > { %4113 = vtanh.f32 %v1048_v21  ;;  %1426 = vmatpush.bf16.msra.mxu0 %v3808_v34  ;;  %v3845_v21 = vld [vmem:[#allocation7 + $0x64] sm:$0xf0] }
 0x2e5   : > { %1064 = vst [vmem:[%s4871_s12 + $0x10] sm:$0xff] %v1060_v22  ;;  %v3849_v34 = vld [vmem:[#allocation10 + $0x8] sm:$0xff] }
 0x2e8   : > { %1427 = vmatpush.bf16.msra.mxu0 %v3807_v19 }
 0x2ea   : > { %v4114_v26 = vpop.eup %4113 }
 0x2eb   : > { %v1061_v27 = vmul.f32 %v4114_v26, %v1057_v25  ;;  %v3806_v25 = vld [vmem:[#allocation13 + $0xc0] sm:$0xff]  ;;  %v3411_v26 = vor.u32 %v3843_v24, %v3410_v23 }
 0x2ec   : > { %1428 = vmatpush.bf16.msra.mxu0 %v3806_v25 }
 0x2ed   : > { %1065 = vst [vmem:[%s4871_s12 + $0x18] sm:$0xff] %v1061_v27  ;;  %v1067_v32 = vpack.c.bf16 %v1061_v27, %v1060_v22  ;;  %v3419_v22 = vor.u32 %v3845_v21, %v3418_v20  ;;  %v3402_v27 = vld [vmem:[#allocation7 + $0x40] sm:$0xf] }
 0x2ee   : > { %v3403_v31 = vor.u32 %v3841_v29, %v3402_v27  ;;  %v3848_v20 = vld [vmem:[#allocation10] sm:$0xff] }
 0x2ef   : > { %1149 = vmatmul.bf16.gmra.mxu1 %v1067_v32  ;;  %1747 = vmatpush.bf16.msra.mxu3 %v3419_v22  ;;  %v3394_v32 = vld [vmem:[#allocation7 + $0x30] sm:$0xf] }
 0x2f0   : > { %v3395_v35 = vor.u32 %v3839_v33, %v3394_v32 }
 0x2f3   : > { %1748 = vmatpush.bf16.msra.mxu3 %v3411_v26 }
 0x2f7   : > { %1749 = vmatpush.bf16.msra.mxu3 %v3403_v31 }
 0x2fb   : > { %1750 = vmatpush.bf16.msra.mxu3 %v3395_v35 }
 0x2ff   : > { %1751 = vmatpush.bf16.msra.mxu3 %v3387_v38 }
 0x35c   : > { %v1145_v40 = vpop.f32.mrf.mxu1 }
 0x35d   : > { %v1146_v44 = vadd.f32 %v4078_v42, %v1145_v40  ;;  %v3835_v40 = vld [vmem:[#allocation7 + $0x14] sm:$0xf0] }
 0x35e   : > { %v3379_v41 = vor.u32 %v3835_v40, %v3378_v39  ;;  %v3829_v39 = vld [vmem:[#allocation14 + $0x38] sm:$0xff]  ;;  %v3828_v40 = vld [vmem:[#allocation14 + $0x30] sm:$0xff] }
 0x35f   : > { %v1155_v48 = vmax.f32 %v1146_v44, 0.0  ;;  %1605 = vmatpush.bf16.msra.mxu2 %v3829_v39  ;;  %v4084_v39 = vld [vmem:[#allocation11 + $0x1] ss:$0 sm:$0xff] }
 0x360   : > { %1752 = vmatpush.bf16.msra.mxu3 %v3379_v41  ;;  %v3827_v41 = vld [vmem:[#allocation14 + $0x28] sm:$0xff] }
 0x363   : > { %1606 = vmatpush.bf16.msra.mxu2 %v3828_v40  ;;  %v3846_v40 = vld [vmem:[#allocation7 + $0x74] sm:$0xf] }
 0x364   : > { %v1147_v45 = vpop.f32.mrf.mxu1 }
 0x365   : > { %v1148_v46 = vadd.f32 %v4078_v42, %v1147_v45  ;;  %v4895_v45 = vld [vmem:[%s4814_s30 + $0x10] sm:$0xff] }
 0x367   : > { %v1156_v49 = vmax.f32 %v1148_v46, 0.0  ;;  %v3821_v46 = vld [vmem:[#allocation13 + $0x138] sm:$0xff]  ;;  %1607 = vmatpush.bf16.msra.mxu2 %v3827_v41 }
 0x368   : > { %1516 = vmatpush.bf16.msra.mxu1 %v3821_v46  ;;  %v3825_v46 = vld [vmem:[#allocation14 + $0x18] sm:$0xff] }
 0x369   : > { %v1159_v50 = vpack.c.bf16 %v1156_v49, %v1155_v48  ;;  %v3820_v48 = vld [vmem:[#allocation13 + $0x130] sm:$0xff]  ;;  %v4080_v49 = vld [vmem:[%s5075_s7 + $0x2] ss:$0 sm:$0xff] }
 0x36a   : > { %v3428_v41 = vld [vmem:[#allocation7 + $0x78] sm:$0xf0] }
 0x36b   : > { %1239 = vmatmul.bf16.vlgmr.msrb.gmra.mxu2 %v1159_v50  ;;  %v3819_v50 = vld [vmem:[#allocation13 + $0x128] sm:$0xff] }
 0x36c   : > { %v1150_v52 = vpop.f32.mrf.mxu1  ;;  %1517 = vmatpush.bf16.msra.mxu1 %v3820_v48  ;;  %v3823_v48 = vld [vmem:[#allocation14 + $0x8] sm:$0xff] }
 0x36d   : > { %v1151_v53 = vadd.f32 %v4078_v42, %v1150_v52 }
 0x36f   : > { %v1157_v56 = vmax.f32 %v1151_v53, 0.0 }
 0x370   : > { %1518 = vmatpush.bf16.msra.mxu1 %v3819_v50  ;;  %v3863_v50 = vld [vmem:[#allocation10 + $0x78] sm:$0xff] }
 0x374   : > { %v1152_v54 = vpop.f32.mrf.mxu1 }
 0x375   : > { %v1153_v55 = vadd.f32 %v4078_v42, %v1152_v54  ;;  %v3370_v42 = vld [vmem:[#allocation7] sm:$0xf]  ;;  %v3818_v54 = vld [vmem:[#allocation13 + $0x120] sm:$0xff] }
 0x376   : > { %v3371_v44 = vor.u32 %v3833_v43, %v3370_v42  ;;  %1519 = vmatpush.bf16.msra.mxu1 %v3818_v54  ;;  %v3826_v42 = vld [vmem:[#allocation14 + $0x20] sm:$0xff] }
 0x377   : > { %v1158_v57 = vmax.f32 %v1153_v55, 0.0  ;;  %1608 = vmatpush.bf16.msra.mxu2 %v3826_v42  ;;  %v3844_v42 = vld [vmem:[#allocation7 + $0x64] sm:$0xf] }
 0x378   : > { %1753 = vmatpush.bf16.msra.mxu3 %v3371_v44 }
 0x379   : > { %v1160_v58 = vpack.c.bf16 %v1158_v57, %v1157_v56 }
 0x37b   : > { %1244 = vmatmul.bf16.gmra.mxu2 %v1160_v58  ;;  %v3817_v58 = vld [vmem:[#allocation13 + $0x118] sm:$0xff] }
 0x37c   : > { %1520 = vmatpush.bf16.msra.mxu1 %v3817_v58  ;;  %1609 = vmatpush.bf16.msra.mxu2 %v3825_v46  ;;  %v3858_v58 = vld [vmem:[#allocation10 + $0x50] sm:$0xff] }
 0x3ee   : > { %v1240_v63 = vpop.f32.mrf.mxu2 }
 0x3ef   : > { %v1241_v2 = vadd.f32 %v4079_v0, %v1240_v63 }
 0x3f1   : > { %v1250_v5 = vmax.f32 %v1241_v2, 0.0  ;;  %v3816_v2 = vld [vmem:[#allocation13 + $0x110] sm:$0xff] }
 0x3f2   : > { %1521 = vmatpush.bf16.msra.mxu1 %v3816_v2 }
 0x3f6   : > { %v1242_v30 = vpop.f32.mrf.mxu2 }
 0x3f7   : > { %v1243_v3 = vadd.f32 %v4079_v0, %v1242_v30  ;;  %v3815_v30 = vld [vmem:[#allocation13 + $0x108] sm:$0xff] }
 0x3f8   : > { %1522 = vmatpush.bf16.msra.mxu1 %v3815_v30 }
 0x3f9   : > { %v1251_v6 = vmax.f32 %v1243_v3, 0.0  ;;  %v3814_v3 = vld [vmem:[#allocation13 + $0x100] sm:$0xff] }
 0x3fb   : > { %v1254_v7 = vpack.c.bf16 %v1251_v6, %v1250_v5  ;;  %v3854_v5 = vld [vmem:[#allocation10 + $0x30] sm:$0xff]  ;;  %v3853_v6 = vld [vmem:[#allocation10 + $0x28] sm:$0xff] }
 0x3fc   : > { %1523 = vmatpush.bf16.msra.mxu1 %v3814_v3 }
 0x3fd   : > { %1334 = vmatmul.bf16.vlgmr.msrb.gmra.mxu3 %v1254_v7 }
 0x3fe   : > { %v1245_v9 = vpop.f32.mrf.mxu2 }
 0x3ff   : > { %v1246_v10 = vadd.f32 %v4079_v0, %v1245_v9  ;;  %v4905_v9 = vld [vmem:[#allocation8] sm:$0x3] }
 0x400   : > { %1862 = vmatpush.bf16.msrb.mxu1 %v3855_v4 }
 0x401   : > { %v1252_v13 = vmax.f32 %v1246_v10, 0.0  ;;  %v1650_v10 = vperm.slane %v4905_v9, 0 }
 0x404   : > { %1863 = vmatpush.bf16.msrb.mxu1 %v3854_v5 }
 0x406   : > { %v1247_v11 = vpop.f32.mrf.mxu2 }
 0x407   : > { %v1248_v12 = vadd.f32 %v4079_v0, %v1247_v11 }
 0x408   : > { %1864 = vmatpush.bf16.msrb.mxu1 %v3853_v6 }
 0x409   : > { %v1253_v14 = vmax.f32 %v1248_v12, 0.0  ;;  %v3851_v12 = vld [vmem:[#allocation10 + $0x18] sm:$0xff] }
 0x40b   : > { %v1255_v15 = vpack.c.bf16 %v1253_v14, %v1252_v13  ;;  %v3850_v14 = vld [vmem:[#allocation10 + $0x10] sm:$0xff] }
 0x40c   : > { %1865 = vmatpush.bf16.msrb.mxu1 %v3852_v8 }
 0x40d   : > { %1339 = vmatmul.bf16.gmra.mxu3 %v1255_v15 }
 0x410   : > { %1866 = vmatpush.bf16.msrb.mxu1 %v3851_v12 }
 0x414   : > { %1867 = vmatpush.bf16.msrb.mxu1 %v3850_v14 }
 0x418   : > { %1868 = vmatpush.bf16.msrb.mxu1 %v3849_v34 }
 0x41c   : > { %1869 = vmatpush.bf16.msrb.mxu1 %v3848_v20 }
 0x41d   : > { %1754 = vmatmul.bf16.vlgmr.msra.gmra.mxu3 %v4895_v45 }
 0x42d   : > { %1759 = vmatmul.bf16.gmra.mxu3 %v4902_v59 }
 0x480   : > { %v1335_v47 = vpop.f32.mrf.mxu3 }
 0x481   : > { %v1336_v51 = vadd.f32 %v4080_v49, %v1335_v47  ;;  %v3824_v47 = vld [vmem:[#allocation14 + $0x10] sm:$0xff] }
 0x482   : > { %1610 = vmatpush.bf16.msra.mxu2 %v3824_v47 }
 0x483   : > { %v1345_v55 = vmax.f32 %v1336_v51, 0.0  ;;  %v3862_v51 = vld [vmem:[#allocation10 + $0x70] sm:$0xff] }
 0x486   : > { %1611 = vmatpush.bf16.msra.mxu2 %v3823_v48 }
 0x488   : > { %v1337_v52 = vpop.f32.mrf.mxu3 }
 0x489   : > { %v1338_v53 = vadd.f32 %v4080_v49, %v1337_v52  ;;  %v3861_v52 = vld [vmem:[#allocation10 + $0x68] sm:$0xff] }
 0x48b   : > { %v1346_v56 = vmax.f32 %v1338_v53, 0.0  ;;  %v3860_v53 = vld [vmem:[#allocation10 + $0x60] sm:$0xff] }
 0x48d   : > { %v1349_v57 = vpack.c.bf16 %v1346_v56, %v1345_v55  ;;  %v4082_v55 = vld [vmem:[%s5075_s7 + $0x4] ss:$0 sm:$0xff]  ;;  %v3859_v56 = vld [vmem:[#allocation10 + $0x58] sm:$0xff] }
 0x48f   : > { %1429 = vmatmul.bf16.vlgmr.msra.gmra.mxu0 %v1349_v57 }
 0x490   : > { %v1340_v60 = vpop.f32.mrf.mxu3 }
 0x491   : > { %v1341_v61 = vadd.f32 %v4080_v49, %v1340_v60 }
 0x493   : > { %v1347_v28 = vmax.f32 %v1341_v61, 0.0 }
 0x498   : > { %v1342_v62 = vpop.f32.mrf.mxu3 }
 0x499   : > { %v1343_v63 = vadd.f32 %v4080_v49, %v1342_v62  ;;  %v3822_v49 = vld [vmem:[#allocation14] sm:$0xff] }
 0x49a   : > { %1612 = vmatpush.bf16.msra.mxu2 %v3822_v49  ;;  %v3842_v49 = vld [vmem:[#allocation7 + $0x54] sm:$0xf] }
 0x49b   : > { %v1348_v0 = vmax.f32 %v1343_v63, 0.0 }
 0x49d   : > { %v1350_v1 = vpack.c.bf16 %v1348_v0, %v1347_v28  ;;  %v3857_v28 = vld [vmem:[#allocation10 + $0x48] sm:$0xff] }
 0x49e   : > { %1955 = vmatpush.bf16.msrb.mxu2 %v3863_v50  ;;  %v3412_v50 = vld [vmem:[#allocation7 + $0x58] sm:$0xf0] }
 0x49f   : > { %1434 = vmatmul.bf16.gmra.mxu0 %v1350_v1  ;;  %v3856_v1 = vld [vmem:[#allocation10 + $0x40] sm:$0xff] }
 0x4a0   : > { %v1755_v7 = vpop.f32.mrf.mxu3 }
 0x4a1   : > { %v1756_v11 = vadd.f32 %v1755_v7, %v1650_v10 }
 0x4a2   : > { %1956 = vmatpush.bf16.msrb.mxu2 %v3862_v51 }
 0x4a3   : > { %1784 = vst [vmem:[%s4861_s20 + $0x20] sm:$0xff] %v1756_v11 }
 0x4a6   : > { %1957 = vmatpush.bf16.msrb.mxu2 %v3861_v52  ;;  %v3415_v52 = vor.u32 %v3842_v49, %v3412_v50 }
 0x4a8   : > { %v1757_v15 = vpop.f32.mrf.mxu3 }
 0x4a9   : > { %v1758_v17 = vadd.f32 %v1757_v15, %v1650_v10 }
 0x4aa   : > { %1958 = vmatpush.bf16.msrb.mxu2 %v3860_v53  ;;  %v3840_v53 = vld [vmem:[#allocation7 + $0x44] sm:$0xf] }
 0x4ab   : > { %1785 = vst [vmem:[%s4861_s20 + $0x28] sm:$0xff] %v1758_v17  ;;  %v1792_v43 = vpack.c.bf16 %v1758_v17, %v1756_v11 }
 0x4ae   : > { %1959 = vmatpush.bf16.msrb.mxu2 %v3859_v56 }
 0x4b0   : > { %v1760_v22 = vpop.f32.mrf.mxu3 }
 0x4b1   : > { %v1761_v25 = vadd.f32 %v1760_v22, %v1650_v10 }
 0x4b2   : > { %1960 = vmatpush.bf16.msrb.mxu2 %v3858_v58  ;;  %v3838_v58 = vld [vmem:[#allocation7 + $0x34] sm:$0xf] }
 0x4b3   : > { %1786 = vst [vmem:[%s4861_s20 + $0x30] sm:$0xff] %v1761_v25 }
 0x4b6   : > { %1961 = vmatpush.bf16.msrb.mxu2 %v3857_v28  ;;  %v3836_v28 = vld [vmem:[#allocation7 + $0x24] sm:$0xf] }
 0x4b8   : > { %v1762_v29 = vpop.f32.mrf.mxu3 }
 0x4b9   : > { %v1763_v31 = vadd.f32 %v1762_v29, %v1650_v10  ;;  %v4083_v10 = vld [vmem:[#allocation11] ss:$0 sm:$0xff] }
 0x4ba   : > { %1962 = vmatpush.bf16.msrb.mxu2 %v3856_v1 }
 0x4bb   : > { %1787 = vst [vmem:[%s4861_s20 + $0x38] sm:$0xff] %v1763_v31  ;;  %v1793_v44 = vpack.c.bf16 %v1763_v31, %v1761_v25  ;;  %v3869_v25 = vld [vmem:[#allocation10 + $0xa8] sm:$0xff]  ;;  %v3867_v31 = vld [vmem:[#allocation10 + $0x98] sm:$0xff]  ;;  %s2664_s20 = scalar_lea.hbm %s5077_s9, %s4963_s14 }
 0x50c   : > { %v1430_v13 = vpop.f32.mrf.mxu0 }
 0x50d   : > { %v1431_v18 = vadd.f32 %v4081_v16, %v1430_v13 }
 0x50f   : > { %v1440_v23 = vmax.f32 %v1431_v18, 0.0 }
 0x514   : > { %v1432_v19 = vpop.f32.mrf.mxu0 }
 0x515   : > { %v1433_v21 = vadd.f32 %v4081_v16, %v1432_v19 }
 0x517   : > { %v1441_v24 = vmax.f32 %v1433_v21, 0.0 }
 0x519   : > { %v1444_v26 = vpack.c.bf16 %v1441_v24, %v1440_v23  ;;  %v3871_v23 = vld [vmem:[#allocation10 + $0xb8] sm:$0xff]  ;;  %v3870_v24 = vld [vmem:[#allocation10 + $0xb0] sm:$0xff] }
 0x51a   : > { %2048 = vmatpush.bf16.msrb.mxu3 %v3871_v23  ;;  %v3887_v23 = vld [vmem:[#allocation13 + $0x78] sm:$0xff] }
 0x51b   : > { %1524 = vmatmul.bf16.vlgmr.msra.gmra.mxu1 %v1444_v26 }
 0x51c   : > { %v1435_v27 = vpop.f32.mrf.mxu0  ;;  %2246 = vmatpush.bf16.msra.mxu1 %v3887_v23  ;;  %v3901_v23 = vld [vmem:[#allocation13 + $0xe8] sm:$0xff] }
 0x51d   : > { %v1436_v32 = vadd.f32 %v4081_v16, %v1435_v27  ;;  %v3868_v27 = vld [vmem:[#allocation10 + $0xa0] sm:$0xff] }
 0x51e   : > { %2049 = vmatpush.bf16.msrb.mxu3 %v3870_v24 }
 0x51f   : > { %v1442_v36 = vmax.f32 %v1436_v32, 0.0  ;;  %v3866_v32 = vld [vmem:[#allocation10 + $0x90] sm:$0xff] }
 0x522   : > { %2050 = vmatpush.bf16.msrb.mxu3 %v3869_v25  ;;  %v3886_v25 = vld [vmem:[#allocation13 + $0x70] sm:$0xff] }
 0x523   : > { %2247 = vmatpush.bf16.msra.mxu1 %v3886_v25 }
 0x524   : > { %v1437_v33 = vpop.f32.mrf.mxu0 }
 0x525   : > { %v1438_v35 = vadd.f32 %v4081_v16, %v1437_v33 }
 0x526   : > { %2051 = vmatpush.bf16.msrb.mxu3 %v3868_v27 }
 0x527   : > { %v1443_v37 = vmax.f32 %v1438_v35, 0.0  ;;  %v3865_v35 = vld [vmem:[#allocation10 + $0x88] sm:$0xff] }
 0x529   : > { %v1445_v38 = vpack.c.bf16 %v1443_v37, %v1442_v36  ;;  %v3864_v36 = vld [vmem:[#allocation10 + $0x80] sm:$0xff] }
 0x52a   : > { %2052 = vmatpush.bf16.msrb.mxu3 %v3867_v31 }
 0x52b   : > { %1529 = vmatmul.bf16.gmra.mxu1 %v1445_v38 }
 0x52e   : > { %2053 = vmatpush.bf16.msrb.mxu3 %v3866_v32 }
 0x532   : > { %2054 = vmatpush.bf16.msrb.mxu3 %v3865_v35 }
 0x536   : > { %2055 = vmatpush.bf16.msrb.mxu3 %v3864_v36  ;;  %v2072_v36 = vld [vmem:[%s4827_s3 + $0x28] sm:$0xff] }
 0x53b   : > { %1870 = vmatmul.bf16.vlgmr.msrb.gmra.mxu1 %v1792_v43  ;;  %v3431_v43 = vor.u32 %v3846_v40, %v3428_v41 }
 0x53d   : > { %1765 = vmatpush.bf16.msrb.mxu0 %v3431_v43  ;;  %v3883_v43 = vld [vmem:[#allocation13 + $0x58] sm:$0xff] }
 0x54b   : > { %1875 = vmatmul.bf16.gmra.mxu1 %v1793_v44  ;;  %v3420_v44 = vld [vmem:[#allocation7 + $0x68] sm:$0xf0] }
 0x54c   : > { %v3423_v47 = vor.u32 %v3844_v42, %v3420_v44 }
 0x54e   : > { %1766 = vmatpush.bf16.msrb.mxu0 %v3423_v47 }
 0x552   : > { %1767 = vmatpush.bf16.msrb.mxu0 %v3415_v52 }
 0x598   : > { %v1525_v54 = vpop.f32.mrf.mxu1 }
 0x599   : > { %v1526_v57 = vadd.f32 %v4082_v55, %v1525_v54  ;;  %v3404_v54 = vld [vmem:[#allocation7 + $0x48] sm:$0xf0] }
 0x59b   : > { %v1535_v62 = vmax.f32 %v1526_v57, 0.0 }
 0x5a0   : > { %v1527_v60 = vpop.f32.mrf.mxu1 }
 0x5a1   : > { %v1528_v61 = vadd.f32 %v4082_v55, %v1527_v60  ;;  %v3396_v60 = vld [vmem:[#allocation7 + $0x38] sm:$0xf0] }
 0x5a3   : > { %v1536_v63 = vmax.f32 %v1528_v61, 0.0 }
 0x5a5   : > { %v1539_v0 = vpack.c.bf16 %v1536_v63, %v1535_v62  ;;  %v3399_v63 = vor.u32 %v3838_v58, %v3396_v60  ;;  %v3882_v60 = vld [vmem:[#allocation13 + $0x50] sm:$0xff] }
 0x5a7   : > { %1613 = vmatmul.bf16.vlgmr.msra.gmra.mxu2 %v1539_v0  ;;  %v3388_v0 = vld [vmem:[#allocation7 + $0x28] sm:$0xf0] }
 0x5a8   : > { %v1530_v2 = vpop.f32.mrf.mxu1 }
 0x5a9   : > { %v1531_v30 = vadd.f32 %v4082_v55, %v1530_v2  ;;  %v3391_v2 = vor.u32 %v3836_v28, %v3388_v0  ;;  %v3894_v0 = vld [vmem:[#allocation13 + $0xb0] sm:$0xff] }
 0x5ab   : > { %v1537_v5 = vmax.f32 %v1531_v30, 0.0 }
 0x5b0   : > { %v1532_v3 = vpop.f32.mrf.mxu1 }
 0x5b1   : > { %v1533_v4 = vadd.f32 %v4082_v55, %v1532_v3  ;;  %v3407_v55 = vor.u32 %v3840_v53, %v3404_v54  ;;  %v3834_v3 = vld [vmem:[#allocation7 + $0x14] sm:$0xf]  ;;  %v2074_v53 = vld [vmem:[%s4827_s3 + $0x38] sm:$0xff] }
 0x5b3   : > { %v1538_v6 = vmax.f32 %v1533_v4, 0.0  ;;  %1768 = vmatpush.bf16.msrb.mxu0 %v3407_v55  ;;  %v3380_v4 = vld [vmem:[#allocation7 + $0x18] sm:$0xf0] }
 0x5b5   : > { %v1540_v7 = vpack.c.bf16 %v1538_v6, %v1537_v5  ;;  %v3383_v6 = vor.u32 %v3834_v3, %v3380_v4 }
 0x5b7   : > { %1618 = vmatmul.bf16.gmra.mxu2 %v1540_v7  ;;  %1769 = vmatpush.bf16.msrb.mxu0 %v3399_v63  ;;  %v3832_v7 = vld [vmem:[#allocation7 + $0x4] sm:$0xf] }
 0x5b8   : > { %v1871_v8 = vpop.f32.mrf.mxu1  ;;  %v3895_v63 = vld [vmem:[#allocation13 + $0xb8] sm:$0xff] }
 0x5b9   : > { %v1872_v11 = vadd.f32 %v4083_v10, %v1871_v8  ;;  %v3372_v8 = vld [vmem:[#allocation7 + $0x8] sm:$0xf0]  ;;  %2339 = vmatpush.bf16.msra.mxu2 %v3895_v63 }
 0x5bb   : > { %4115 = vtanh.f32 %v1872_v11  ;;  %1770 = vmatpush.bf16.msrb.mxu0 %v3391_v2  ;;  %v3893_v2 = vld [vmem:[#allocation13 + $0xa8] sm:$0xff] }
 0x5bd   : > { %2340 = vmatpush.bf16.msra.mxu2 %v3894_v0  ;;  %v3906_v0 = vld [vmem:[#allocation13 + $0x110] sm:$0xff] }
 0x5bf   : > { %1771 = vmatpush.bf16.msrb.mxu0 %v3383_v6 }
 0x5c0   : > { %v1873_v12 = vpop.f32.mrf.mxu1 }
 0x5c1   : > { %v1874_v13 = vadd.f32 %v4083_v10, %v1873_v12  ;;  %v4116_v14 = vpop.eup %4115  ;;  %v3879_v12 = vld [vmem:[#allocation13 + $0x38] sm:$0xff]  ;;  %2341 = vmatpush.bf16.msra.mxu2 %v3893_v2  ;;  %v3904_v2 = vld [vmem:[#allocation13 + $0x100] sm:$0xff] }
 0x5c3   : > { %4117 = vtanh.f32 %v1874_v13 }
 0x5c8   : > { %v1876_v15 = vpop.f32.mrf.mxu1 }
 0x5c9   : > { %v4118_v16 = vpop.eup %4117  ;;  %v1877_v34 = vadd.f32 %v4083_v10, %v1876_v15  ;;  %v3878_v15 = vld [vmem:[#allocation13 + $0x30] sm:$0xff] }
 0x5ca   : > { %v1885_v17 = vpack.c.bf16 %v4118_v16, %v4116_v14  ;;  %v3877_v16 = vld [vmem:[#allocation13 + $0x28] sm:$0xff] }
 0x5cb   : > { %4119 = vtanh.f32 %v1877_v34  ;;  %v3875_v34 = vld [vmem:[#allocation13 + $0x18] sm:$0xff] }
 0x5cc   : > { %1963 = vmatmul.bf16.vlgmr.msrb.gmra.mxu2 %v1885_v17  ;;  %v3876_v17 = vld [vmem:[#allocation13 + $0x20] sm:$0xff] }
 0x5d0   : > { %v1878_v18 = vpop.f32.mrf.mxu1 }
 0x5d1   : > { %v1879_v19 = vadd.f32 %v4083_v10, %v1878_v18  ;;  %v4120_v20 = vpop.eup %4119  ;;  %v3375_v10 = vor.u32 %v3832_v7, %v3372_v8  ;;  %v3874_v18 = vld [vmem:[#allocation13 + $0x10] sm:$0xff] }
 0x5d3   : > { %4121 = vtanh.f32 %v1879_v19  ;;  %1772 = vmatpush.bf16.msrb.mxu0 %v3375_v10  ;;  %v3873_v19 = vld [vmem:[#allocation13 + $0x8] sm:$0xff]  ;;  %v3891_v10 = vld [vmem:[#allocation13 + $0x98] sm:$0xff] }
 0x5d6   : > { %1773 = vmatmul.bf16.vlgmr.msrb.gmra.mxu0 %v4895_v45 }
 0x5d7   : > { %2153 = vmatpush.bf16.msra.mxu0 %v3879_v12 }
 0x5d9   : > { %v4122_v21 = vpop.eup %4121 }
 0x5da   : > { %v1886_v22 = vpack.c.bf16 %v4122_v21, %v4120_v20  ;;  %v3872_v20 = vld [vmem:[#allocation13] sm:$0xff]  ;;  %v4085_v21 = vld [vmem:[#allocation11 + $0x2] ss:$0 sm:$0xff] }
 0x5db   : > { %2154 = vmatpush.bf16.msra.mxu0 %v3878_v15 }
 0x5dc   : > { %1968 = vmatmul.bf16.gmra.mxu2 %v1886_v22 }
 0x5df   : > { %2155 = vmatpush.bf16.msra.mxu0 %v3877_v16 }
 0x5e3   : > { %2156 = vmatpush.bf16.msra.mxu0 %v3876_v17 }
 0x5e6   : > { %1778 = vmatmul.bf16.gmra.mxu0 %v4902_v59  ;;  %v2071_v59 = vld [vmem:[%s4827_s3 + $0x20] sm:$0xff] }
 0x5e7   : > { %2157 = vmatpush.bf16.msra.mxu0 %v3875_v34  ;;  %v3890_v34 = vld [vmem:[#allocation13 + $0x90] sm:$0xff] }
 0x5eb   : > { %2158 = vmatpush.bf16.msra.mxu0 %v3874_v18  ;;  %v3889_v18 = vld [vmem:[#allocation13 + $0x88] sm:$0xff] }
 0x5ef   : > { %2159 = vmatpush.bf16.msra.mxu0 %v3873_v19  ;;  %v3888_v19 = vld [vmem:[#allocation13 + $0x80] sm:$0xff] }
 0x5f3   : > { %2160 = vmatpush.bf16.msra.mxu0 %v3872_v20  ;;  %v3903_v20 = vld [vmem:[#allocation13 + $0xf8] sm:$0xff] }
 0x5f4   : > { %2432 = vmatpush.bf16.msra.mxu3 %v3903_v20 }
 0x62a   : > { %v1614_v26 = vpop.f32.mrf.mxu2 }
 0x62b   : > { %1624 = vst [vmem:[%s4919_s5] sm:$0xff] %v1614_v26 }
 0x632   : > { %v1616_v29 = vpop.f32.mrf.mxu2 }
 0x633   : > { %1625 = vst [vmem:[%s4919_s5 + $0x8] sm:$0xff] %v1616_v29  ;;  %v1651_v29 = vperm.slane %v4905_v9, 1 }
 0x63a   : > { %v1619_v33 = vpop.f32.mrf.mxu2 }
 0x63b   : > { %1626 = vst [vmem:[%s4919_s5 + $0x10] sm:$0xff] %v1619_v33  ;;  %v3885_v33 = vld [vmem:[#allocation13 + $0x68] sm:$0xff] }
 0x63c   : > { %2248 = vmatpush.bf16.msra.mxu1 %v3885_v33 }
 0x642   : > { %v1621_v37 = vpop.f32.mrf.mxu2 }
 0x643   : > { %1627 = vst [vmem:[%s4919_s5 + $0x18] sm:$0xff] %v1621_v37 }
 0x64f   : > { %v1964_v38 = vpop.f32.mrf.mxu2 }
 0x650   : > { %v1965_v46 = vadd.f32 %v4084_v39, %v1964_v38  ;;  %v3884_v38 = vld [vmem:[#allocation13 + $0x60] sm:$0xff] }
 0x651   : > { %2249 = vmatpush.bf16.msra.mxu1 %v3884_v38 }
 0x652   : > { %4123 = vtanh.f32 %v1965_v46  ;;  %v2073_v46 = vld [vmem:[%s4827_s3 + $0x30] sm:$0xff]  ;;  %s2684_s3 = sshll.u32 %s2681_s27, 4  ;;  %s2685_s3 = int_to_ptr.hbm [resolvable:$true] %s2684_s3 }
 0x653   : > { %v1774_v32 = vpop.f32.mrf.mxu0 }
 0x654   : > { %v1775_v35 = vadd.f32 %v1774_v32, %v1651_v29  ;;  %v3899_v32 = vld [vmem:[#allocation13 + $0xd8] sm:$0xff] }
 0x655   : > { %2250 = vmatpush.bf16.msra.mxu1 %v3883_v43  ;;  %v3911_v43 = vld [vmem:[#allocation13 + $0x138] sm:$0xff] }
 0x656   : > { %1788 = vst [vmem:[%s4878_s23 + $0x20] sm:$0xff] %v1775_v35  ;;  %2525 = vmatpush.bf16.msrb.mxu0 %v3911_v43 }
 0x657   : > { %v1966_v48 = vpop.f32.mrf.mxu2 }
 0x658   : > { %v1967_v51 = vadd.f32 %v4084_v39, %v1966_v48  ;;  %v4124_v56 = vpop.eup %4123 }
 0x659   : > { %2251 = vmatpush.bf16.msra.mxu1 %v3882_v60 }
 0x65a   : > { %4125 = vtanh.f32 %v1967_v51 }
 0x65b   : > { %v1776_v42 = vpop.f32.mrf.mxu0 }
 0x65c   : > { %v1777_v44 = vadd.f32 %v1776_v42, %v1651_v29  ;;  %v3896_v42 = vld [vmem:[#allocation13 + $0xc0] sm:$0xff] }
 0x65e   : > { %1789 = vst [vmem:[%s4878_s23 + $0x28] sm:$0xff] %v1777_v44 }
 0x65f   : > { %v1969_v57 = vpop.f32.mrf.mxu2 }
 0x660   : > { %v4126_v61 = vpop.eup %4125  ;;  %v1970_v1 = vadd.f32 %v4084_v39, %v1969_v57 }
 0x661   : > { %v1978_v62 = vpack.c.bf16 %v4126_v61, %v4124_v56  ;;  %v3881_v61 = vld [vmem:[#allocation13 + $0x48] sm:$0xff] }
 0x662   : > { %4127 = vtanh.f32 %v1970_v1  ;;  %2252 = vmatpush.bf16.msra.mxu1 %v3881_v61  ;;  %v4086_v1 = vld [vmem:[%s5075_s7] ss:$0 sm:$0xff] }
 0x663   : > { %2056 = vmatmul.bf16.vlgmr.msrb.gmra.mxu3 %v1978_v62  ;;  %v1779_v51 = vpop.f32.mrf.mxu0  ;;  %v3880_v62 = vld [vmem:[#allocation13 + $0x40] sm:$0xff] }
 0x664   : > { %v1780_v52 = vadd.f32 %v1779_v51, %v1651_v29 }
 0x666   : > { %1790 = vst [vmem:[%s4878_s23 + $0x30] sm:$0xff] %v1780_v52  ;;  %2253 = vmatpush.bf16.msra.mxu1 %v3880_v62  ;;  %v3908_v52 = vld [vmem:[#allocation13 + $0x120] sm:$0xff] }
 0x667   : > { %v1971_v30 = vpop.f32.mrf.mxu2 }
 0x668   : > { %v1972_v5 = vadd.f32 %v4084_v39, %v1971_v30  ;;  %v4128_v11 = vpop.eup %4127 }
 0x66a   : > { %4129 = vtanh.f32 %v1972_v5  ;;  %v3892_v5 = vld [vmem:[#allocation13 + $0xa0] sm:$0xff] }
 0x66b   : > { %v1781_v57 = vpop.f32.mrf.mxu0  ;;  %2342 = vmatpush.bf16.msra.mxu2 %v3892_v5  ;;  %v4089_v5 = vld [vmem:[%s5075_s7 + $0x3] ss:$0 sm:$0xff] }
 0x66c   : > { %v1782_v58 = vadd.f32 %v1781_v57, %v1651_v29 }
 0x66e   : > { %1791 = vst [vmem:[%s4878_s23 + $0x38] sm:$0xff] %v1782_v58  ;;  %s4393_s23 = sshra.s32 %s2685_s3, 4  ;;  %s4394_s23 = int_to_ptr.hbm [resolvable:$true] %s4393_s23 }
 0x66f   : > { %2343 = vmatpush.bf16.msra.mxu2 %v3891_v10  ;;  %s4395_s2 = scalar_lea.hbm %s4394_s23, 64  ;;  %p4400_p7 = scmp.lt.s32.totalorder %s4394_s23, %s5078_s10 }
 0x670   : > { %v4130_v13 = vpop.eup %4129  ;;  %p4396_p1 = scmp.ne.s32.totalorder %s4394_s23, %s4395_s2  ;;  %p4401_p9 = scmp.lt.s32.totalorder %s4399_s26, %s4395_s2 }
 0x671   : > { %v1979_v14 = vpack.c.bf16 %v4130_v13, %v4128_v11 }
 0x672   : > { %p4397_p3 = pnand %p4396_p1, %p4751_p4  ;;  %p4402_p5 = por %p4401_p9, %p4400_p7 }
 0x673   : > { %2061 = vmatmul.bf16.gmra.mxu3 %v1979_v14  ;;  %2344 = vmatpush.bf16.msra.mxu2 %v3890_v34 }
 0x674   : > { %p4398_p12 = pneg %p4397_p3 }
 0x676   : > { %p4403_p8 = pnand %p4402_p5, %p4398_p12 }
 0x677   : > { %2345 = vmatpush.bf16.msra.mxu2 %v3889_v18 }
 0x67b   : > { %2346 = vmatpush.bf16.msra.mxu2 %v3888_v19 }
 0x67f   : > { %3924 = vmatpush.bf16.msrb.mxu2 %v3911_v43 }
 0x6e6   : > { %v2057_v22 = vpop.f32.mrf.mxu3 }
 0x6e7   : > { %v2058_v45 = vadd.f32 %v4085_v21, %v2057_v22  ;;  %v3902_v22 = vld [vmem:[#allocation13 + $0xf0] sm:$0xff] }
 0x6e8   : > { %2433 = vmatpush.bf16.msra.mxu3 %v3902_v22  ;;  %v3914_v22 = vld [vmem:[#allocation14 + $0x10] sm:$0xff] }
 0x6e9   : > { %4131 = vtanh.f32 %v2058_v45  ;;  %v4087_v45 = vld [vmem:[%s5075_s7 + $0x1] ss:$0 sm:$0xff] }
 0x6ec   : > { %2434 = vmatpush.bf16.msra.mxu3 %v3901_v23  ;;  %v3912_v23 = vld [vmem:[#allocation14] sm:$0xff] }
 0x6ee   : > { %v2059_v24 = vpop.f32.mrf.mxu3 }
 0x6ef   : > { %v4132_v26 = vpop.eup %4131  ;;  %v2060_v27 = vadd.f32 %v4085_v21, %v2059_v24 }
 0x6f0   : > { %v2075_v31 = vmul.f32 %v4132_v26, %v2071_v59  ;;  %v3900_v26 = vld [vmem:[#allocation13 + $0xe0] sm:$0xff] }
 0x6f1   : > { %4133 = vtanh.f32 %v2060_v27  ;;  %2435 = vmatpush.bf16.msra.mxu3 %v3900_v26 }
 0x6f2   : > { %2079 = vst [vmem:[%s4871_s12 + $0x20] sm:$0xff] %v2075_v31 }
 0x6f5   : > { %2436 = vmatpush.bf16.msra.mxu3 %v3899_v32 }
 0x6f6   : > { %v2062_v37 = vpop.f32.mrf.mxu3 }
 0x6f7   : > { %v4134_v39 = vpop.eup %4133  ;;  %v2063_v40 = vadd.f32 %v4085_v21, %v2062_v37 }
 0x6f8   : > { %v2076_v41 = vmul.f32 %v4134_v39, %v2072_v36 }
 0x6f9   : > { %4135 = vtanh.f32 %v2063_v40 }
 0x6fa   : > { %2080 = vst [vmem:[%s4871_s12 + $0x28] sm:$0xff] %v2076_v41  ;;  %v2083_v9 = vpack.c.bf16 %v2076_v41, %v2075_v31  ;;  %v3898_v41 = vld [vmem:[#allocation13 + $0xd0] sm:$0xff] }
 0x6fb   : > { %2437 = vmatpush.bf16.msra.mxu3 %v3898_v41 }
 0x6fc   : > { %2161 = vmatmul.bf16.vlgmr.msra.gmra.mxu0 %v2083_v9  ;;  %v3897_v9 = vld [vmem:[#allocation13 + $0xc8] sm:$0xff] }
 0x6fe   : > { %v2064_v47 = vpop.f32.mrf.mxu3 }
 0x6ff   : > { %v4136_v48 = vpop.eup %4135  ;;  %v2065_v49 = vadd.f32 %v4085_v21, %v2064_v47  ;;  %2438 = vmatpush.bf16.msra.mxu3 %v3897_v9  ;;  %v4088_v47 = vld [vmem:[%s5075_s7 + $0x2] ss:$0 sm:$0xff] }
 0x700   : > { %v2077_v50 = vmul.f32 %v4136_v48, %v2073_v46  ;;  %v3910_v46 = vld [vmem:[#allocation13 + $0x130] sm:$0xff]  ;;  %v3909_v48 = vld [vmem:[#allocation13 + $0x128] sm:$0xff] }
 0x701   : > { %4137 = vtanh.f32 %v2065_v49  ;;  %2526 = vmatpush.bf16.msrb.mxu0 %v3910_v46  ;;  %3925 = vmatpush.bf16.msrb.mxu2 %v3910_v46 }
 0x702   : > { %2081 = vst [vmem:[%s4871_s12 + $0x30] sm:$0xff] %v2077_v50 }
 0x703   : > { %2439 = vmatpush.bf16.msra.mxu3 %v3896_v42 }
 0x705   : > { %2527 = vmatpush.bf16.msrb.mxu0 %v3909_v48  ;;  %3926 = vmatpush.bf16.msrb.mxu2 %v3909_v48 }
 0x707   : > { %v4138_v54 = vpop.eup %4137 }
 0x708   : > { %v2078_v55 = vmul.f32 %v4138_v54, %v2074_v53 }
 0x709   : > { %2528 = vmatpush.bf16.msrb.mxu0 %v3908_v52  ;;  %3927 = vmatpush.bf16.msrb.mxu2 %v3908_v52 }
 0x70a   : > { %2082 = vst [vmem:[%s4871_s12 + $0x38] sm:$0xff] %v2078_v55  ;;  %v2084_v56 = vpack.c.bf16 %v2078_v55, %v2077_v50  ;;  %s4975_s12 = scalar_lea.sflag [#allocation18], %s505_s29 }
 0x70c   : > { %2166 = vmatmul.bf16.gmra.mxu0 %v2084_v56 }
 0x779   : > { %v2162_v28 = vpop.f32.mrf.mxu0 }
 0x77a   : > { %v2163_v30 = vadd.f32 %v4086_v1, %v2162_v28  ;;  %v3907_v28 = vld [vmem:[#allocation13 + $0x118] sm:$0xff] }
 0x77b   : > { %2529 = vmatpush.bf16.msrb.mxu0 %v3907_v28  ;;  %3928 = vmatpush.bf16.msrb.mxu2 %v3907_v28 }
 0x77c   : > { %v2172_v6 = vmax.f32 %v2163_v30, 0.0  ;;  %v3919_v30 = vld [vmem:[#allocation14 + $0x38] sm:$0xff] }
 0x77d   : > { %2614 = vmatpush.bf16.msrb.mxu1 %v3919_v30  ;;  %3932 = vmatpush.bf16.msrb.mxu3 %v3919_v30 }
 0x77f   : > { %2530 = vmatpush.bf16.msrb.mxu0 %v3906_v0  ;;  %3929 = vmatpush.bf16.msrb.mxu2 %v3906_v0 }
 0x781   : > { %v2164_v3 = vpop.f32.mrf.mxu0 }
 0x782   : > { %v2165_v4 = vadd.f32 %v4086_v1, %v2164_v3 }
 0x784   : > { %v2173_v7 = vmax.f32 %v2165_v4, 0.0  ;;  %v3918_v4 = vld [vmem:[#allocation14 + $0x30] sm:$0xff] }
 0x785   : > { %2615 = vmatpush.bf16.msrb.mxu1 %v3918_v4  ;;  %3933 = vmatpush.bf16.msrb.mxu3 %v3918_v4 }
 0x786   : > { %v2176_v8 = vpack.c.bf16 %v2173_v7, %v2172_v6  ;;  %v3917_v6 = vld [vmem:[#allocation14 + $0x28] sm:$0xff] }
 0x788   : > { %2254 = vmatmul.bf16.vlgmr.msra.gmra.mxu1 %v2176_v8 }
 0x789   : > { %v2167_v11 = vpop.f32.mrf.mxu0  ;;  %2616 = vmatpush.bf16.msrb.mxu1 %v3917_v6  ;;  %3934 = vmatpush.bf16.msrb.mxu3 %v3917_v6 }
 0x78a   : > { %v2168_v12 = vadd.f32 %v4086_v1, %v2167_v11  ;;  %v3916_v11 = vld [vmem:[#allocation14 + $0x20] sm:$0xff] }
 0x78c   : > { %v2174_v15 = vmax.f32 %v2168_v12, 0.0 }
 0x78d   : > { %2617 = vmatpush.bf16.msrb.mxu1 %v3916_v11  ;;  %3935 = vmatpush.bf16.msrb.mxu3 %v3916_v11 }
 0x791   : > { %v2169_v13 = vpop.f32.mrf.mxu0 }
 0x792   : > { %v2170_v14 = vadd.f32 %v4086_v1, %v2169_v13  ;;  %v3905_v1 = vld [vmem:[#allocation13 + $0x108] sm:$0xff] }
 0x793   : > { %2531 = vmatpush.bf16.msrb.mxu0 %v3905_v1  ;;  %3930 = vmatpush.bf16.msrb.mxu2 %v3905_v1 }
 0x794   : > { %v2175_v16 = vmax.f32 %v2170_v14, 0.0 }
 0x796   : > { %v2177_v17 = vpack.c.bf16 %v2175_v16, %v2174_v15 }
 0x797   : > { %2532 = vmatpush.bf16.msrb.mxu0 %v3904_v2  ;;  %3931 = vmatpush.bf16.msrb.mxu2 %v3904_v2 }
 0x798   : > { %2259 = vmatmul.bf16.gmra.mxu1 %v2177_v17 }
 0x805   : > { %v2255_v21 = vpop.f32.mrf.mxu1 }
 0x806   : > { %v2256_v59 = vadd.f32 %v4087_v45, %v2255_v21  ;;  %v3915_v21 = vld [vmem:[#allocation14 + $0x18] sm:$0xff] }
 0x807   : > { %2618 = vmatpush.bf16.msrb.mxu1 %v3915_v21  ;;  %3936 = vmatpush.bf16.msrb.mxu3 %v3915_v21 }
 0x808   : > { %v2265_v27 = vmax.f32 %v2256_v59, 0.0 }
 0x80b   : > { %2619 = vmatpush.bf16.msrb.mxu1 %v3914_v22  ;;  %3937 = vmatpush.bf16.msrb.mxu3 %v3914_v22 }
 0x80d   : > { %v2257_v24 = vpop.f32.mrf.mxu1 }
 0x80e   : > { %v2258_v25 = vadd.f32 %v4087_v45, %v2257_v24  ;;  %v4090_v24 = vld [vmem:[%s5075_s7 + $0x4] ss:$0 sm:$0xff] }
 0x810   : > { %v2266_v29 = vmax.f32 %v2258_v25, 0.0 }
 0x812   : > { %v2269_v31 = vpack.c.bf16 %v2266_v29, %v2265_v27 }
 0x814   : > { %2347 = vmatmul.bf16.vlgmr.msra.gmra.mxu2 %v2269_v31 }
 0x815   : > { %v2260_v33 = vpop.f32.mrf.mxu1 }
 0x816   : > { %v2261_v35 = vadd.f32 %v4087_v45, %v2260_v33 }
 0x818   : > { %v2267_v38 = vmax.f32 %v2261_v35, 0.0 }
 0x81d   : > { %v2262_v36 = vpop.f32.mrf.mxu1 }
 0x81e   : > { %v2263_v37 = vadd.f32 %v4087_v45, %v2262_v36  ;;  %v3913_v45 = vld [vmem:[#allocation14 + $0x8] sm:$0xff] }
 0x81f   : > { %2620 = vmatpush.bf16.msrb.mxu1 %v3913_v45  ;;  %3938 = vmatpush.bf16.msrb.mxu3 %v3913_v45 }
 0x820   : > { %v2268_v39 = vmax.f32 %v2263_v37, 0.0 }
 0x822   : > { %v2270_v40 = vpack.c.bf16 %v2268_v39, %v2267_v38 }
 0x823   : > { %2621 = vmatpush.bf16.msrb.mxu1 %v3912_v23  ;;  %3939 = vmatpush.bf16.msrb.mxu3 %v3912_v23 }
 0x824   : > { %2352 = vmatmul.bf16.gmra.mxu2 %v2270_v40 }
 0x897   : > { %v2348_v44 = vpop.f32.mrf.mxu2 }
 0x898   : > { %v2349_v49 = vadd.f32 %v4088_v47, %v2348_v44 }
 0x89a   : > { %v2358_v53 = vmax.f32 %v2349_v49, 0.0 }
 0x89f   : > { %v2350_v50 = vpop.f32.mrf.mxu2 }
 0x8a0   : > { %v2351_v51 = vadd.f32 %v4088_v47, %v2350_v50 }
 0x8a2   : > { %v2359_v54 = vmax.f32 %v2351_v51, 0.0 }
 0x8a4   : > { %v2362_v55 = vpack.c.bf16 %v2359_v54, %v2358_v53 }
 0x8a6   : > { %2440 = vmatmul.bf16.vlgmr.msra.gmra.mxu3 %v2362_v55 }
 0x8a7   : > { %v2353_v56 = vpop.f32.mrf.mxu2 }
 0x8a8   : > { %v2354_v57 = vadd.f32 %v4088_v47, %v2353_v56 }
 0x8aa   : > { %v2360_v61 = vmax.f32 %v2354_v57, 0.0 }
 0x8af   : > { %v2355_v58 = vpop.f32.mrf.mxu2 }
 0x8b0   : > { %v2356_v60 = vadd.f32 %v4088_v47, %v2355_v58 }
 0x8b2   : > { %v2361_v62 = vmax.f32 %v2356_v60, 0.0 }
 0x8b4   : > { %v2363_v63 = vpack.c.bf16 %v2361_v62, %v2360_v61 }
 0x8b6   : > { %2445 = vmatmul.bf16.gmra.mxu3 %v2363_v63 }
 0x929   : > { %v2441_v3 = vpop.f32.mrf.mxu3 }
 0x92a   : > { %v2442_v7 = vadd.f32 %v4089_v5, %v2441_v3 }
 0x92c   : > { %v2451_v12 = vmax.f32 %v2442_v7, 0.0 }
 0x931   : > { %v2443_v8 = vpop.f32.mrf.mxu3 }
 0x932   : > { %v2444_v10 = vadd.f32 %v4089_v5, %v2443_v8 }
 0x934   : > { %v2452_v13 = vmax.f32 %v2444_v10, 0.0 }
 0x936   : > { %v2455_v14 = vpack.c.bf16 %v2452_v13, %v2451_v12 }
 0x938   : > { %2533 = vmatmul.bf16.vlgmr.msrb.gmra.mxu0 %v2455_v14 }
 0x939   : > { %v2446_v15 = vpop.f32.mrf.mxu3 }
 0x93a   : > { %v2447_v16 = vadd.f32 %v4089_v5, %v2446_v15 }
 0x93c   : > { %v2453_v18 = vmax.f32 %v2447_v16, 0.0 }
 0x941   : > { %v2448_v17 = vpop.f32.mrf.mxu3 }
 0x942   : > { %v2449_v34 = vadd.f32 %v4089_v5, %v2448_v17 }
 0x944   : > { %v2454_v19 = vmax.f32 %v2449_v34, 0.0 }
 0x946   : > { %v2456_v20 = vpack.c.bf16 %v2454_v19, %v2453_v18 }
 0x948   : > { %2538 = vmatmul.bf16.vlgmr.msrb.gmra.mxu2 %v2456_v20 }
 0x9b5   : > { %v2534_v59 = vpop.f32.mrf.mxu0 }
 0x9b6   : > { %v2535_v25 = vadd.f32 %v4090_v24, %v2534_v59 }
 0x9b8   : > { %v2544_v29 = vmax.f32 %v2535_v25, 0.0 }
 0x9bd   : > { %v2536_v26 = vpop.f32.mrf.mxu0 }
 0x9be   : > { %v2537_v27 = vadd.f32 %v4090_v24, %v2536_v26 }
 0x9c0   : > { %v2545_v31 = vmax.f32 %v2537_v27, 0.0 }
 0x9c2   : > { %v2548_v32 = vpack.c.bf16 %v2545_v31, %v2544_v29 }
 0x9c4   : > { %2622 = vmatmul.bf16.vlgmr.msrb.gmra.mxu1 %v2548_v32 }
 0x9cb   : > { %v2539_v33 = vpop.f32.mrf.mxu2 }
 0x9cc   : > { %v2540_v35 = vadd.f32 %v4090_v24, %v2539_v33 }
 0x9ce   : > { %v2546_v38 = vmax.f32 %v2540_v35, 0.0 }
 0x9d3   : > { %v2541_v36 = vpop.f32.mrf.mxu2 }
 0x9d4   : > { %v2542_v37 = vadd.f32 %v4090_v24, %v2541_v36 }
 0x9d6   : > { %v2547_v39 = vmax.f32 %v2542_v37, 0.0 }
 0x9d8   : > { %v2549_v40 = vpack.c.bf16 %v2547_v39, %v2546_v38 }
 0x9da   : > { %2627 = vmatmul.bf16.vlgmr.msrb.gmra.mxu3 %v2549_v40 }
 0x9db   : > { %4406 = shalt.err (!%p4403_p8)
}
 0x9dc   : > { %s4571_s28 = smov 128   ;;  %s4572_s29 = smov 8  }
 0x9dd   : > { %3969 = dma.vmem_to_hbm [thread:$0]  (%p4751_p4), %s2683_s6, 1024, %s2685_s3, %s4975_s12, %s4571_s28, %s4571_s28, %s4572_s29  }
 0x9de   : > { %s2667_s27 = sshll.u32 %s2664_s20, 4  ;;  %s2698_s23 = scalar_lea.hbm %s5079_s11, %s4963_s14  ;;  %s2668_s27 = int_to_ptr.hbm [resolvable:$true] %s2667_s27 }
 0x9df   : > { %s2638_s2 = scalar_lea.sflag [#allocation4], %s4810_s19  ;;  %s4421_s8 = sshra.s32 %s2668_s27, 4  ;;  %s4422_s8 = int_to_ptr.hbm [resolvable:$true] %s4421_s8 }
 0x9e0   : > { %s4423_s13 = scalar_lea.hbm %s4422_s8, 64  ;;  %s4427_s16 = scalar_lea.hbm %s5077_s9, 128 }
 0x9e1   : > { %p4424_p10 = scmp.ne.s32.totalorder %s4422_s8, %s4423_s13  ;;  %p4428_p0 = scmp.lt.s32.totalorder %s4422_s8, %s5077_s9 }
 0x9e2   : > { %p4429_p2 = scmp.lt.s32.totalorder %s4427_s16, %s4423_s13 }
 0x9e3   : > { %p4425_p13 = pnand %p4424_p10, %p4751_p4 }
 0x9e4   : > { %p4430_p1 = por %p4429_p2, %p4428_p0 }
 0x9e5   : > { %p4426_p11 = pneg %p4425_p13 }
 0x9e7   : > { %p4431_p3 = pnand %p4430_p1, %p4426_p11 }
 0x9e9   : > { %4434 = shalt.err (!%p4431_p3)
}
 0x9ea   : > { %3968 = dma.vmem_to_hbm [thread:$0]  (%p4751_p4), %s4958_s15, 1024, %s2668_s27, %s2638_s2, %s4571_s28, %s4571_s28, %s4572_s29  }
 0x9eb   : > { %s2701_s3 = sshll.u32 %s2698_s23, 4  ;;  %s4455_s8 = scalar_lea.hbm %s5079_s11, 128  ;;  %s2702_s3 = int_to_ptr.hbm [resolvable:$true] %s2701_s3 }
 0x9ec   : > { %s4449_s20 = sshra.s32 %s2702_s3, 4  ;;  %s4450_s20 = int_to_ptr.hbm [resolvable:$true] %s4449_s20 }
 0x9ed   : > { %s4451_s17 = scalar_lea.hbm %s4450_s20, 64  ;;  %p4456_p5 = scmp.lt.s32.totalorder %s4450_s20, %s5079_s11 }
 0x9ee   : > { %p4452_p12 = scmp.ne.s32.totalorder %s4450_s20, %s4451_s17  ;;  %p4457_p8 = scmp.lt.s32.totalorder %s4455_s8, %s4451_s17 }
 0x9f0   : > { %p4453_p7 = pnand %p4452_p12, %p4751_p4  ;;  %p4458_p10 = por %p4457_p8, %p4456_p5 }
 0x9f2   : > { %p4454_p9 = pneg %p4453_p7 }
 0x9f4   : > { %p4459_p13 = pnand %p4458_p10, %p4454_p9 }
 0x9f6   : > { %4462 = shalt.err (!%p4459_p13)
}
 0x9f7   : > { %3970 = dma.vmem_to_hbm [thread:$0]  (%p4751_p4), %s4960_s4, 1024, %s2702_s3, %s4975_s12, %s4571_s28, %s4571_s28, %s4572_s29  }
 0x9f8   : > { %s5121_s23 = sld [smem:[#allocation42_spill]]  ;;  %s2716_s16 = sshll.u32 %s4919_s5, 4  ;;  %s2717_s16 = int_to_ptr.vmem [resolvable:$true] %s2716_s16 }
 0x9f9   : > { %s2653_s20 = scalar_lea.sflag [#allocation21], %s4810_s19 }
 0x9fe   : > { %s5122_s2 = smov %s5121_s23  ;;  %s2715_s30 = scalar_lea.hbm %s5121_s23, %s4963_s14 }
 0x9ff   : > { %s2718_s6 = sshll.u32 %s2715_s30, 4  ;;  %s4483_s0 = scalar_lea.hbm %s5122_s2, 128  ;;  %s2719_s6 = int_to_ptr.hbm [resolvable:$true] %s2718_s6 }
 0xa00   : > { %s4477_s17 = sshra.s32 %s2719_s6, 4  ;;  %s4478_s17 = int_to_ptr.hbm [resolvable:$true] %s4477_s17 }
 0xa01   : > { %s4479_s4 = scalar_lea.hbm %s4478_s17, 64  ;;  %p4484_p1 = scmp.lt.s32.totalorder %s4478_s17, %s5122_s2 }
 0xa02   : > { %p4480_p11 = scmp.ne.s32.totalorder %s4478_s17, %s4479_s4  ;;  %p4485_p3 = scmp.lt.s32.totalorder %s4483_s0, %s4479_s4 }
 0xa04   : > { %p4481_p0 = pnand %p4480_p11, %p4751_p4  ;;  %p4486_p12 = por %p4485_p3, %p4484_p1 }
 0xa06   : > { %p4482_p2 = pneg %p4481_p0 }
 0xa08   : > { %p4487_p7 = pnand %p4486_p12, %p4482_p2 }
 0xa41   : > { %v2623_v41 = vpop.f32.mrf.mxu1 }
 0xa42   : > { %2633 = vst [vmem:[%s4919_s5 + $0x20] sm:$0xff] %v2623_v41 }
 0xa49   : > { %v2625_v9 = vpop.f32.mrf.mxu1 }
 0xa4a   : > { %2634 = vst [vmem:[%s4919_s5 + $0x28] sm:$0xff] %v2625_v9 }
 0xa5d   : > { %v2628_v42 = vpop.f32.mrf.mxu3 }
 0xa5e   : > { %2635 = vst [vmem:[%s4919_s5 + $0x30] sm:$0xff] %v2628_v42 }
 0xa65   : > { %v2630_v43 = vpop.f32.mrf.mxu3 }
 0xa66   : > { %2636 = vst [vmem:[%s4919_s5 + $0x38] sm:$0xff] %v2630_v43 }
 0xa67   : > { %4490 = shalt.err (!%p4487_p7)
}
 0xa68   : > { %3971 = dma.vmem_to_hbm [thread:$0]  (%p4751_p4), %s2717_s16, 1024, %s2719_s6, %s2653_s20, %s4571_s28, %s4571_s28, %s4572_s29  }
 0xa69 PF: > { %s2733_s5 = sand.u32 1, %s4545_s21   ;;  %p5124_p9 = scmp.ge.s32.totalorder %s4557_s24, 2 }
 0xa6a   : > { %s2734_s8 = scalar_lea.sflag [#allocation4], %s2733_s5 }
 0xa6b   : > { %p4003_p5 = pnand %p5124_p9, %p4755_p6 }
 0xa6d   : > { %p4004_p8 = pneg %p4003_p5 }
 0xa6f   : > { %4532 = dma.done.wait (%p4004_p8), %s2734_s8, 1024  }
 0xa70   : > { %4534 = vsyncadd (%p4004_p8), %s2734_s8, 4294966272  ;;  %s5125_s13 = sadd.s32 4294967294, %s4557_s24  }
 0xa71   : > { %s2743_s26 = sand.u32 1, %s5125_s13  }
 0xa72   : > { %s2744_s18 = scalar_lea.sflag [#allocation18], %s2743_s26 }
 0xa73   : > { %4536 = dma.done.wait (%p4004_p8), %s2744_s18, 2048  }
 0xa74   : > { %4538 = vsyncadd (%p4004_p8), %s2744_s18, 4294965248  ;;  %s2764_s15 = scalar_lea.sflag [#allocation21], %s2733_s5 }
 0xa75   : > { %4540 = dma.done.wait (%p4004_p8), %s2764_s15, 1024  }
 0xa76   : > { %4542 = vsyncadd (%p4004_p8), %s2764_s15, 4294966272  ;;  %s5126_s24 = sld [smem:[#allocation32_spill]]  ;;  %s5129_s21 = smov %s4549_s22 }
 0xa77   : > { %s5127_s28 = sld [smem:[#allocation31_spill]] }
 0xa78   : > { %s5128_s23 = sld [smem:[#allocation33_spill]] }
 0xa7c   : > { %p38_p4 = scmp.ge.s32.totalorder %s5126_s24, 4  }
 0xa7d   : > { %s5130_s22 = smov %s5127_s28 }
 0xa7e   :  { %40 = sbr.rel (!%p38_p4) target bundleno = 23 (0x17), region = 199 }
 0xa83   :  { %2770 = vsyncpa [#allocation3], 1 }
 0xa84   :  { %2772 = vsyncpa [#allocation3 + $0x1], 1 }
 0xa85   :  { %2773 = vsyncpa [#allocation6], 1 }
 0xa86   :  { %2775 = vsyncpa [#allocation6 + $0x1], 1 }
 0xa87   :  { %2776 = vsyncpa [#allocation9], 1 }
 0xa88   :  { %2777 = vsyncpa [#allocation12], 1 }
 0xa89   :  { %2778 = vsyncpa [#allocation15], 1 }
 0xa8a   :  { %2779 = vsyncpa [#allocation4], 1 }
 0xa8b   :  { %2781 = vsyncpa [#allocation4 + $0x1], 1 }
 0xa8c   :  { %2782 = vsyncpa [#allocation18], 1 }
 0xa8d   :  { %2784 = vsyncpa [#allocation18 + $0x1], 1 }
 0xa8e   :  { %2785 = vsyncpa [#allocation21], 1 }
 0xa8f   :  { %2787 = vsyncpa [#allocation21 + $0x1], 1 }

// kernel: tpu_custom_call.1
= control target key start
LH: loop header
LB: loop body
LE: loop exit
PB: predicated region body
PF: predicated region fallthrough
CT: control target
= control target key end

     0   :  { %s5068_s0 = inlined_call_operand.hbm [shape: bf16[128,128], index: 0, kind: input, shape index: {}]   ;;  %s5069_s1 = inlined_call_operand.hbm [shape: f32[128,128], index: 1, kind: input, shape index: {}]   ;;  %s5070_s2 = inlined_call_operand.hbm [shape: bf16[128,256], index: 2, kind: input, shape index: {}]   ;;  %s5071_s3 = inlined_call_operand.hbm [shape: f32[1,256], index: 3, kind: input, shape index: {}]   ;;  %s5072_s4 = inlined_call_operand.hbm [shape: bf16[3,128,128], index: 4, kind: input, shape index: {}]   ;;  %s5073_s5 = inlined_call_operand.hbm [shape: f32[3,1,128], index: 5, kind: input, shape index: {}]   ;;  %s5074_s6 = inlined_call_operand.hbm [shape: bf16[5,128,128], index: 6, kind: input, shape index: {}]   ;;  %s5075_s7 = inlined_call_operand.vmem [shape: f32[5,1,128], index: 7, kind: input, shape index: {}]   ;;  %s5076_s8 = inlined_call_operand.hbm [shape: bf16[128,128], index: 8, kind: input, shape index: {}]   ;;  %s5077_s9 = inlined_call_operand.hbm [shape: f32[128,128], index: 9, kind: output, shape index: {0}]   ;;  %s5078_s10 = inlined_call_operand.hbm [shape: f32[128,128], index: 10, kind: output, shape index: {1}]   ;;  %s5079_s11 = inlined_call_operand.hbm [shape: f32[128,128], index: 11, kind: output, shape index: {2}]   ;;  %s5080_s12 = inlined_call_operand.hbm [shape: f32[128,128], index: 12, kind: output, shape index: {3}]  }
   0x1   :  { %5091 = sst [smem:[#allocation35_spill]] %s5068_s0 }
   0x2   :  { %5092 = sst [smem:[#allocation36_spill]] %s5070_s2 }
   0x3   :  { %5093 = sst [smem:[#allocation37_spill]] %s5071_s3 }
   0x4   :  { %5094 = sst [smem:[#allocation38_spill]] %s5072_s4 }
   0x5   :  { %5095 = sst [smem:[#allocation39_spill]] %s5073_s5 }
   0x6   :  { %5096 = sst [smem:[#allocation40_spill]] %s5074_s6 }
   0x7   :  { %5097 = sst [smem:[#allocation41_spill]] %s5076_s8 }
   0x8   :  { %5098 = sst [smem:[#allocation42_spill]] %s5080_s12 }
   0x9   :  { %18 = vsyncpa [#allocation3], 0 }
   0xa   :  { %20 = vsyncpa [#allocation3 + $0x1], 0 }
   0xb   :  { %21 = vsyncpa [#allocation6], 0 }
   0xc   :  { %23 = vsyncpa [#allocation6 + $0x1], 0 }
   0xd   :  { %24 = vsyncpa [#allocation9], 0 }
   0xe   :  { %25 = vsyncpa [#allocation12], 0 }
   0xf   :  { %26 = vsyncpa [#allocation15], 0 }
  0x10   :  { %27 = vsyncpa [#allocation4], 0 }
  0x11   :  { %29 = vsyncpa [#allocation4 + $0x1], 0 }
  0x12   :  { %30 = vsyncpa [#allocation18], 0 }
  0x13   :  { %32 = vsyncpa [#allocation18 + $0x1], 0 }
  0x14   :  { %33 = vsyncpa [#allocation21], 0 }
  0x15   :  { %35 = vsyncpa [#allocation21 + $0x1], 0  ;;  %s4638_s21 = smov 0   ;;  %s4640_s22 = smov 0  }
  0x16   :  { %s4642_s23 = smov 0   ;;  %s4644_s24 = smov 0  }
  0x17 LB: > { %5099 = sst [smem:[#allocation31_spill]] %s4553_s23  ;;  %s4662_s28 = sadd.s32 4294967295, %s4557_s24   ;;  %s4557_s24 = sphi %s4644_s24, %s5126_s24   ;;  %s4553_s23 = sphi %s4642_s23, %s5128_s23   ;;  %s4549_s22 = sphi %s4640_s22, %s5130_s22   ;;  %s4545_s21 = sphi %s4638_s21, %s5129_s21  }
  0x18   : > { %s5100_s2 = sld [smem:[#allocation36_spill]]  ;;  %p2969_p0 = scmp.ge.s32.totalorder %s4557_s24, 1 }
  0x19   : > { %p62_p1 = scmp.eq.s32.totalorder %s4662_s28, 0  ;;  %p349_p2 = scmp.lt.s32.totalorder %s4557_s24, 3 }
  0x1a   : > { %s4559_s30 = smov [#allocation7]   ;;  %s5102_s3 = sld [smem:[#allocation37_spill]] }
  0x1b   : > { %p4667_p3 = pnand %p2969_p0, %p349_p2  ;;  %s362_s13 = sshll.u32 %s4559_s30, 4  ;;  %s363_s13 = int_to_ptr.vmem [resolvable:$true] %s362_s13 }
  0x1c   : > { %s5104_s5 = sld [smem:[#allocation39_spill]]  ;;  %s4560_s25 = smov [#allocation8]  }
  0x1d   : > { %p3976_p4 = pneg %p4667_p3  ;;  %s377_s26 = sshll.u32 %s4560_s25, 4  ;;  %s378_s26 = int_to_ptr.vmem [resolvable:$true] %s377_s26 }
  0x1e   : > { %s360_s27 = sshll.u32 %s5100_s2, 4  ;;  %s5083_s30 = smov 128   ;;  %s361_s27 = int_to_ptr.hbm [resolvable:$true] %s360_s27 }
  0x1f   : > { %p4679_p6 = pnand %p3976_p4, %p62_p1  ;;  %s5084_s2 = smov 8  }
  0x20   : > { %s375_s16 = sshll.u32 %s5102_s3, 4  ;;  %s4563_s14 = smov [#allocation11]   ;;  %s376_s16 = int_to_ptr.hbm [resolvable:$true] %s375_s16 }
  0x21   : > { %3979 = dma.hbm_to_vmem [thread:$0]  (!%p4679_p6), %s361_s27, 2048, %s363_s13, [#allocation6], %s5083_s30, %s5083_s30, %s5084_s2  }
  0x22   : > { %s400_s20 = sshll.u32 %s5104_s5, 4  ;;  %s402_s15 = sshll.u32 %s4563_s14, 4  ;;  %s401_s20 = int_to_ptr.hbm [resolvable:$true] %s400_s20  ;;  %s403_s15 = int_to_ptr.vmem [resolvable:$true] %s402_s15 }
  0x23   : > { %3982 = dma.hbm_to_vmem [thread:$0]  (!%p4679_p6), %s376_s16, 32, %s378_s26, [#allocation9]  }
  0x24   : > { %s5105_s4 = sld [smem:[#allocation38_spill]]  ;;  %s4564_s25 = smov 16  }
  0x25   : > { %s4565_s5 = smov 1   ;;  %s4566_s12 = smov [#allocation10]  }
  0x26   : > { %3988 = dma.hbm_to_vmem [thread:$0]  (!%p4679_p6), %s401_s20, 48, %s403_s15, [#allocation12], %s4564_s25, %s4564_s25, %s4565_s5  }
  0x27   : > { %s388_s27 = sshll.u32 %s4566_s12, 4  ;;  %s5085_s13 = smov 64   ;;  %s389_s27 = int_to_ptr.vmem [resolvable:$true] %s388_s27 }
  0x28   : > { %s5086_s16 = smov 4   ;;  %s5106_s6 = sld [smem:[#allocation40_spill]] }
  0x29   : > { %s4569_s12 = smov [#allocation13]   ;;  %s5107_s8 = sld [smem:[#allocation41_spill]] }
  0x2a   : > { %s386_s3 = sshll.u32 %s5105_s4, 4  ;;  %s416_s20 = sshll.u32 %s4569_s12, 4  ;;  %s387_s3 = int_to_ptr.hbm [resolvable:$true] %s386_s3  ;;  %s417_s20 = int_to_ptr.vmem [resolvable:$true] %s416_s20 }
  0x2b   : > { %3985 = dma.hbm_to_vmem [thread:$0]  (!%p4679_p6), %s387_s3, 3072, %s389_s27, [#allocation9], %s5085_s13, %s5085_s13, %s5086_s16  }
  0x2c   : > { %s4570_s3 = smov [#allocation14]   ;;  %s5082_s27 = sadd.s32 4294967294, %s4557_s24  }
  0x2d   : > { %s433_s25 = sshll.u32 %s4570_s3, 4  ;;  %s4721_s26 = sadd.s32 1, %s4557_s24   ;;  %s434_s25 = int_to_ptr.vmem [resolvable:$true] %s433_s25 }
  0x2e   : > { %s414_s5 = sshll.u32 %s5106_s6, 4  ;;  %5108 = sst [smem:[#allocation32_spill]] %s4721_s26  ;;  %s415_s5 = int_to_ptr.hbm [resolvable:$true] %s414_s5 }
  0x2f   : > { %s431_s19 = sshll.u32 %s5107_s8, 4  ;;  %s45_s14 = ssub.s32 %s4557_s24, %s4721_s26  ;;  %s432_s19 = int_to_ptr.hbm [resolvable:$true] %s431_s19 }
  0x30   : > { %3991 = dma.hbm_to_vmem [thread:$0]  (!%p4679_p6), %s415_s5, 5120, %s417_s20, [#allocation12], %s5085_s13, %s5085_s13, %s5086_s16  }
  0x31   : > { %3994 = dma.hbm_to_vmem [thread:$0]  (!%p4679_p6), %s432_s19, 1024, %s434_s25, [#allocation15], %s5085_s13, %s5085_s13, %s5086_s16  }
  0x32   : > { %s48_s5 = sadd.s32 1, %s4553_s23  ;;  %p46_p7 = scmp.eq.s32.totalorder %s45_s14, 0 }
  0x33   : > { %p55_p8 = scmp.ne.s32.totalorder %s4553_s23, %s4549_s22  ;;  %p56_p9 = scmp.eq.s32.totalorder %s4557_s24, 0 }
  0x34   : > { %p61_p10 = scmp.ne.s32.totalorder %s4549_s22, %s4545_s21  ;;  %p258_p13 = scmp.eq.s32.totalorder %s4662_s28, 1 }
  0x35   : > { %s4732_s12 = scalar_select %p46_p7, %s4553_s23, %s48_s5  }
  0x36   : > { %p4734_p11 = por %p56_p9, %p55_p8  ;;  %p4740_p12 = por %p62_p1, %p61_p10 }
  0x37   : > { %5109 = sst [smem:[#allocation33_spill]] %s4732_s12  ;;  %p264_p0 = scmp.eq.s32.totalorder %s5082_s27, 1 }
  0x38   : > { %p4021_p2 = scmp.lt.s32.totalorder %s4557_s24, 2  ;;  %s4749_s15 = sand.u32 1, %s4553_s23  }
  0x39   : > { %p4751_p4 = por %p258_p13, %p55_p8  ;;  %p4755_p6 = por %p264_p0, %p61_p10 }
  0x3a   : > { %s2977_s3 = sshll.u32 %s4749_s15, 5  ;;  %s3738_s25 = sshll.u32 %s4557_s24, 5 }
  0x3b   : > { %s5113_s19 = scalar_select %p4755_p6, 1, 0 }
  0x3c   : > { %s5115_s0 = sld [smem:[#allocation35_spill]]  ;;  %s451_s30 = scalar_lea.vmem [#allocation2], %s2977_s3 }
  0x3d   : > { %5114 = sst [smem:[#allocation34_spill]] %s5113_s19  ;;  %s459_s2 = sshll.u32 %s451_s30, 4  ;;  %s460_s2 = int_to_ptr.vmem [resolvable:$true] %s459_s2 }
  0x3e   : > { %p4766_p7 = pnand %p4021_p2, %p4734_p11  ;;  %s469_s4 = sand.u32 1, %s4557_s24  }
  0x3f   : > { %s2980_s6 = sshll.u32 %s4749_s15, 6  ;;  %s448_s8 = scalar_lea.sflag [#allocation3], %s4749_s15 }
  0x40   : > { %p4323_p9 = pneg %p4766_p7 }
  0x42   : > { %s456_s27 = scalar_lea.hbm %s5115_s0, %s3738_s25  ;;  %s4326_s17 = scalar_lea.hbm %s5115_s0, 64 }
  0x43   : > { %s457_s13 = sshll.u32 %s456_s27, 4  ;;  %s458_s13 = int_to_ptr.hbm [resolvable:$true] %s457_s13 }
  0x44   : > { %s4319_s12 = sshra.s32 %s458_s13, 4  ;;  %s4320_s12 = int_to_ptr.hbm [resolvable:$true] %s4319_s12 }
  0x45   : > { %s4321_s23 = scalar_lea.hbm %s4320_s12, 32  ;;  %p4327_p11 = scmp.lt.s32.totalorder %s4320_s12, %s5115_s0 }
  0x46   : > { %p4322_p8 = scmp.ne.s32.totalorder %s4320_s12, %s4321_s23  ;;  %p4328_p0 = scmp.lt.s32.totalorder %s4326_s17, %s4321_s23 }
  0x48   : > { %p4324_p10 = pnand %p4323_p9, %p4322_p8  ;;  %p4329_p2 = por %p4328_p0, %p4327_p11 }
  0x4a   : > { %p4325_p13 = pneg %p4324_p10 }
  0x4c   : > { %p4330_p5 = pnand %p4329_p2, %p4325_p13 }
  0x4e   : > { %4333 = shalt.err (!%p4330_p5)
}
  0x4f   : > { %s5117_s15 = smov 4   ;;  %s5118_s14 = smov 64  }
  0x50   : > { %3998 = dma.hbm_to_vmem [thread:$0]  (!%p4766_p7), %s458_s13, 512, %s460_s2, %s448_s8, %s5118_s14, %s5118_s14, %s5117_s15  }
  0x51   : > { %s3739_s5 = sshll.u32 %s4557_s24, 6  ;;  %s473_s19 = scalar_lea.vmem [#allocation5], %s2980_s6 }
  0x52   : > { %s478_s27 = scalar_lea.hbm %s5069_s1, %s3739_s5  ;;  %s481_s3 = sshll.u32 %s473_s19, 4  ;;  %s482_s3 = int_to_ptr.vmem [resolvable:$true] %s481_s3 }
  0x53   : > { %s479_s12 = sshll.u32 %s478_s27, 4  ;;  %s470_s23 = scalar_lea.sflag [#allocation6], %s469_s4  ;;  %s480_s12 = int_to_ptr.hbm [resolvable:$true] %s479_s12 }
  0x54   : > { %s4349_s17 = sshra.s32 %s480_s12, 4  ;;  %s4356_s13 = scalar_lea.hbm %s5069_s1, 128  ;;  %s4350_s17 = int_to_ptr.hbm [resolvable:$true] %s4349_s17 }
  0x55   : > { %s4351_s25 = scalar_lea.hbm %s4350_s17, 64  ;;  %p4357_p13 = scmp.lt.s32.totalorder %s4350_s17, %s5069_s1 }
  0x56   : > { %p4352_p5 = scmp.ne.s32.totalorder %s4350_s17, %s4351_s25  ;;  %p4358_p11 = scmp.lt.s32.totalorder %s4356_s13, %s4351_s25 }
  0x58   : > { %p4354_p8 = pnand %p4352_p5, %p4323_p9  ;;  %p4359_p0 = por %p4358_p11, %p4357_p13 }
  0x5a   : > { %p4355_p10 = pneg %p4354_p8 }
  0x5c   : > { %p4360_p2 = pnand %p4359_p0, %p4355_p10 }
  0x5e   : > { %4363 = shalt.err (!%p4360_p2)
}
  0x5f   : > { %s5119_s4 = smov 8   ;;  %s5120_s6 = smov 128  }
  0x60   : > { %4001 = dma.hbm_to_vmem [thread:$0]  (!%p4766_p7), %s480_s12, 1024, %s482_s3, %s470_s23, %s5120_s6, %s5120_s6, %s5119_s4  }
  0x61   : > { %493 = sbr.rel (%p4667_p3) target bundleno = 2665 (0xa69), region = 56  ;;  %s4810_s19 = sand.u32 (!%p4667_p3), 1, %s4549_s22  }
  0x62   : > { %s2984_s14 = sshll.u32 (!%p4667_p3), %s4810_s19, 5  ;;  %s496_s5 = scalar_lea.sflag (!%p4667_p3), [#allocation3], %s4810_s19 }
  0x63   : > { %s4814_s30 = scalar_lea.vmem (!%p4667_p3), [#allocation2], %s2984_s14 }
  0x66   : > { %4508 = dma.done.wait (%p4740_p12), %s496_s5, 512  }
  0x67   : > { %4510 = vsyncadd (%p4740_p12), %s496_s5, 4294966784  ;;  %s505_s29 = sand.u32 1, %s4662_s28   ;;  %s4822_s16 = sshll.u32 %s4810_s19, 6 }
  0x68   : > { %s506_s27 = scalar_lea.sflag [#allocation6], %s505_s29  ;;  %s4827_s3 = scalar_lea.vmem [#allocation5], %s4822_s16 }
  0x69   : > { %4512 = dma.done.wait (%p4740_p12), %s506_s27, 1024  }
  0x6a   : > { %4514 = vsyncadd (%p4740_p12), %s506_s27, 4294966272 }
  0x6b   : > { %4516 = dma.done.wait (%p62_p1), [#allocation6], 2048  }
  0x6c   : > { %4518 = vsyncadd (%p62_p1), [#allocation6], 4294965248 }
  0x6d   : > { %4520 = dma.done.wait (%p62_p1), [#allocation9], 3104  }
  0x6e   : > { %4522 = vsyncadd (%p62_p1), [#allocation9], 4294964192 }
  0x6f   : > { %4524 = dma.done.wait (%p62_p1), [#allocation12], 5168  }
  0x70   : > { %4526 = vsyncadd (%p62_p1), [#allocation12], 4294962128 }
  0x71   : > { %4528 = dma.done.wait (%p62_p1), [#allocation15], 1024  }
  0x72   : > { %4530 = vsyncadd (%p62_p1), [#allocation15], 4294966272  ;;  %v3062_v0 = vld [vmem:[#allocation7 + $0x70] sm:$0xf]  ;;  %v3757_v1 = vld [vmem:[#allocation7 + $0x74] sm:$0xf0] }
  0x73   : > { %v3054_v2 = vld [vmem:[#allocation7 + $0x60] sm:$0xf]  ;;  %v3063_v3 = vor.u32 %v3757_v1, %v3062_v0  ;;  %v3755_v4 = vld [vmem:[#allocation7 + $0x64] sm:$0xf0]  ;;  %v3046_v6 = vld [vmem:[#allocation7 + $0x50] sm:$0xf] }
  0x74   : > { %v3055_v5 = vor.u32 %v3755_v4, %v3054_v2  ;;  %v3753_v7 = vld [vmem:[#allocation7 + $0x54] sm:$0xf0]  ;;  %v3038_v8 = vld [vmem:[#allocation7 + $0x40] sm:$0xf]  ;;  %v3751_v9 = vld [vmem:[#allocation7 + $0x44] sm:$0xf0] }
  0x75   : > { %725 = vmatpush.bf16.msra.mxu0 %v3063_v3  ;;  %v3047_v10 = vor.u32 %v3753_v7, %v3046_v6  ;;  %v3039_v11 = vor.u32 %v3751_v9, %v3038_v8  ;;  %v3030_v12 = vld [vmem:[#allocation7 + $0x30] sm:$0xf]  ;;  %v3749_v13 = vld [vmem:[#allocation7 + $0x34] sm:$0xf0]  ;;  %v3022_v15 = vld [vmem:[#allocation7 + $0x20] sm:$0xf] }
  0x76   : > { %v3031_v14 = vor.u32 %v3749_v13, %v3030_v12  ;;  %v3747_v16 = vld [vmem:[#allocation7 + $0x24] sm:$0xf0]  ;;  %v3765_v17 = vld [vmem:[#allocation10 + $0x38] sm:$0xff]  ;;  %v3014_v19 = vld [vmem:[#allocation7 + $0x10] sm:$0xf]  ;;  %s4861_s20 = scalar_lea.vmem [#allocation16], %s4822_s16 }
  0x77   : > { %v3023_v18 = vor.u32 %v3747_v16, %v3022_v15  ;;  %v3745_v20 = vld [vmem:[#allocation7 + $0x14] sm:$0xf0]  ;;  %841 = vmatpush.bf16.msra.mxu2 %v3765_v17  ;;  %v3006_v23 = vld [vmem:[#allocation7] sm:$0xf]  ;;  %v3743_v24 = vld [vmem:[#allocation7 + $0x4] sm:$0xf0] }
  0x78   : > { %v3764_v21 = vld [vmem:[#allocation10 + $0x30] sm:$0xff]  ;;  %v3015_v22 = vor.u32 %v3745_v20, %v3014_v19  ;;  %v3763_v25 = vld [vmem:[#allocation10 + $0x28] sm:$0xff]  ;;  %v3007_v26 = vor.u32 %v3743_v24, %v3006_v23  ;;  %v3762_v27 = vld [vmem:[#allocation10 + $0x20] sm:$0xff]  ;;  %s4871_s12 = scalar_lea.vmem [#allocation19], %s4822_s16  ;;  %s4878_s23 = scalar_lea.vmem [#allocation17], %s4822_s16 }
  0x79   : > { %726 = vmatpush.bf16.msra.mxu0 %v3055_v5  ;;  %v4850_v28 = vld [vmem:[%s4814_s30] sm:$0xff]  ;;  %v4854_v30 = vld [vmem:[%s4814_s30 + $0x8] sm:$0xff]  ;;  %v3760_v31 = vld [vmem:[#allocation10 + $0x10] sm:$0xff]  ;;  %s4919_s5 = scalar_lea.vmem [#allocation20], %s4822_s16  ;;  %s2665_s15 = sshll.u32 %s4861_s20, 4  ;;  %s4958_s15 = int_to_ptr.vmem [resolvable:$true] %s2665_s15 }
  0x7a   : > { %v3761_v29 = vld [vmem:[#allocation10 + $0x18] sm:$0xff]  ;;  %v3759_v32 = vld [vmem:[#allocation10 + $0x8] sm:$0xff]  ;;  %v3758_v33 = vld [vmem:[#allocation10] sm:$0xff]  ;;  %s2699_s4 = sshll.u32 %s4871_s12, 4  ;;  %s2682_s6 = sshll.u32 %s4878_s23, 4  ;;  %s4960_s4 = int_to_ptr.vmem [resolvable:$true] %s2699_s4  ;;  %s2683_s6 = int_to_ptr.vmem [resolvable:$true] %s2682_s6 }
  0x7b   : > { %842 = vmatpush.bf16.msra.mxu2 %v3764_v21  ;;  %v4857_v34 = vld [vmem:[#allocation8] sm:$0x3]  ;;  %v3772_v37 = vld [vmem:[#allocation10 + $0x70] sm:$0xff]  ;;  %v3771_v40 = vld [vmem:[#allocation10 + $0x68] sm:$0xff]  ;;  %s4963_s14 = sshll.u32 %s4662_s28, 6  ;;  %s4399_s26 = scalar_lea.hbm %s5078_s10, 128 }
  0x7c   : > { %v629_v35 = vperm.slane %v4857_v34, 0  ;;  %v3773_v36 = vld [vmem:[#allocation10 + $0x78] sm:$0xff]  ;;  %v3770_v49 = vld [vmem:[#allocation10 + $0x60] sm:$0xff]  ;;  %v3768_v51 = vld [vmem:[#allocation10 + $0x50] sm:$0xff]  ;;  %s2681_s27 = scalar_lea.hbm %s5078_s10, %s4963_s14 }
  0x7d   : > { %727 = vmatpush.bf16.msra.mxu0 %v3047_v10  ;;  %936 = vmatpush.bf16.msra.mxu3 %v3773_v36  ;;  %v3769_v50 = vld [vmem:[#allocation10 + $0x58] sm:$0xff]  ;;  %v3767_v52 = vld [vmem:[#allocation10 + $0x48] sm:$0xff]  ;;  %v3766_v53 = vld [vmem:[#allocation10 + $0x40] sm:$0xff] }
  0x7e   : > { %v4075_v55 = vld [vmem:[#allocation11] ss:$0 sm:$0xff]  ;;  %v3781_v56 = vld [vmem:[#allocation10 + $0xb8] sm:$0xff]  ;;  %v3780_v58 = vld [vmem:[#allocation10 + $0xb0] sm:$0xff] }
  0x7f   : > { %843 = vmatpush.bf16.msra.mxu2 %v3763_v25  ;;  %v3779_v61 = vld [vmem:[#allocation10 + $0xa8] sm:$0xff]  ;;  %v3778_v8 = vld [vmem:[#allocation10 + $0xa0] sm:$0xff]  ;;  %v3777_v9 = vld [vmem:[#allocation10 + $0x98] sm:$0xff] }
  0x80   : > { %v3776_v10 = vld [vmem:[#allocation10 + $0x90] sm:$0xff]  ;;  %v3774_v12 = vld [vmem:[#allocation10 + $0x80] sm:$0xff]  ;;  %v3064_v16 = vld [vmem:[#allocation7 + $0x78] sm:$0xf0] }
  0x81   : > { %728 = vmatpush.bf16.msra.mxu0 %v3039_v11  ;;  %937 = vmatpush.bf16.msra.mxu3 %v3772_v37  ;;  %v3775_v11 = vld [vmem:[#allocation10 + $0x88] sm:$0xff]  ;;  %v3756_v15 = vld [vmem:[#allocation7 + $0x74] sm:$0xf]  ;;  %v3754_v17 = vld [vmem:[#allocation7 + $0x64] sm:$0xf] }
  0x82   : > { %v3056_v19 = vld [vmem:[#allocation7 + $0x68] sm:$0xf0]  ;;  %v3752_v23 = vld [vmem:[#allocation7 + $0x54] sm:$0xf]  ;;  %v3048_v24 = vld [vmem:[#allocation7 + $0x58] sm:$0xf0] }
  0x83   : > { %844 = vmatpush.bf16.msra.mxu2 %v3762_v27  ;;  %v3059_v21 = vor.u32 %v3754_v17, %v3056_v19  ;;  %v3750_v27 = vld [vmem:[#allocation7 + $0x44] sm:$0xf]  ;;  %v3032_v36 = vld [vmem:[#allocation7 + $0x38] sm:$0xf0] }
  0x85   : > { %729 = vmatpush.bf16.msra.mxu0 %v3031_v14  ;;  %938 = vmatpush.bf16.msra.mxu3 %v3771_v40  ;;  %v4076_v14 = vld [vmem:[#allocation11 + $0x1] ss:$0 sm:$0xff]  ;;  %v3746_v40 = vld [vmem:[#allocation7 + $0x24] sm:$0xf] }
  0x87   : > { %845 = vmatpush.bf16.msra.mxu2 %v3761_v29  ;;  %v3040_v29 = vld [vmem:[#allocation7 + $0x48] sm:$0xf0] }
  0x89   : > { %730 = vmatpush.bf16.msra.mxu0 %v3023_v18  ;;  %939 = vmatpush.bf16.msra.mxu3 %v3770_v49  ;;  %v3067_v18 = vor.u32 %v3756_v15, %v3064_v16  ;;  %v3742_v49 = vld [vmem:[#allocation7 + $0x4] sm:$0xf] }
  0x8a   : > { %v3794_v16 = vld [vmem:[#allocation13 + $0x60] sm:$0xff] }
  0x8b   : > { %846 = vmatpush.bf16.msra.mxu2 %v3760_v31  ;;  %744 = vmatpush.bf16.msra.mxu1 %v3067_v18  ;;  %v3043_v31 = vor.u32 %v3750_v27, %v3040_v29  ;;  %v3793_v18 = vld [vmem:[#allocation13 + $0x58] sm:$0xff] }
  0x8d   : > { %731 = vmatpush.bf16.msra.mxu0 %v3015_v22  ;;  %940 = vmatpush.bf16.msra.mxu3 %v3769_v50  ;;  %v3008_v50 = vld [vmem:[#allocation7 + $0x8] sm:$0xf0] }
  0x8f   : > { %847 = vmatpush.bf16.msra.mxu2 %v3759_v32  ;;  %745 = vmatpush.bf16.msra.mxu1 %v3059_v21 }
  0x91   : > { %732 = vmatpush.bf16.msra.mxu0 %v3007_v26  ;;  %941 = vmatpush.bf16.msra.mxu3 %v3768_v51  ;;  %v3051_v26 = vor.u32 %v3752_v23, %v3048_v24  ;;  %v3011_v51 = vor.u32 %v3742_v49, %v3008_v50 }
  0x93   : > { %848 = vmatpush.bf16.msra.mxu2 %v3758_v33  ;;  %746 = vmatpush.bf16.msra.mxu1 %v3051_v26 }
  0x94   : > { %733 = vmatmul.bf16.vlgmr.msra.gmra.mxu0 %v4850_v28 }
  0x95   : > { %942 = vmatpush.bf16.msra.mxu3 %v3767_v52  ;;  %1031 = vmatpush.bf16.msrb.mxu0 %v3781_v56  ;;  %v3788_v56 = vld [vmem:[#allocation13 + $0x30] sm:$0xff] }
  0x97   : > { %747 = vmatpush.bf16.msra.mxu1 %v3043_v31 }
  0x99   : > { %943 = vmatpush.bf16.msra.mxu3 %v3766_v53  ;;  %1032 = vmatpush.bf16.msrb.mxu0 %v3780_v58  ;;  %v3789_v53 = vld [vmem:[#allocation13 + $0x38] sm:$0xff]  ;;  %v3786_v58 = vld [vmem:[#allocation13 + $0x20] sm:$0xff] }
  0x9d   : > { %1033 = vmatpush.bf16.msrb.mxu0 %v3779_v61  ;;  %v3783_v61 = vld [vmem:[#allocation13 + $0x8] sm:$0xff] }
  0xa1   : > { %1034 = vmatpush.bf16.msrb.mxu0 %v3778_v8  ;;  %v630_v8 = vperm.slane %v4857_v34, 1  ;;  %v1056_v34 = vld [vmem:[%s4827_s3 + $0x10] sm:$0xff] }
  0xa4   : > { %738 = vmatmul.bf16.gmra.mxu0 %v4854_v30 }
  0xa5   : > { %1035 = vmatpush.bf16.msrb.mxu0 %v3777_v9  ;;  %v3795_v9 = vld [vmem:[#allocation13 + $0x68] sm:$0xff] }
  0xa9   : > { %1036 = vmatpush.bf16.msrb.mxu0 %v3776_v10 }
  0xad   : > { %1037 = vmatpush.bf16.msrb.mxu0 %v3775_v11 }
  0xb1   : > { %1038 = vmatpush.bf16.msrb.mxu0 %v3774_v12 }
 0x111   : > { %v734_v38 = vpop.f32.mrf.mxu0 }
 0x112   : > { %v735_v39 = vadd.f32 %v734_v38, %v629_v35 }
 0x114   : > { %763 = vst [vmem:[%s4861_s20] sm:$0xff] %v735_v39 }
 0x119   : > { %v736_v41 = vpop.f32.mrf.mxu0 }
 0x11a   : > { %v737_v42 = vadd.f32 %v736_v41, %v629_v35  ;;  %v3024_v41 = vld [vmem:[#allocation7 + $0x28] sm:$0xf0] }
 0x11c   : > { %764 = vst [vmem:[%s4861_s20 + $0x8] sm:$0xff] %v737_v42  ;;  %v771_v43 = vpack.c.bf16 %v737_v42, %v735_v39 }
 0x11e   : > { %849 = vmatmul.bf16.vlgmr.msra.gmra.mxu2 %v771_v43  ;;  %v3027_v43 = vor.u32 %v3746_v40, %v3024_v41  ;;  %v3804_v41 = vld [vmem:[#allocation13 + $0xb0] sm:$0xff] }
 0x121   : > { %v739_v44 = vpop.f32.mrf.mxu0 }
 0x122   : > { %v740_v45 = vadd.f32 %v739_v44, %v629_v35 }
 0x124   : > { %765 = vst [vmem:[%s4861_s20 + $0x10] sm:$0xff] %v740_v45 }
 0x129   : > { %v741_v46 = vpop.f32.mrf.mxu0 }
 0x12a   : > { %v742_v47 = vadd.f32 %v741_v46, %v629_v35  ;;  %v3748_v35 = vld [vmem:[#allocation7 + $0x34] sm:$0xf]  ;;  %v3016_v46 = vld [vmem:[#allocation7 + $0x18] sm:$0xf0] }
 0x12b   : > { %v3035_v39 = vor.u32 %v3748_v35, %v3032_v36  ;;  %v3792_v36 = vld [vmem:[#allocation13 + $0x50] sm:$0xff] }
 0x12c   : > { %766 = vst [vmem:[%s4861_s20 + $0x18] sm:$0xff] %v742_v47  ;;  %v772_v48 = vpack.c.bf16 %v742_v47, %v740_v45  ;;  %v3744_v45 = vld [vmem:[#allocation7 + $0x14] sm:$0xf] }
 0x12d   : > { %748 = vmatpush.bf16.msra.mxu1 %v3035_v39  ;;  %v3805_v39 = vld [vmem:[#allocation13 + $0xb8] sm:$0xff] }
 0x12e   : > { %854 = vmatmul.bf16.gmra.mxu2 %v772_v48  ;;  %v3019_v48 = vor.u32 %v3744_v45, %v3016_v46  ;;  %1326 = vmatpush.bf16.msrb.mxu3 %v3805_v39  ;;  %v3378_v39 = vld [vmem:[#allocation7 + $0x10] sm:$0xf] }
 0x131   : > { %749 = vmatpush.bf16.msra.mxu1 %v3027_v43  ;;  %v3803_v43 = vld [vmem:[#allocation13 + $0xa8] sm:$0xff] }
 0x132   : > { %1327 = vmatpush.bf16.msrb.mxu3 %v3804_v41 }
 0x135   : > { %750 = vmatpush.bf16.msra.mxu1 %v3019_v48 }
 0x136   : > { %1328 = vmatpush.bf16.msrb.mxu3 %v3803_v43  ;;  %v3833_v43 = vld [vmem:[#allocation7 + $0x4] sm:$0xf0] }
 0x139   : > { %751 = vmatpush.bf16.msra.mxu1 %v3011_v51  ;;  %v3801_v51 = vld [vmem:[#allocation13 + $0x98] sm:$0xff] }
 0x13c   : > { %752 = vmatmul.bf16.vlgmr.msra.gmra.mxu1 %v4850_v28 }
 0x13d   : > { %1136 = vmatpush.bf16.msrb.mxu1 %v3789_v53 }
 0x141   : > { %1137 = vmatpush.bf16.msrb.mxu1 %v3788_v56 }
 0x14c   : > { %757 = vmatmul.bf16.gmra.mxu1 %v4854_v30 }
 0x1a1   : > { %v850_v54 = vpop.f32.mrf.mxu2 }
 0x1a2   : > { %v851_v57 = vadd.f32 %v4075_v55, %v850_v54 }
 0x1a4   : > { %4091 = vtanh.f32 %v851_v57  ;;  %v3787_v57 = vld [vmem:[#allocation13 + $0x28] sm:$0xff] }
 0x1a5   : > { %1138 = vmatpush.bf16.msrb.mxu1 %v3787_v57 }
 0x1a9   : > { %v852_v59 = vpop.f32.mrf.mxu2  ;;  %1139 = vmatpush.bf16.msrb.mxu1 %v3786_v58 }
 0x1aa   : > { %v853_v60 = vadd.f32 %v4075_v55, %v852_v59  ;;  %v4092_v62 = vpop.eup %4091  ;;  %v3785_v59 = vld [vmem:[#allocation13 + $0x18] sm:$0xff] }
 0x1ac   : > { %4093 = vtanh.f32 %v853_v60  ;;  %v3784_v60 = vld [vmem:[#allocation13 + $0x10] sm:$0xff] }
 0x1ad   : > { %1140 = vmatpush.bf16.msrb.mxu1 %v3785_v59  ;;  %v3800_v59 = vld [vmem:[#allocation13 + $0x90] sm:$0xff] }
 0x1b1   : > { %v855_v63 = vpop.f32.mrf.mxu2  ;;  %1141 = vmatpush.bf16.msrb.mxu1 %v3784_v60  ;;  %v3799_v60 = vld [vmem:[#allocation13 + $0x88] sm:$0xff] }
 0x1b2   : > { %v4094_v0 = vpop.eup %4093  ;;  %v856_v2 = vadd.f32 %v4075_v55, %v855_v63  ;;  %v4077_v63 = vld [vmem:[#allocation11 + $0x2] ss:$0 sm:$0xff] }
 0x1b3   : > { %v864_v1 = vpack.c.bf16 %v4094_v0, %v4092_v62  ;;  %v3782_v62 = vld [vmem:[#allocation13] sm:$0xff] }
 0x1b4   : > { %4095 = vtanh.f32 %v856_v2  ;;  %v1054_v2 = vld [vmem:[%s4827_s3] sm:$0xff] }
 0x1b5   : > { %944 = vmatmul.bf16.vlgmr.msra.gmra.mxu3 %v864_v1  ;;  %1142 = vmatpush.bf16.msrb.mxu1 %v3783_v61  ;;  %v3797_v1 = vld [vmem:[#allocation13 + $0x78] sm:$0xff]  ;;  %v3798_v61 = vld [vmem:[#allocation13 + $0x80] sm:$0xff] }
 0x1b6   : > { %1231 = vmatpush.bf16.msrb.mxu2 %v3797_v1  ;;  %v3811_v1 = vld [vmem:[#allocation13 + $0xe8] sm:$0xff] }
 0x1b9   : > { %v857_v3 = vpop.f32.mrf.mxu2  ;;  %1143 = vmatpush.bf16.msrb.mxu1 %v3782_v62  ;;  %v3813_v62 = vld [vmem:[#allocation13 + $0xf8] sm:$0xff] }
 0x1ba   : > { %v858_v4 = vadd.f32 %v4075_v55, %v857_v3  ;;  %v4096_v5 = vpop.eup %4095  ;;  %1421 = vmatpush.bf16.msra.mxu0 %v3813_v62 }
 0x1bc   : > { %4097 = vtanh.f32 %v858_v4 }
 0x1c2   : > { %v4098_v6 = vpop.eup %4097 }
 0x1c3   : > { %v865_v7 = vpack.c.bf16 %v4098_v6, %v4096_v5  ;;  %v3796_v6 = vld [vmem:[#allocation13 + $0x70] sm:$0xff] }
 0x1c4   : > { %1232 = vmatpush.bf16.msrb.mxu2 %v3796_v6 }
 0x1c5   : > { %949 = vmatmul.bf16.gmra.mxu3 %v865_v7  ;;  %v1055_v7 = vld [vmem:[%s4827_s3 + $0x8] sm:$0xff] }
 0x1c8   : > { %1233 = vmatpush.bf16.msrb.mxu2 %v3795_v9 }
 0x1cc   : > { %1234 = vmatpush.bf16.msrb.mxu2 %v3794_v16  ;;  %v3426_v16 = vld [vmem:[#allocation7 + $0x70] sm:$0xf] }
 0x1d0   : > { %1235 = vmatpush.bf16.msrb.mxu2 %v3793_v18 }
 0x1d4   : > { %1236 = vmatpush.bf16.msrb.mxu2 %v3792_v36  ;;  %v3386_v36 = vld [vmem:[#allocation7 + $0x20] sm:$0xf] }
 0x238   : > { %v945_v13 = vpop.f32.mrf.mxu3 }
 0x239   : > { %v946_v20 = vadd.f32 %v4076_v14, %v945_v13 }
 0x23b   : > { %4099 = vtanh.f32 %v946_v20 }
 0x240   : > { %v947_v22 = vpop.f32.mrf.mxu3 }
 0x241   : > { %v948_v25 = vadd.f32 %v4076_v14, %v947_v22  ;;  %v4100_v32 = vpop.eup %4099 }
 0x243   : > { %4101 = vtanh.f32 %v948_v25  ;;  %v1057_v25 = vld [vmem:[%s4827_s3 + $0x18] sm:$0xff] }
 0x248   : > { %v950_v33 = vpop.f32.mrf.mxu3 }
 0x249   : > { %v4102_v37 = vpop.eup %4101  ;;  %v951_v42 = vadd.f32 %v4076_v14, %v950_v33 }
 0x24a   : > { %v959_v38 = vpack.c.bf16 %v4102_v37, %v4100_v32  ;;  %v3791_v37 = vld [vmem:[#allocation13 + $0x48] sm:$0xff] }
 0x24b   : > { %4103 = vtanh.f32 %v951_v42  ;;  %1237 = vmatpush.bf16.msrb.mxu2 %v3791_v37  ;;  %v4078_v42 = vld [vmem:[%s5075_s7] ss:$0 sm:$0xff]  ;;  %v3837_v37 = vld [vmem:[#allocation7 + $0x24] sm:$0xf0] }
 0x24c   : > { %1039 = vmatmul.bf16.vlgmr.msrb.gmra.mxu0 %v959_v38  ;;  %v3790_v38 = vld [vmem:[#allocation13 + $0x40] sm:$0xff] }
 0x24f   : > { %1238 = vmatpush.bf16.msrb.mxu2 %v3790_v38  ;;  %v3387_v38 = vor.u32 %v3837_v37, %v3386_v36 }
 0x250   : > { %v952_v44 = vpop.f32.mrf.mxu3 }
 0x251   : > { %v953_v47 = vadd.f32 %v4076_v14, %v952_v44  ;;  %v4104_v52 = vpop.eup %4103  ;;  %v753_v14 = vpop.f32.mrf.mxu1 }
 0x252   : > { %v754_v15 = vadd.f32 %v753_v14, %v630_v8 }
 0x253   : > { %4105 = vtanh.f32 %v953_v47  ;;  %v3802_v47 = vld [vmem:[#allocation13 + $0xa0] sm:$0xff] }
 0x254   : > { %767 = vst [vmem:[%s4878_s23] sm:$0xff] %v754_v15  ;;  %1329 = vmatpush.bf16.msrb.mxu3 %v3802_v47 }
 0x258   : > { %1330 = vmatpush.bf16.msrb.mxu3 %v3801_v51 }
 0x259   : > { %v4106_v54 = vpop.eup %4105  ;;  %v755_v23 = vpop.f32.mrf.mxu1 }
 0x25a   : > { %v960_v55 = vpack.c.bf16 %v4106_v54, %v4104_v52  ;;  %v756_v24 = vadd.f32 %v755_v23, %v630_v8  ;;  %v3410_v23 = vld [vmem:[#allocation7 + $0x50] sm:$0xf] }
 0x25c   : > { %1044 = vmatmul.bf16.gmra.mxu0 %v960_v55  ;;  %768 = vst [vmem:[%s4878_s23 + $0x8] sm:$0xff] %v756_v24  ;;  %1331 = vmatpush.bf16.msrb.mxu3 %v3800_v59  ;;  %v3843_v24 = vld [vmem:[#allocation7 + $0x54] sm:$0xf0] }
 0x25d   : > { %v4902_v59 = vld [vmem:[%s4814_s30 + $0x18] sm:$0xff] }
 0x260   : > { %1332 = vmatpush.bf16.msrb.mxu3 %v3799_v60 }
 0x261   : > { %v758_v29 = vpop.f32.mrf.mxu1 }
 0x262   : > { %v759_v31 = vadd.f32 %v758_v29, %v630_v8  ;;  %v3841_v29 = vld [vmem:[#allocation7 + $0x44] sm:$0xf0] }
 0x264   : > { %769 = vst [vmem:[%s4878_s23 + $0x10] sm:$0xff] %v759_v31  ;;  %1333 = vmatpush.bf16.msrb.mxu3 %v3798_v61 }
 0x269   : > { %v760_v33 = vpop.f32.mrf.mxu1 }
 0x26a   : > { %v761_v35 = vadd.f32 %v760_v33, %v630_v8  ;;  %v3809_v8 = vld [vmem:[#allocation13 + $0xd8] sm:$0xff]  ;;  %v3839_v33 = vld [vmem:[#allocation7 + $0x34] sm:$0xf0] }
 0x26c   : > { %770 = vst [vmem:[%s4878_s23 + $0x18] sm:$0xff] %v761_v35 }
 0x2c9   : > { %v1040_v28 = vpop.f32.mrf.mxu0 }
 0x2ca   : > { %v1041_v0 = vadd.f32 %v4077_v63, %v1040_v28  ;;  %v3812_v28 = vld [vmem:[#allocation13 + $0xf0] sm:$0xff] }
 0x2cb   : > { %1422 = vmatpush.bf16.msra.mxu0 %v3812_v28 }
 0x2cc   : > { %4107 = vtanh.f32 %v1041_v0  ;;  %v4079_v0 = vld [vmem:[%s5075_s7 + $0x1] ss:$0 sm:$0xff] }
 0x2cf   : > { %1423 = vmatpush.bf16.msra.mxu0 %v3811_v1 }
 0x2d1   : > { %v1042_v30 = vpop.f32.mrf.mxu0 }
 0x2d2   : > { %v4108_v3 = vpop.eup %4107  ;;  %v1043_v4 = vadd.f32 %v4077_v63, %v1042_v30 }
 0x2d3   : > { %v1058_v5 = vmul.f32 %v4108_v3, %v1054_v2 }
 0x2d4   : > { %4109 = vtanh.f32 %v1043_v4  ;;  %v3810_v4 = vld [vmem:[#allocation13 + $0xe0] sm:$0xff] }
 0x2d5   : > { %1062 = vst [vmem:[%s4871_s12] sm:$0xff] %v1058_v5  ;;  %1424 = vmatpush.bf16.msra.mxu0 %v3810_v4  ;;  %v3855_v4 = vld [vmem:[#allocation10 + $0x38] sm:$0xff] }
 0x2d9   : > { %v1045_v10 = vpop.f32.mrf.mxu0  ;;  %1425 = vmatpush.bf16.msra.mxu0 %v3809_v8  ;;  %v3852_v8 = vld [vmem:[#allocation10 + $0x20] sm:$0xff] }
 0x2da   : > { %v4110_v11 = vpop.eup %4109  ;;  %v1046_v12 = vadd.f32 %v4077_v63, %v1045_v10 }
 0x2db   : > { %v1059_v13 = vmul.f32 %v4110_v11, %v1055_v7 }
 0x2dc   : > { %4111 = vtanh.f32 %v1046_v12 }
 0x2dd   : > { %1063 = vst [vmem:[%s4871_s12 + $0x8] sm:$0xff] %v1059_v13  ;;  %v1066_v17 = vpack.c.bf16 %v1059_v13, %v1058_v5 }
 0x2df   : > { %1144 = vmatmul.bf16.vlgmr.msrb.gmra.mxu1 %v1066_v17  ;;  %v3847_v17 = vld [vmem:[#allocation7 + $0x74] sm:$0xf0] }
 0x2e0   : > { %v3427_v18 = vor.u32 %v3847_v17, %v3426_v16  ;;  %v4081_v16 = vld [vmem:[%s5075_s7 + $0x3] ss:$0 sm:$0xff] }
 0x2e1   : > { %v1047_v19 = vpop.f32.mrf.mxu0 }
 0x2e2   : > { %v4112_v20 = vpop.eup %4111  ;;  %v1048_v21 = vadd.f32 %v4077_v63, %v1047_v19  ;;  %1746 = vmatpush.bf16.msra.mxu3 %v3427_v18  ;;  %v3807_v19 = vld [vmem:[#allocation13 + $0xc8] sm:$0xff] }
 0x2e3   : > { %v1060_v22 = vmul.f32 %v4112_v20, %v1056_v34  ;;  %v3808_v34 = vld [vmem:[#allocation13 + $0xd0] sm:$0xff]  ;;  %v3418_v20 = vld [vmem:[#allocation7 + $0x60] sm:$0xf] }
 0x2e4   : > { %4113 = vtanh.f32 %v1048_v21  ;;  %1426 = vmatpush.bf16.msra.mxu0 %v3808_v34  ;;  %v3845_v21 = vld [vmem:[#allocation7 + $0x64] sm:$0xf0] }
 0x2e5   : > { %1064 = vst [vmem:[%s4871_s12 + $0x10] sm:$0xff] %v1060_v22  ;;  %v3849_v34 = vld [vmem:[#allocation10 + $0x8] sm:$0xff] }
 0x2e8   : > { %1427 = vmatpush.bf16.msra.mxu0 %v3807_v19 }
 0x2ea   : > { %v4114_v26 = vpop.eup %4113 }
 0x2eb   : > { %v1061_v27 = vmul.f32 %v4114_v26, %v1057_v25  ;;  %v3806_v25 = vld [vmem:[#allocation13 + $0xc0] sm:$0xff]  ;;  %v3411_v26 = vor.u32 %v3843_v24, %v3410_v23 }
 0x2ec   : > { %1428 = vmatpush.bf16.msra.mxu0 %v3806_v25 }
 0x2ed   : > { %1065 = vst [vmem:[%s4871_s12 + $0x18] sm:$0xff] %v1061_v27  ;;  %v1067_v32 = vpack.c.bf16 %v1061_v27, %v1060_v22  ;;  %v3419_v22 = vor.u32 %v3845_v21, %v3418_v20  ;;  %v3402_v27 = vld [vmem:[#allocation7 + $0x40] sm:$0xf] }
 0x2ee   : > { %v3403_v31 = vor.u32 %v3841_v29, %v3402_v27  ;;  %v3848_v20 = vld [vmem:[#allocation10] sm:$0xff] }
 0x2ef   : > { %1149 = vmatmul.bf16.gmra.mxu1 %v1067_v32  ;;  %1747 = vmatpush.bf16.msra.mxu3 %v3419_v22  ;;  %v3394_v32 = vld [vmem:[#allocation7 + $0x30] sm:$0xf] }
 0x2f0   : > { %v3395_v35 = vor.u32 %v3839_v33, %v3394_v32 }
 0x2f3   : > { %1748 = vmatpush.bf16.msra.mxu3 %v3411_v26 }
 0x2f7   : > { %1749 = vmatpush.bf16.msra.mxu3 %v3403_v31 }
 0x2fb   : > { %1750 = vmatpush.bf16.msra.mxu3 %v3395_v35 }
 0x2ff   : > { %1751 = vmatpush.bf16.msra.mxu3 %v3387_v38 }
 0x35c   : > { %v1145_v40 = vpop.f32.mrf.mxu1 }
 0x35d   : > { %v1146_v44 = vadd.f32 %v4078_v42, %v1145_v40  ;;  %v3835_v40 = vld [vmem:[#allocation7 + $0x14] sm:$0xf0] }
 0x35e   : > { %v3379_v41 = vor.u32 %v3835_v40, %v3378_v39  ;;  %v3829_v39 = vld [vmem:[#allocation14 + $0x38] sm:$0xff]  ;;  %v3828_v40 = vld [vmem:[#allocation14 + $0x30] sm:$0xff] }
 0x35f   : > { %v1155_v48 = vmax.f32 %v1146_v44, 0.0  ;;  %1605 = vmatpush.bf16.msra.mxu2 %v3829_v39  ;;  %v4084_v39 = vld [vmem:[#allocation11 + $0x1] ss:$0 sm:$0xff] }
 0x360   : > { %1752 = vmatpush.bf16.msra.mxu3 %v3379_v41  ;;  %v3827_v41 = vld [vmem:[#allocation14 + $0x28] sm:$0xff] }
 0x363   : > { %1606 = vmatpush.bf16.msra.mxu2 %v3828_v40  ;;  %v3846_v40 = vld [vmem:[#allocation7 + $0x74] sm:$0xf] }
 0x364   : > { %v1147_v45 = vpop.f32.mrf.mxu1 }
 0x365   : > { %v1148_v46 = vadd.f32 %v4078_v42, %v1147_v45  ;;  %v4895_v45 = vld [vmem:[%s4814_s30 + $0x10] sm:$0xff] }
 0x367   : > { %v1156_v49 = vmax.f32 %v1148_v46, 0.0  ;;  %v3821_v46 = vld [vmem:[#allocation13 + $0x138] sm:$0xff]  ;;  %1607 = vmatpush.bf16.msra.mxu2 %v3827_v41 }
 0x368   : > { %1516 = vmatpush.bf16.msra.mxu1 %v3821_v46  ;;  %v3825_v46 = vld [vmem:[#allocation14 + $0x18] sm:$0xff] }
 0x369   : > { %v1159_v50 = vpack.c.bf16 %v1156_v49, %v1155_v48  ;;  %v3820_v48 = vld [vmem:[#allocation13 + $0x130] sm:$0xff]  ;;  %v4080_v49 = vld [vmem:[%s5075_s7 + $0x2] ss:$0 sm:$0xff] }
 0x36a   : > { %v3428_v41 = vld [vmem:[#allocation7 + $0x78] sm:$0xf0] }
 0x36b   : > { %1239 = vmatmul.bf16.vlgmr.msrb.gmra.mxu2 %v1159_v50  ;;  %v3819_v50 = vld [vmem:[#allocation13 + $0x128] sm:$0xff] }
 0x36c   : > { %v1150_v52 = vpop.f32.mrf.mxu1  ;;  %1517 = vmatpush.bf16.msra.mxu1 %v3820_v48  ;;  %v3823_v48 = vld [vmem:[#allocation14 + $0x8] sm:$0xff] }
 0x36d   : > { %v1151_v53 = vadd.f32 %v4078_v42, %v1150_v52 }
 0x36f   : > { %v1157_v56 = vmax.f32 %v1151_v53, 0.0 }
 0x370   : > { %1518 = vmatpush.bf16.msra.mxu1 %v3819_v50  ;;  %v3863_v50 = vld [vmem:[#allocation10 + $0x78] sm:$0xff] }
 0x374   : > { %v1152_v54 = vpop.f32.mrf.mxu1 }
 0x375   : > { %v1153_v55 = vadd.f32 %v4078_v42, %v1152_v54  ;;  %v3370_v42 = vld [vmem:[#allocation7] sm:$0xf]  ;;  %v3818_v54 = vld [vmem:[#allocation13 + $0x120] sm:$0xff] }
 0x376   : > { %v3371_v44 = vor.u32 %v3833_v43, %v3370_v42  ;;  %1519 = vmatpush.bf16.msra.mxu1 %v3818_v54  ;;  %v3826_v42 = vld [vmem:[#allocation14 + $0x20] sm:$0xff] }
 0x377   : > { %v1158_v57 = vmax.f32 %v1153_v55, 0.0  ;;  %1608 = vmatpush.bf16.msra.mxu2 %v3826_v42  ;;  %v3844_v42 = vld [vmem:[#allocation7 + $0x64] sm:$0xf] }
 0x378   : > { %1753 = vmatpush.bf16.msra.mxu3 %v3371_v44 }
 0x379   : > { %v1160_v58 = vpack.c.bf16 %v1158_v57, %v1157_v56 }
 0x37b   : > { %1244 = vmatmul.bf16.gmra.mxu2 %v1160_v58  ;;  %v3817_v58 = vld [vmem:[#allocation13 + $0x118] sm:$0xff] }
 0x37c   : > { %1520 = vmatpush.bf16.msra.mxu1 %v3817_v58  ;;  %1609 = vmatpush.bf16.msra.mxu2 %v3825_v46  ;;  %v3858_v58 = vld [vmem:[#allocation10 + $0x50] sm:$0xff] }
 0x3ee   : > { %v1240_v63 = vpop.f32.mrf.mxu2 }
 0x3ef   : > { %v1241_v2 = vadd.f32 %v4079_v0, %v1240_v63 }
 0x3f1   : > { %v1250_v5 = vmax.f32 %v1241_v2, 0.0  ;;  %v3816_v2 = vld [vmem:[#allocation13 + $0x110] sm:$0xff] }
 0x3f2   : > { %1521 = vmatpush.bf16.msra.mxu1 %v3816_v2 }
 0x3f6   : > { %v1242_v30 = vpop.f32.mrf.mxu2 }
 0x3f7   : > { %v1243_v3 = vadd.f32 %v4079_v0, %v1242_v30  ;;  %v3815_v30 = vld [vmem:[#allocation13 + $0x108] sm:$0xff] }
 0x3f8   : > { %1522 = vmatpush.bf16.msra.mxu1 %v3815_v30 }
 0x3f9   : > { %v1251_v6 = vmax.f32 %v1243_v3, 0.0  ;;  %v3814_v3 = vld [vmem:[#allocation13 + $0x100] sm:$0xff] }
 0x3fb   : > { %v1254_v7 = vpack.c.bf16 %v1251_v6, %v1250_v5  ;;  %v3854_v5 = vld [vmem:[#allocation10 + $0x30] sm:$0xff]  ;;  %v3853_v6 = vld [vmem:[#allocation10 + $0x28] sm:$0xff] }
 0x3fc   : > { %1523 = vmatpush.bf16.msra.mxu1 %v3814_v3 }
 0x3fd   : > { %1334 = vmatmul.bf16.vlgmr.msrb.gmra.mxu3 %v1254_v7 }
 0x3fe   : > { %v1245_v9 = vpop.f32.mrf.mxu2 }
 0x3ff   : > { %v1246_v10 = vadd.f32 %v4079_v0, %v1245_v9  ;;  %v4905_v9 = vld [vmem:[#allocation8] sm:$0x3] }
 0x400   : > { %1862 = vmatpush.bf16.msrb.mxu1 %v3855_v4 }
 0x401   : > { %v1252_v13 = vmax.f32 %v1246_v10, 0.0  ;;  %v1650_v10 = vperm.slane %v4905_v9, 0 }
 0x404   : > { %1863 = vmatpush.bf16.msrb.mxu1 %v3854_v5 }
 0x406   : > { %v1247_v11 = vpop.f32.mrf.mxu2 }
 0x407   : > { %v1248_v12 = vadd.f32 %v4079_v0, %v1247_v11 }
 0x408   : > { %1864 = vmatpush.bf16.msrb.mxu1 %v3853_v6 }
 0x409   : > { %v1253_v14 = vmax.f32 %v1248_v12, 0.0  ;;  %v3851_v12 = vld [vmem:[#allocation10 + $0x18] sm:$0xff] }
 0x40b   : > { %v1255_v15 = vpack.c.bf16 %v1253_v14, %v1252_v13  ;;  %v3850_v14 = vld [vmem:[#allocation10 + $0x10] sm:$0xff] }
 0x40c   : > { %1865 = vmatpush.bf16.msrb.mxu1 %v3852_v8 }
 0x40d   : > { %1339 = vmatmul.bf16.gmra.mxu3 %v1255_v15 }
 0x410   : > { %1866 = vmatpush.bf16.msrb.mxu1 %v3851_v12 }
 0x414   : > { %1867 = vmatpush.bf16.msrb.mxu1 %v3850_v14 }
 0x418   : > { %1868 = vmatpush.bf16.msrb.mxu1 %v3849_v34 }
 0x41c   : > { %1869 = vmatpush.bf16.msrb.mxu1 %v3848_v20 }
 0x41d   : > { %1754 = vmatmul.bf16.vlgmr.msra.gmra.mxu3 %v4895_v45 }
 0x42d   : > { %1759 = vmatmul.bf16.gmra.mxu3 %v4902_v59 }
 0x480   : > { %v1335_v47 = vpop.f32.mrf.mxu3 }
 0x481   : > { %v1336_v51 = vadd.f32 %v4080_v49, %v1335_v47  ;;  %v3824_v47 = vld [vmem:[#allocation14 + $0x10] sm:$0xff] }
 0x482   : > { %1610 = vmatpush.bf16.msra.mxu2 %v3824_v47 }
 0x483   : > { %v1345_v55 = vmax.f32 %v1336_v51, 0.0  ;;  %v3862_v51 = vld [vmem:[#allocation10 + $0x70] sm:$0xff] }
 0x486   : > { %1611 = vmatpush.bf16.msra.mxu2 %v3823_v48 }
 0x488   : > { %v1337_v52 = vpop.f32.mrf.mxu3 }
 0x489   : > { %v1338_v53 = vadd.f32 %v4080_v49, %v1337_v52  ;;  %v3861_v52 = vld [vmem:[#allocation10 + $0x68] sm:$0xff] }
 0x48b   : > { %v1346_v56 = vmax.f32 %v1338_v53, 0.0  ;;  %v3860_v53 = vld [vmem:[#allocation10 + $0x60] sm:$0xff] }
 0x48d   : > { %v1349_v57 = vpack.c.bf16 %v1346_v56, %v1345_v55  ;;  %v4082_v55 = vld [vmem:[%s5075_s7 + $0x4] ss:$0 sm:$0xff]  ;;  %v3859_v56 = vld [vmem:[#allocation10 + $0x58] sm:$0xff] }
 0x48f   : > { %1429 = vmatmul.bf16.vlgmr.msra.gmra.mxu0 %v1349_v57 }
 0x490   : > { %v1340_v60 = vpop.f32.mrf.mxu3 }
 0x491   : > { %v1341_v61 = vadd.f32 %v4080_v49, %v1340_v60 }
 0x493   : > { %v1347_v28 = vmax.f32 %v1341_v61, 0.0 }
 0x498   : > { %v1342_v62 = vpop.f32.mrf.mxu3 }
 0x499   : > { %v1343_v63 = vadd.f32 %v4080_v49, %v1342_v62  ;;  %v3822_v49 = vld [vmem:[#allocation14] sm:$0xff] }
 0x49a   : > { %1612 = vmatpush.bf16.msra.mxu2 %v3822_v49  ;;  %v3842_v49 = vld [vmem:[#allocation7 + $0x54] sm:$0xf] }
 0x49b   : > { %v1348_v0 = vmax.f32 %v1343_v63, 0.0 }
 0x49d   : > { %v1350_v1 = vpack.c.bf16 %v1348_v0, %v1347_v28  ;;  %v3857_v28 = vld [vmem:[#allocation10 + $0x48] sm:$0xff] }
 0x49e   : > { %1955 = vmatpush.bf16.msrb.mxu2 %v3863_v50  ;;  %v3412_v50 = vld [vmem:[#allocation7 + $0x58] sm:$0xf0] }
 0x49f   : > { %1434 = vmatmul.bf16.gmra.mxu0 %v1350_v1  ;;  %v3856_v1 = vld [vmem:[#allocation10 + $0x40] sm:$0xff] }
 0x4a0   : > { %v1755_v7 = vpop.f32.mrf.mxu3 }
 0x4a1   : > { %v1756_v11 = vadd.f32 %v1755_v7, %v1650_v10 }
 0x4a2   : > { %1956 = vmatpush.bf16.msrb.mxu2 %v3862_v51 }
 0x4a3   : > { %1784 = vst [vmem:[%s4861_s20 + $0x20] sm:$0xff] %v1756_v11 }
 0x4a6   : > { %1957 = vmatpush.bf16.msrb.mxu2 %v3861_v52  ;;  %v3415_v52 = vor.u32 %v3842_v49, %v3412_v50 }
 0x4a8   : > { %v1757_v15 = vpop.f32.mrf.mxu3 }
 0x4a9   : > { %v1758_v17 = vadd.f32 %v1757_v15, %v1650_v10 }
 0x4aa   : > { %1958 = vmatpush.bf16.msrb.mxu2 %v3860_v53  ;;  %v3840_v53 = vld [vmem:[#allocation7 + $0x44] sm:$0xf] }
 0x4ab   : > { %1785 = vst [vmem:[%s4861_s20 + $0x28] sm:$0xff] %v1758_v17  ;;  %v1792_v43 = vpack.c.bf16 %v1758_v17, %v1756_v11 }
 0x4ae   : > { %1959 = vmatpush.bf16.msrb.mxu2 %v3859_v56 }
 0x4b0   : > { %v1760_v22 = vpop.f32.mrf.mxu3 }
 0x4b1   : > { %v1761_v25 = vadd.f32 %v1760_v22, %v1650_v10 }
 0x4b2   : > { %1960 = vmatpush.bf16.msrb.mxu2 %v3858_v58  ;;  %v3838_v58 = vld [vmem:[#allocation7 + $0x34] sm:$0xf] }
 0x4b3   : > { %1786 = vst [vmem:[%s4861_s20 + $0x30] sm:$0xff] %v1761_v25 }
 0x4b6   : > { %1961 = vmatpush.bf16.msrb.mxu2 %v3857_v28  ;;  %v3836_v28 = vld [vmem:[#allocation7 + $0x24] sm:$0xf] }
 0x4b8   : > { %v1762_v29 = vpop.f32.mrf.mxu3 }
 0x4b9   : > { %v1763_v31 = vadd.f32 %v1762_v29, %v1650_v10  ;;  %v4083_v10 = vld [vmem:[#allocation11] ss:$0 sm:$0xff] }
 0x4ba   : > { %1962 = vmatpush.bf16.msrb.mxu2 %v3856_v1 }
 0x4bb   : > { %1787 = vst [vmem:[%s4861_s20 + $0x38] sm:$0xff] %v1763_v31  ;;  %v1793_v44 = vpack.c.bf16 %v1763_v31, %v1761_v25  ;;  %v3869_v25 = vld [vmem:[#allocation10 + $0xa8] sm:$0xff]  ;;  %v3867_v31 = vld [vmem:[#allocation10 + $0x98] sm:$0xff]  ;;  %s2664_s20 = scalar_lea.hbm %s5077_s9, %s4963_s14 }
 0x50c   : > { %v1430_v13 = vpop.f32.mrf.mxu0 }
 0x50d   : > { %v1431_v18 = vadd.f32 %v4081_v16, %v1430_v13 }
 0x50f   : > { %v1440_v23 = vmax.f32 %v1431_v18, 0.0 }
 0x514   : > { %v1432_v19 = vpop.f32.mrf.mxu0 }
 0x515   : > { %v1433_v21 = vadd.f32 %v4081_v16, %v1432_v19 }
 0x517   : > { %v1441_v24 = vmax.f32 %v1433_v21, 0.0 }
 0x519   : > { %v1444_v26 = vpack.c.bf16 %v1441_v24, %v1440_v23  ;;  %v3871_v23 = vld [vmem:[#allocation10 + $0xb8] sm:$0xff]  ;;  %v3870_v24 = vld [vmem:[#allocation10 + $0xb0] sm:$0xff] }
 0x51a   : > { %2048 = vmatpush.bf16.msrb.mxu3 %v3871_v23  ;;  %v3887_v23 = vld [vmem:[#allocation13 + $0x78] sm:$0xff] }
 0x51b   : > { %1524 = vmatmul.bf16.vlgmr.msra.gmra.mxu1 %v1444_v26 }
 0x51c   : > { %v1435_v27 = vpop.f32.mrf.mxu0  ;;  %2246 = vmatpush.bf16.msra.mxu1 %v3887_v23  ;;  %v3901_v23 = vld [vmem:[#allocation13 + $0xe8] sm:$0xff] }
 0x51d   : > { %v1436_v32 = vadd.f32 %v4081_v16, %v1435_v27  ;;  %v3868_v27 = vld [vmem:[#allocation10 + $0xa0] sm:$0xff] }
 0x51e   : > { %2049 = vmatpush.bf16.msrb.mxu3 %v3870_v24 }
 0x51f   : > { %v1442_v36 = vmax.f32 %v1436_v32, 0.0  ;;  %v3866_v32 = vld [vmem:[#allocation10 + $0x90] sm:$0xff] }
 0x522   : > { %2050 = vmatpush.bf16.msrb.mxu3 %v3869_v25  ;;  %v3886_v25 = vld [vmem:[#allocation13 + $0x70] sm:$0xff] }
 0x523   : > { %2247 = vmatpush.bf16.msra.mxu1 %v3886_v25 }
 0x524   : > { %v1437_v33 = vpop.f32.mrf.mxu0 }
 0x525   : > { %v1438_v35 = vadd.f32 %v4081_v16, %v1437_v33 }
 0x526   : > { %2051 = vmatpush.bf16.msrb.mxu3 %v3868_v27 }
 0x527   : > { %v1443_v37 = vmax.f32 %v1438_v35, 0.0  ;;  %v3865_v35 = vld [vmem:[#allocation10 + $0x88] sm:$0xff] }
 0x529   : > { %v1445_v38 = vpack.c.bf16 %v1443_v37, %v1442_v36  ;;  %v3864_v36 = vld [vmem:[#allocation10 + $0x80] sm:$0xff] }
 0x52a   : > { %2052 = vmatpush.bf16.msrb.mxu3 %v3867_v31 }
 0x52b   : > { %1529 = vmatmul.bf16.gmra.mxu1 %v1445_v38 }
 0x52e   : > { %2053 = vmatpush.bf16.msrb.mxu3 %v3866_v32 }
 0x532   : > { %2054 = vmatpush.bf16.msrb.mxu3 %v3865_v35 }
 0x536   : > { %2055 = vmatpush.bf16.msrb.mxu3 %v3864_v36  ;;  %v2072_v36 = vld [vmem:[%s4827_s3 + $0x28] sm:$0xff] }
 0x53b   : > { %1870 = vmatmul.bf16.vlgmr.msrb.gmra.mxu1 %v1792_v43  ;;  %v3431_v43 = vor.u32 %v3846_v40, %v3428_v41 }
 0x53d   : > { %1765 = vmatpush.bf16.msrb.mxu0 %v3431_v43  ;;  %v3883_v43 = vld [vmem:[#allocation13 + $0x58] sm:$0xff] }
 0x54b   : > { %1875 = vmatmul.bf16.gmra.mxu1 %v1793_v44  ;;  %v3420_v44 = vld [vmem:[#allocation7 + $0x68] sm:$0xf0] }
 0x54c   : > { %v3423_v47 = vor.u32 %v3844_v42, %v3420_v44 }
 0x54e   : > { %1766 = vmatpush.bf16.msrb.mxu0 %v3423_v47 }
 0x552   : > { %1767 = vmatpush.bf16.msrb.mxu0 %v3415_v52 }
 0x598   : > { %v1525_v54 = vpop.f32.mrf.mxu1 }
 0x599   : > { %v1526_v57 = vadd.f32 %v4082_v55, %v1525_v54  ;;  %v3404_v54 = vld [vmem:[#allocation7 + $0x48] sm:$0xf0] }
 0x59b   : > { %v1535_v62 = vmax.f32 %v1526_v57, 0.0 }
 0x5a0   : > { %v1527_v60 = vpop.f32.mrf.mxu1 }
 0x5a1   : > { %v1528_v61 = vadd.f32 %v4082_v55, %v1527_v60  ;;  %v3396_v60 = vld [vmem:[#allocation7 + $0x38] sm:$0xf0] }
 0x5a3   : > { %v1536_v63 = vmax.f32 %v1528_v61, 0.0 }
 0x5a5   : > { %v1539_v0 = vpack.c.bf16 %v1536_v63, %v1535_v62  ;;  %v3399_v63 = vor.u32 %v3838_v58, %v3396_v60  ;;  %v3882_v60 = vld [vmem:[#allocation13 + $0x50] sm:$0xff] }
 0x5a7   : > { %1613 = vmatmul.bf16.vlgmr.msra.gmra.mxu2 %v1539_v0  ;;  %v3388_v0 = vld [vmem:[#allocation7 + $0x28] sm:$0xf0] }
 0x5a8   : > { %v1530_v2 = vpop.f32.mrf.mxu1 }
 0x5a9   : > { %v1531_v30 = vadd.f32 %v4082_v55, %v1530_v2  ;;  %v3391_v2 = vor.u32 %v3836_v28, %v3388_v0  ;;  %v3894_v0 = vld [vmem:[#allocation13 + $0xb0] sm:$0xff] }
 0x5ab   : > { %v1537_v5 = vmax.f32 %v1531_v30, 0.0 }
 0x5b0   : > { %v1532_v3 = vpop.f32.mrf.mxu1 }
 0x5b1   : > { %v1533_v4 = vadd.f32 %v4082_v55, %v1532_v3  ;;  %v3407_v55 = vor.u32 %v3840_v53, %v3404_v54  ;;  %v3834_v3 = vld [vmem:[#allocation7 + $0x14] sm:$0xf]  ;;  %v2074_v53 = vld [vmem:[%s4827_s3 + $0x38] sm:$0xff] }
 0x5b3   : > { %v1538_v6 = vmax.f32 %v1533_v4, 0.0  ;;  %1768 = vmatpush.bf16.msrb.mxu0 %v3407_v55  ;;  %v3380_v4 = vld [vmem:[#allocation7 + $0x18] sm:$0xf0] }
 0x5b5   : > { %v1540_v7 = vpack.c.bf16 %v1538_v6, %v1537_v5  ;;  %v3383_v6 = vor.u32 %v3834_v3, %v3380_v4 }
 0x5b7   : > { %1618 = vmatmul.bf16.gmra.mxu2 %v1540_v7  ;;  %1769 = vmatpush.bf16.msrb.mxu0 %v3399_v63  ;;  %v3832_v7 = vld [vmem:[#allocation7 + $0x4] sm:$0xf] }
 0x5b8   : > { %v1871_v8 = vpop.f32.mrf.mxu1  ;;  %v3895_v63 = vld [vmem:[#allocation13 + $0xb8] sm:$0xff] }
 0x5b9   : > { %v1872_v11 = vadd.f32 %v4083_v10, %v1871_v8  ;;  %v3372_v8 = vld [vmem:[#allocation7 + $0x8] sm:$0xf0]  ;;  %2339 = vmatpush.bf16.msra.mxu2 %v3895_v63 }
 0x5bb   : > { %4115 = vtanh.f32 %v1872_v11  ;;  %1770 = vmatpush.bf16.msrb.mxu0 %v3391_v2  ;;  %v3893_v2 = vld [vmem:[#allocation13 + $0xa8] sm:$0xff] }
 0x5bd   : > { %2340 = vmatpush.bf16.msra.mxu2 %v3894_v0  ;;  %v3906_v0 = vld [vmem:[#allocation13 + $0x110] sm:$0xff] }
 0x5bf   : > { %1771 = vmatpush.bf16.msrb.mxu0 %v3383_v6 }
 0x5c0   : > { %v1873_v12 = vpop.f32.mrf.mxu1 }
 0x5c1   : > { %v1874_v13 = vadd.f32 %v4083_v10, %v1873_v12  ;;  %v4116_v14 = vpop.eup %4115  ;;  %v3879_v12 = vld [vmem:[#allocation13 + $0x38] sm:$0xff]  ;;  %2341 = vmatpush.bf16.msra.mxu2 %v3893_v2  ;;  %v3904_v2 = vld [vmem:[#allocation13 + $0x100] sm:$0xff] }
 0x5c3   : > { %4117 = vtanh.f32 %v1874_v13 }
 0x5c8   : > { %v1876_v15 = vpop.f32.mrf.mxu1 }
 0x5c9   : > { %v4118_v16 = vpop.eup %4117  ;;  %v1877_v34 = vadd.f32 %v4083_v10, %v1876_v15  ;;  %v3878_v15 = vld [vmem:[#allocation13 + $0x30] sm:$0xff] }
 0x5ca   : > { %v1885_v17 = vpack.c.bf16 %v4118_v16, %v4116_v14  ;;  %v3877_v16 = vld [vmem:[#allocation13 + $0x28] sm:$0xff] }
 0x5cb   : > { %4119 = vtanh.f32 %v1877_v34  ;;  %v3875_v34 = vld [vmem:[#allocation13 + $0x18] sm:$0xff] }
 0x5cc   : > { %1963 = vmatmul.bf16.vlgmr.msrb.gmra.mxu2 %v1885_v17  ;;  %v3876_v17 = vld [vmem:[#allocation13 + $0x20] sm:$0xff] }
 0x5d0   : > { %v1878_v18 = vpop.f32.mrf.mxu1 }
 0x5d1   : > { %v1879_v19 = vadd.f32 %v4083_v10, %v1878_v18  ;;  %v4120_v20 = vpop.eup %4119  ;;  %v3375_v10 = vor.u32 %v3832_v7, %v3372_v8  ;;  %v3874_v18 = vld [vmem:[#allocation13 + $0x10] sm:$0xff] }
 0x5d3   : > { %4121 = vtanh.f32 %v1879_v19  ;;  %1772 = vmatpush.bf16.msrb.mxu0 %v3375_v10  ;;  %v3873_v19 = vld [vmem:[#allocation13 + $0x8] sm:$0xff]  ;;  %v3891_v10 = vld [vmem:[#allocation13 + $0x98] sm:$0xff] }
 0x5d6   : > { %1773 = vmatmul.bf16.vlgmr.msrb.gmra.mxu0 %v4895_v45 }
 0x5d7   : > { %2153 = vmatpush.bf16.msra.mxu0 %v3879_v12 }
 0x5d9   : > { %v4122_v21 = vpop.eup %4121 }
 0x5da   : > { %v1886_v22 = vpack.c.bf16 %v4122_v21, %v4120_v20  ;;  %v3872_v20 = vld [vmem:[#allocation13] sm:$0xff]  ;;  %v4085_v21 = vld [vmem:[#allocation11 + $0x2] ss:$0 sm:$0xff] }
 0x5db   : > { %2154 = vmatpush.bf16.msra.mxu0 %v3878_v15 }
 0x5dc   : > { %1968 = vmatmul.bf16.gmra.mxu2 %v1886_v22 }
 0x5df   : > { %2155 = vmatpush.bf16.msra.mxu0 %v3877_v16 }
 0x5e3   : > { %2156 = vmatpush.bf16.msra.mxu0 %v3876_v17 }
 0x5e6   : > { %1778 = vmatmul.bf16.gmra.mxu0 %v4902_v59  ;;  %v2071_v59 = vld [vmem:[%s4827_s3 + $0x20] sm:$0xff] }
 0x5e7   : > { %2157 = vmatpush.bf16.msra.mxu0 %v3875_v34  ;;  %v3890_v34 = vld [vmem:[#allocation13 + $0x90] sm:$0xff] }
 0x5eb   : > { %2158 = vmatpush.bf16.msra.mxu0 %v3874_v18  ;;  %v3889_v18 = vld [vmem:[#allocation13 + $0x88] sm:$0xff] }
 0x5ef   : > { %2159 = vmatpush.bf16.msra.mxu0 %v3873_v19  ;;  %v3888_v19 = vld [vmem:[#allocation13 + $0x80] sm:$0xff] }
 0x5f3   : > { %2160 = vmatpush.bf16.msra.mxu0 %v3872_v20  ;;  %v3903_v20 = vld [vmem:[#allocation13 + $0xf8] sm:$0xff] }
 0x5f4   : > { %2432 = vmatpush.bf16.msra.mxu3 %v3903_v20 }
 0x62a   : > { %v1614_v26 = vpop.f32.mrf.mxu2 }
 0x62b   : > { %1624 = vst [vmem:[%s4919_s5] sm:$0xff] %v1614_v26 }
 0x632   : > { %v1616_v29 = vpop.f32.mrf.mxu2 }
 0x633   : > { %1625 = vst [vmem:[%s4919_s5 + $0x8] sm:$0xff] %v1616_v29  ;;  %v1651_v29 = vperm.slane %v4905_v9, 1 }
 0x63a   : > { %v1619_v33 = vpop.f32.mrf.mxu2 }
 0x63b   : > { %1626 = vst [vmem:[%s4919_s5 + $0x10] sm:$0xff] %v1619_v33  ;;  %v3885_v33 = vld [vmem:[#allocation13 + $0x68] sm:$0xff] }
 0x63c   : > { %2248 = vmatpush.bf16.msra.mxu1 %v3885_v33 }
 0x642   : > { %v1621_v37 = vpop.f32.mrf.mxu2 }
 0x643   : > { %1627 = vst [vmem:[%s4919_s5 + $0x18] sm:$0xff] %v1621_v37 }
 0x64f   : > { %v1964_v38 = vpop.f32.mrf.mxu2 }
 0x650   : > { %v1965_v46 = vadd.f32 %v4084_v39, %v1964_v38  ;;  %v3884_v38 = vld [vmem:[#allocation13 + $0x60] sm:$0xff] }
 0x651   : > { %2249 = vmatpush.bf16.msra.mxu1 %v3884_v38 }
 0x652   : > { %4123 = vtanh.f32 %v1965_v46  ;;  %v2073_v46 = vld [vmem:[%s4827_s3 + $0x30] sm:$0xff]  ;;  %s2684_s3 = sshll.u32 %s2681_s27, 4  ;;  %s2685_s3 = int_to_ptr.hbm [resolvable:$true] %s2684_s3 }
 0x653   : > { %v1774_v32 = vpop.f32.mrf.mxu0 }
 0x654   : > { %v1775_v35 = vadd.f32 %v1774_v32, %v1651_v29  ;;  %v3899_v32 = vld [vmem:[#allocation13 + $0xd8] sm:$0xff] }
 0x655   : > { %2250 = vmatpush.bf16.msra.mxu1 %v3883_v43  ;;  %v3911_v43 = vld [vmem:[#allocation13 + $0x138] sm:$0xff] }
 0x656   : > { %1788 = vst [vmem:[%s4878_s23 + $0x20] sm:$0xff] %v1775_v35  ;;  %2525 = vmatpush.bf16.msrb.mxu0 %v3911_v43 }
 0x657   : > { %v1966_v48 = vpop.f32.mrf.mxu2 }
 0x658   : > { %v1967_v51 = vadd.f32 %v4084_v39, %v1966_v48  ;;  %v4124_v56 = vpop.eup %4123 }
 0x659   : > { %2251 = vmatpush.bf16.msra.mxu1 %v3882_v60 }
 0x65a   : > { %4125 = vtanh.f32 %v1967_v51 }
 0x65b   : > { %v1776_v42 = vpop.f32.mrf.mxu0 }
 0x65c   : > { %v1777_v44 = vadd.f32 %v1776_v42, %v1651_v29  ;;  %v3896_v42 = vld [vmem:[#allocation13 + $0xc0] sm:$0xff] }
 0x65e   : > { %1789 = vst [vmem:[%s4878_s23 + $0x28] sm:$0xff] %v1777_v44 }
 0x65f   : > { %v1969_v57 = vpop.f32.mrf.mxu2 }
 0x660   : > { %v4126_v61 = vpop.eup %4125  ;;  %v1970_v1 = vadd.f32 %v4084_v39, %v1969_v57 }
 0x661   : > { %v1978_v62 = vpack.c.bf16 %v4126_v61, %v4124_v56  ;;  %v3881_v61 = vld [vmem:[#allocation13 + $0x48] sm:$0xff] }
 0x662   : > { %4127 = vtanh.f32 %v1970_v1  ;;  %2252 = vmatpush.bf16.msra.mxu1 %v3881_v61  ;;  %v4086_v1 = vld [vmem:[%s5075_s7] ss:$0 sm:$0xff] }
 0x663   : > { %2056 = vmatmul.bf16.vlgmr.msrb.gmra.mxu3 %v1978_v62  ;;  %v1779_v51 = vpop.f32.mrf.mxu0  ;;  %v3880_v62 = vld [vmem:[#allocation13 + $0x40] sm:$0xff] }
 0x664   : > { %v1780_v52 = vadd.f32 %v1779_v51, %v1651_v29 }
 0x666   : > { %1790 = vst [vmem:[%s4878_s23 + $0x30] sm:$0xff] %v1780_v52  ;;  %2253 = vmatpush.bf16.msra.mxu1 %v3880_v62  ;;  %v3908_v52 = vld [vmem:[#allocation13 + $0x120] sm:$0xff] }
 0x667   : > { %v1971_v30 = vpop.f32.mrf.mxu2 }
 0x668   : > { %v1972_v5 = vadd.f32 %v4084_v39, %v1971_v30  ;;  %v4128_v11 = vpop.eup %4127 }
 0x66a   : > { %4129 = vtanh.f32 %v1972_v5  ;;  %v3892_v5 = vld [vmem:[#allocation13 + $0xa0] sm:$0xff] }
 0x66b   : > { %v1781_v57 = vpop.f32.mrf.mxu0  ;;  %2342 = vmatpush.bf16.msra.mxu2 %v3892_v5  ;;  %v4089_v5 = vld [vmem:[%s5075_s7 + $0x3] ss:$0 sm:$0xff] }
 0x66c   : > { %v1782_v58 = vadd.f32 %v1781_v57, %v1651_v29 }
 0x66e   : > { %1791 = vst [vmem:[%s4878_s23 + $0x38] sm:$0xff] %v1782_v58  ;;  %s4393_s23 = sshra.s32 %s2685_s3, 4  ;;  %s4394_s23 = int_to_ptr.hbm [resolvable:$true] %s4393_s23 }
 0x66f   : > { %2343 = vmatpush.bf16.msra.mxu2 %v3891_v10  ;;  %s4395_s2 = scalar_lea.hbm %s4394_s23, 64  ;;  %p4400_p7 = scmp.lt.s32.totalorder %s4394_s23, %s5078_s10 }
 0x670   : > { %v4130_v13 = vpop.eup %4129  ;;  %p4396_p1 = scmp.ne.s32.totalorder %s4394_s23, %s4395_s2  ;;  %p4401_p9 = scmp.lt.s32.totalorder %s4399_s26, %s4395_s2 }
 0x671   : > { %v1979_v14 = vpack.c.bf16 %v4130_v13, %v4128_v11 }
 0x672   : > { %p4397_p3 = pnand %p4396_p1, %p4751_p4  ;;  %p4402_p5 = por %p4401_p9, %p4400_p7 }
 0x673   : > { %2061 = vmatmul.bf16.gmra.mxu3 %v1979_v14  ;;  %2344 = vmatpush.bf16.msra.mxu2 %v3890_v34 }
 0x674   : > { %p4398_p12 = pneg %p4397_p3 }
 0x676   : > { %p4403_p8 = pnand %p4402_p5, %p4398_p12 }
 0x677   : > { %2345 = vmatpush.bf16.msra.mxu2 %v3889_v18 }
 0x67b   : > { %2346 = vmatpush.bf16.msra.mxu2 %v3888_v19 }
 0x67f   : > { %3924 = vmatpush.bf16.msrb.mxu2 %v3911_v43 }
 0x6e6   : > { %v2057_v22 = vpop.f32.mrf.mxu3 }
 0x6e7   : > { %v2058_v45 = vadd.f32 %v4085_v21, %v2057_v22  ;;  %v3902_v22 = vld [vmem:[#allocation13 + $0xf0] sm:$0xff] }
 0x6e8   : > { %2433 = vmatpush.bf16.msra.mxu3 %v3902_v22  ;;  %v3914_v22 = vld [vmem:[#allocation14 + $0x10] sm:$0xff] }
 0x6e9   : > { %4131 = vtanh.f32 %v2058_v45  ;;  %v4087_v45 = vld [vmem:[%s5075_s7 + $0x1] ss:$0 sm:$0xff] }
 0x6ec   : > { %2434 = vmatpush.bf16.msra.mxu3 %v3901_v23  ;;  %v3912_v23 = vld [vmem:[#allocation14] sm:$0xff] }
 0x6ee   : > { %v2059_v24 = vpop.f32.mrf.mxu3 }
 0x6ef   : > { %v4132_v26 = vpop.eup %4131  ;;  %v2060_v27 = vadd.f32 %v4085_v21, %v2059_v24 }
 0x6f0   : > { %v2075_v31 = vmul.f32 %v4132_v26, %v2071_v59  ;;  %v3900_v26 = vld [vmem:[#allocation13 + $0xe0] sm:$0xff] }
 0x6f1   : > { %4133 = vtanh.f32 %v2060_v27  ;;  %2435 = vmatpush.bf16.msra.mxu3 %v3900_v26 }
 0x6f2   : > { %2079 = vst [vmem:[%s4871_s12 + $0x20] sm:$0xff] %v2075_v31 }
 0x6f5   : > { %2436 = vmatpush.bf16.msra.mxu3 %v3899_v32 }
 0x6f6   : > { %v2062_v37 = vpop.f32.mrf.mxu3 }
 0x6f7   : > { %v4134_v39 = vpop.eup %4133  ;;  %v2063_v40 = vadd.f32 %v4085_v21, %v2062_v37 }
 0x6f8   : > { %v2076_v41 = vmul.f32 %v4134_v39, %v2072_v36 }
 0x6f9   : > { %4135 = vtanh.f32 %v2063_v40 }
 0x6fa   : > { %2080 = vst [vmem:[%s4871_s12 + $0x28] sm:$0xff] %v2076_v41  ;;  %v2083_v9 = vpack.c.bf16 %v2076_v41, %v2075_v31  ;;  %v3898_v41 = vld [vmem:[#allocation13 + $0xd0] sm:$0xff] }
 0x6fb   : > { %2437 = vmatpush.bf16.msra.mxu3 %v3898_v41 }
 0x6fc   : > { %2161 = vmatmul.bf16.vlgmr.msra.gmra.mxu0 %v2083_v9  ;;  %v3897_v9 = vld [vmem:[#allocation13 + $0xc8] sm:$0xff] }
 0x6fe   : > { %v2064_v47 = vpop.f32.mrf.mxu3 }
 0x6ff   : > { %v4136_v48 = vpop.eup %4135  ;;  %v2065_v49 = vadd.f32 %v4085_v21, %v2064_v47  ;;  %2438 = vmatpush.bf16.msra.mxu3 %v3897_v9  ;;  %v4088_v47 = vld [vmem:[%s5075_s7 + $0x2] ss:$0 sm:$0xff] }
 0x700   : > { %v2077_v50 = vmul.f32 %v4136_v48, %v2073_v46  ;;  %v3910_v46 = vld [vmem:[#allocation13 + $0x130] sm:$0xff]  ;;  %v3909_v48 = vld [vmem:[#allocation13 + $0x128] sm:$0xff] }
 0x701   : > { %4137 = vtanh.f32 %v2065_v49  ;;  %2526 = vmatpush.bf16.msrb.mxu0 %v3910_v46  ;;  %3925 = vmatpush.bf16.msrb.mxu2 %v3910_v46 }
 0x702   : > { %2081 = vst [vmem:[%s4871_s12 + $0x30] sm:$0xff] %v2077_v50 }
 0x703   : > { %2439 = vmatpush.bf16.msra.mxu3 %v3896_v42 }
 0x705   : > { %2527 = vmatpush.bf16.msrb.mxu0 %v3909_v48  ;;  %3926 = vmatpush.bf16.msrb.mxu2 %v3909_v48 }
 0x707   : > { %v4138_v54 = vpop.eup %4137 }
 0x708   : > { %v2078_v55 = vmul.f32 %v4138_v54, %v2074_v53 }
 0x709   : > { %2528 = vmatpush.bf16.msrb.mxu0 %v3908_v52  ;;  %3927 = vmatpush.bf16.msrb.mxu2 %v3908_v52 }
 0x70a   : > { %2082 = vst [vmem:[%s4871_s12 + $0x38] sm:$0xff] %v2078_v55  ;;  %v2084_v56 = vpack.c.bf16 %v2078_v55, %v2077_v50  ;;  %s4975_s12 = scalar_lea.sflag [#allocation18], %s505_s29 }
 0x70c   : > { %2166 = vmatmul.bf16.gmra.mxu0 %v2084_v56 }
 0x779   : > { %v2162_v28 = vpop.f32.mrf.mxu0 }
 0x77a   : > { %v2163_v30 = vadd.f32 %v4086_v1, %v2162_v28  ;;  %v3907_v28 = vld [vmem:[#allocation13 + $0x118] sm:$0xff] }
 0x77b   : > { %2529 = vmatpush.bf16.msrb.mxu0 %v3907_v28  ;;  %3928 = vmatpush.bf16.msrb.mxu2 %v3907_v28 }
 0x77c   : > { %v2172_v6 = vmax.f32 %v2163_v30, 0.0  ;;  %v3919_v30 = vld [vmem:[#allocation14 + $0x38] sm:$0xff] }
 0x77d   : > { %2614 = vmatpush.bf16.msrb.mxu1 %v3919_v30  ;;  %3932 = vmatpush.bf16.msrb.mxu3 %v3919_v30 }
 0x77f   : > { %2530 = vmatpush.bf16.msrb.mxu0 %v3906_v0  ;;  %3929 = vmatpush.bf16.msrb.mxu2 %v3906_v0 }
 0x781   : > { %v2164_v3 = vpop.f32.mrf.mxu0 }
 0x782   : > { %v2165_v4 = vadd.f32 %v4086_v1, %v2164_v3 }
 0x784   : > { %v2173_v7 = vmax.f32 %v2165_v4, 0.0  ;;  %v3918_v4 = vld [vmem:[#allocation14 + $0x30] sm:$0xff] }
 0x785   : > { %2615 = vmatpush.bf16.msrb.mxu1 %v3918_v4  ;;  %3933 = vmatpush.bf16.msrb.mxu3 %v3918_v4 }
 0x786   : > { %v2176_v8 = vpack.c.bf16 %v2173_v7, %v2172_v6  ;;  %v3917_v6 = vld [vmem:[#allocation14 + $0x28] sm:$0xff] }
 0x788   : > { %2254 = vmatmul.bf16.vlgmr.msra.gmra.mxu1 %v2176_v8 }
 0x789   : > { %v2167_v11 = vpop.f32.mrf.mxu0  ;;  %2616 = vmatpush.bf16.msrb.mxu1 %v3917_v6  ;;  %3934 = vmatpush.bf16.msrb.mxu3 %v3917_v6 }
 0x78a   : > { %v2168_v12 = vadd.f32 %v4086_v1, %v2167_v11  ;;  %v3916_v11 = vld [vmem:[#allocation14 + $0x20] sm:$0xff] }
 0x78c   : > { %v2174_v15 = vmax.f32 %v2168_v12, 0.0 }
 0x78d   : > { %2617 = vmatpush.bf16.msrb.mxu1 %v3916_v11  ;;  %3935 = vmatpush.bf16.msrb.mxu3 %v3916_v11 }
 0x791   : > { %v2169_v13 = vpop.f32.mrf.mxu0 }
 0x792   : > { %v2170_v14 = vadd.f32 %v4086_v1, %v2169_v13  ;;  %v3905_v1 = vld [vmem:[#allocation13 + $0x108] sm:$0xff] }
 0x793   : > { %2531 = vmatpush.bf16.msrb.mxu0 %v3905_v1  ;;  %3930 = vmatpush.bf16.msrb.mxu2 %v3905_v1 }
 0x794   : > { %v2175_v16 = vmax.f32 %v2170_v14, 0.0 }
 0x796   : > { %v2177_v17 = vpack.c.bf16 %v2175_v16, %v2174_v15 }
 0x797   : > { %2532 = vmatpush.bf16.msrb.mxu0 %v3904_v2  ;;  %3931 = vmatpush.bf16.msrb.mxu2 %v3904_v2 }
 0x798   : > { %2259 = vmatmul.bf16.gmra.mxu1 %v2177_v17 }
 0x805   : > { %v2255_v21 = vpop.f32.mrf.mxu1 }
 0x806   : > { %v2256_v59 = vadd.f32 %v4087_v45, %v2255_v21  ;;  %v3915_v21 = vld [vmem:[#allocation14 + $0x18] sm:$0xff] }
 0x807   : > { %2618 = vmatpush.bf16.msrb.mxu1 %v3915_v21  ;;  %3936 = vmatpush.bf16.msrb.mxu3 %v3915_v21 }
 0x808   : > { %v2265_v27 = vmax.f32 %v2256_v59, 0.0 }
 0x80b   : > { %2619 = vmatpush.bf16.msrb.mxu1 %v3914_v22  ;;  %3937 = vmatpush.bf16.msrb.mxu3 %v3914_v22 }
 0x80d   : > { %v2257_v24 = vpop.f32.mrf.mxu1 }
 0x80e   : > { %v2258_v25 = vadd.f32 %v4087_v45, %v2257_v24  ;;  %v4090_v24 = vld [vmem:[%s5075_s7 + $0x4] ss:$0 sm:$0xff] }
 0x810   : > { %v2266_v29 = vmax.f32 %v2258_v25, 0.0 }
 0x812   : > { %v2269_v31 = vpack.c.bf16 %v2266_v29, %v2265_v27 }
 0x814   : > { %2347 = vmatmul.bf16.vlgmr.msra.gmra.mxu2 %v2269_v31 }
 0x815   : > { %v2260_v33 = vpop.f32.mrf.mxu1 }
 0x816   : > { %v2261_v35 = vadd.f32 %v4087_v45, %v2260_v33 }
 0x818   : > { %v2267_v38 = vmax.f32 %v2261_v35, 0.0 }
 0x81d   : > { %v2262_v36 = vpop.f32.mrf.mxu1 }
 0x81e   : > { %v2263_v37 = vadd.f32 %v4087_v45, %v2262_v36  ;;  %v3913_v45 = vld [vmem:[#allocation14 + $0x8] sm:$0xff] }
 0x81f   : > { %2620 = vmatpush.bf16.msrb.mxu1 %v3913_v45  ;;  %3938 = vmatpush.bf16.msrb.mxu3 %v3913_v45 }
 0x820   : > { %v2268_v39 = vmax.f32 %v2263_v37, 0.0 }
 0x822   : > { %v2270_v40 = vpack.c.bf16 %v2268_v39, %v2267_v38 }
 0x823   : > { %2621 = vmatpush.bf16.msrb.mxu1 %v3912_v23  ;;  %3939 = vmatpush.bf16.msrb.mxu3 %v3912_v23 }
 0x824   : > { %2352 = vmatmul.bf16.gmra.mxu2 %v2270_v40 }
 0x897   : > { %v2348_v44 = vpop.f32.mrf.mxu2 }
 0x898   : > { %v2349_v49 = vadd.f32 %v4088_v47, %v2348_v44 }
 0x89a   : > { %v2358_v53 = vmax.f32 %v2349_v49, 0.0 }
 0x89f   : > { %v2350_v50 = vpop.f32.mrf.mxu2 }
 0x8a0   : > { %v2351_v51 = vadd.f32 %v4088_v47, %v2350_v50 }
 0x8a2   : > { %v2359_v54 = vmax.f32 %v2351_v51, 0.0 }
 0x8a4   : > { %v2362_v55 = vpack.c.bf16 %v2359_v54, %v2358_v53 }
 0x8a6   : > { %2440 = vmatmul.bf16.vlgmr.msra.gmra.mxu3 %v2362_v55 }
 0x8a7   : > { %v2353_v56 = vpop.f32.mrf.mxu2 }
 0x8a8   : > { %v2354_v57 = vadd.f32 %v4088_v47, %v2353_v56 }
 0x8aa   : > { %v2360_v61 = vmax.f32 %v2354_v57, 0.0 }
 0x8af   : > { %v2355_v58 = vpop.f32.mrf.mxu2 }
 0x8b0   : > { %v2356_v60 = vadd.f32 %v4088_v47, %v2355_v58 }
 0x8b2   : > { %v2361_v62 = vmax.f32 %v2356_v60, 0.0 }
 0x8b4   : > { %v2363_v63 = vpack.c.bf16 %v2361_v62, %v2360_v61 }
 0x8b6   : > { %2445 = vmatmul.bf16.gmra.mxu3 %v2363_v63 }
 0x929   : > { %v2441_v3 = vpop.f32.mrf.mxu3 }
 0x92a   : > { %v2442_v7 = vadd.f32 %v4089_v5, %v2441_v3 }
 0x92c   : > { %v2451_v12 = vmax.f32 %v2442_v7, 0.0 }
 0x931   : > { %v2443_v8 = vpop.f32.mrf.mxu3 }
 0x932   : > { %v2444_v10 = vadd.f32 %v4089_v5, %v2443_v8 }
 0x934   : > { %v2452_v13 = vmax.f32 %v2444_v10, 0.0 }
 0x936   : > { %v2455_v14 = vpack.c.bf16 %v2452_v13, %v2451_v12 }
 0x938   : > { %2533 = vmatmul.bf16.vlgmr.msrb.gmra.mxu0 %v2455_v14 }
 0x939   : > { %v2446_v15 = vpop.f32.mrf.mxu3 }
 0x93a   : > { %v2447_v16 = vadd.f32 %v4089_v5, %v2446_v15 }
 0x93c   : > { %v2453_v18 = vmax.f32 %v2447_v16, 0.0 }
 0x941   : > { %v2448_v17 = vpop.f32.mrf.mxu3 }
 0x942   : > { %v2449_v34 = vadd.f32 %v4089_v5, %v2448_v17 }
 0x944   : > { %v2454_v19 = vmax.f32 %v2449_v34, 0.0 }
 0x946   : > { %v2456_v20 = vpack.c.bf16 %v2454_v19, %v2453_v18 }
 0x948   : > { %2538 = vmatmul.bf16.vlgmr.msrb.gmra.mxu2 %v2456_v20 }
 0x9b5   : > { %v2534_v59 = vpop.f32.mrf.mxu0 }
 0x9b6   : > { %v2535_v25 = vadd.f32 %v4090_v24, %v2534_v59 }
 0x9b8   : > { %v2544_v29 = vmax.f32 %v2535_v25, 0.0 }
 0x9bd   : > { %v2536_v26 = vpop.f32.mrf.mxu0 }
 0x9be   : > { %v2537_v27 = vadd.f32 %v4090_v24, %v2536_v26 }
 0x9c0   : > { %v2545_v31 = vmax.f32 %v2537_v27, 0.0 }
 0x9c2   : > { %v2548_v32 = vpack.c.bf16 %v2545_v31, %v2544_v29 }
 0x9c4   : > { %2622 = vmatmul.bf16.vlgmr.msrb.gmra.mxu1 %v2548_v32 }
 0x9cb   : > { %v2539_v33 = vpop.f32.mrf.mxu2 }
 0x9cc   : > { %v2540_v35 = vadd.f32 %v4090_v24, %v2539_v33 }
 0x9ce   : > { %v2546_v38 = vmax.f32 %v2540_v35, 0.0 }
 0x9d3   : > { %v2541_v36 = vpop.f32.mrf.mxu2 }
 0x9d4   : > { %v2542_v37 = vadd.f32 %v4090_v24, %v2541_v36 }
 0x9d6   : > { %v2547_v39 = vmax.f32 %v2542_v37, 0.0 }
 0x9d8   : > { %v2549_v40 = vpack.c.bf16 %v2547_v39, %v2546_v38 }
 0x9da   : > { %2627 = vmatmul.bf16.vlgmr.msrb.gmra.mxu3 %v2549_v40 }
 0x9db   : > { %4406 = shalt.err (!%p4403_p8)
}
 0x9dc   : > { %s4571_s28 = smov 128   ;;  %s4572_s29 = smov 8  }
 0x9dd   : > { %3969 = dma.vmem_to_hbm [thread:$0]  (%p4751_p4), %s2683_s6, 1024, %s2685_s3, %s4975_s12, %s4571_s28, %s4571_s28, %s4572_s29  }
 0x9de   : > { %s2667_s27 = sshll.u32 %s2664_s20, 4  ;;  %s2698_s23 = scalar_lea.hbm %s5079_s11, %s4963_s14  ;;  %s2668_s27 = int_to_ptr.hbm [resolvable:$true] %s2667_s27 }
 0x9df   : > { %s2638_s2 = scalar_lea.sflag [#allocation4], %s4810_s19  ;;  %s4421_s8 = sshra.s32 %s2668_s27, 4  ;;  %s4422_s8 = int_to_ptr.hbm [resolvable:$true] %s4421_s8 }
 0x9e0   : > { %s4423_s13 = scalar_lea.hbm %s4422_s8, 64  ;;  %s4427_s16 = scalar_lea.hbm %s5077_s9, 128 }
 0x9e1   : > { %p4424_p10 = scmp.ne.s32.totalorder %s4422_s8, %s4423_s13  ;;  %p4428_p0 = scmp.lt.s32.totalorder %s4422_s8, %s5077_s9 }
 0x9e2   : > { %p4429_p2 = scmp.lt.s32.totalorder %s4427_s16, %s4423_s13 }
 0x9e3   : > { %p4425_p13 = pnand %p4424_p10, %p4751_p4 }
 0x9e4   : > { %p4430_p1 = por %p4429_p2, %p4428_p0 }
 0x9e5   : > { %p4426_p11 = pneg %p4425_p13 }
 0x9e7   : > { %p4431_p3 = pnand %p4430_p1, %p4426_p11 }
 0x9e9   : > { %4434 = shalt.err (!%p4431_p3)
}
 0x9ea   : > { %3968 = dma.vmem_to_hbm [thread:$0]  (%p4751_p4), %s4958_s15, 1024, %s2668_s27, %s2638_s2, %s4571_s28, %s4571_s28, %s4572_s29  }
 0x9eb   : > { %s2701_s3 = sshll.u32 %s2698_s23, 4  ;;  %s4455_s8 = scalar_lea.hbm %s5079_s11, 128  ;;  %s2702_s3 = int_to_ptr.hbm [resolvable:$true] %s2701_s3 }
 0x9ec   : > { %s4449_s20 = sshra.s32 %s2702_s3, 4  ;;  %s4450_s20 = int_to_ptr.hbm [resolvable:$true] %s4449_s20 }
 0x9ed   : > { %s4451_s17 = scalar_lea.hbm %s4450_s20, 64  ;;  %p4456_p5 = scmp.lt.s32.totalorder %s4450_s20, %s5079_s11 }
 0x9ee   : > { %p4452_p12 = scmp.ne.s32.totalorder %s4450_s20, %s4451_s17  ;;  %p4457_p8 = scmp.lt.s32.totalorder %s4455_s8, %s4451_s17 }
 0x9f0   : > { %p4453_p7 = pnand %p4452_p12, %p4751_p4  ;;  %p4458_p10 = por %p4457_p8, %p4456_p5 }
 0x9f2   : > { %p4454_p9 = pneg %p4453_p7 }
 0x9f4   : > { %p4459_p13 = pnand %p4458_p10, %p4454_p9 }
 0x9f6   : > { %4462 = shalt.err (!%p4459_p13)
}
 0x9f7   : > { %3970 = dma.vmem_to_hbm [thread:$0]  (%p4751_p4), %s4960_s4, 1024, %s2702_s3, %s4975_s12, %s4571_s28, %s4571_s28, %s4572_s29  }
 0x9f8   : > { %s5121_s23 = sld [smem:[#allocation42_spill]]  ;;  %s2716_s16 = sshll.u32 %s4919_s5, 4  ;;  %s2717_s16 = int_to_ptr.vmem [resolvable:$true] %s2716_s16 }
 0x9f9   : > { %s2653_s20 = scalar_lea.sflag [#allocation21], %s4810_s19 }
 0x9fe   : > { %s5122_s2 = smov %s5121_s23  ;;  %s2715_s30 = scalar_lea.hbm %s5121_s23, %s4963_s14 }
 0x9ff   : > { %s2718_s6 = sshll.u32 %s2715_s30, 4  ;;  %s4483_s0 = scalar_lea.hbm %s5122_s2, 128  ;;  %s2719_s6 = int_to_ptr.hbm [resolvable:$true] %s2718_s6 }
 0xa00   : > { %s4477_s17 = sshra.s32 %s2719_s6, 4  ;;  %s4478_s17 = int_to_ptr.hbm [resolvable:$true] %s4477_s17 }
 0xa01   : > { %s4479_s4 = scalar_lea.hbm %s4478_s17, 64  ;;  %p4484_p1 = scmp.lt.s32.totalorder %s4478_s17, %s5122_s2 }
 0xa02   : > { %p4480_p11 = scmp.ne.s32.totalorder %s4478_s17, %s4479_s4  ;;  %p4485_p3 = scmp.lt.s32.totalorder %s4483_s0, %s4479_s4 }
 0xa04   : > { %p4481_p0 = pnand %p4480_p11, %p4751_p4  ;;  %p4486_p12 = por %p4485_p3, %p4484_p1 }
 0xa06   : > { %p4482_p2 = pneg %p4481_p0 }
 0xa08   : > { %p4487_p7 = pnand %p4486_p12, %p4482_p2 }
 0xa41   : > { %v2623_v41 = vpop.f32.mrf.mxu1 }
 0xa42   : > { %2633 = vst [vmem:[%s4919_s5 + $0x20] sm:$0xff] %v2623_v41 }
 0xa49   : > { %v2625_v9 = vpop.f32.mrf.mxu1 }
 0xa4a   : > { %2634 = vst [vmem:[%s4919_s5 + $0x28] sm:$0xff] %v2625_v9 }
 0xa5d   : > { %v2628_v42 = vpop.f32.mrf.mxu3 }
 0xa5e   : > { %2635 = vst [vmem:[%s4919_s5 + $0x30] sm:$0xff] %v2628_v42 }
 0xa65   : > { %v2630_v43 = vpop.f32.mrf.mxu3 }
 0xa66   : > { %2636 = vst [vmem:[%s4919_s5 + $0x38] sm:$0xff] %v2630_v43 }
 0xa67   : > { %4490 = shalt.err (!%p4487_p7)
}
 0xa68   : > { %3971 = dma.vmem_to_hbm [thread:$0]  (%p4751_p4), %s2717_s16, 1024, %s2719_s6, %s2653_s20, %s4571_s28, %s4571_s28, %s4572_s29  }
 0xa69 PF: > { %s2733_s5 = sand.u32 1, %s4545_s21   ;;  %p5124_p9 = scmp.ge.s32.totalorder %s4557_s24, 2 }
 0xa6a   : > { %s2734_s8 = scalar_lea.sflag [#allocation4], %s2733_s5 }
 0xa6b   : > { %p4003_p5 = pnand %p5124_p9, %p4755_p6 }
 0xa6d   : > { %p4004_p8 = pneg %p4003_p5 }
 0xa6f   : > { %4532 = dma.done.wait (%p4004_p8), %s2734_s8, 1024  }
 0xa70   : > { %4534 = vsyncadd (%p4004_p8), %s2734_s8, 4294966272  ;;  %s5125_s13 = sadd.s32 4294967294, %s4557_s24  }
 0xa71   : > { %s2743_s26 = sand.u32 1, %s5125_s13  }
 0xa72   : > { %s2744_s18 = scalar_lea.sflag [#allocation18], %s2743_s26 }
 0xa73   : > { %4536 = dma.done.wait (%p4004_p8), %s2744_s18, 2048  }
 0xa74   : > { %4538 = vsyncadd (%p4004_p8), %s2744_s18, 4294965248  ;;  %s2764_s15 = scalar_lea.sflag [#allocation21], %s2733_s5 }
 0xa75   : > { %4540 = dma.done.wait (%p4004_p8), %s2764_s15, 1024  }
 0xa76   : > { %4542 = vsyncadd (%p4004_p8), %s2764_s15, 4294966272  ;;  %s5126_s24 = sld [smem:[#allocation32_spill]]  ;;  %s5129_s21 = smov %s4549_s22 }
 0xa77   : > { %s5127_s28 = sld [smem:[#allocation31_spill]] }
 0xa78   : > { %s5128_s23 = sld [smem:[#allocation33_spill]] }
 0xa7c   : > { %p38_p4 = scmp.ge.s32.totalorder %s5126_s24, 4  }
 0xa7d   : > { %s5130_s22 = smov %s5127_s28 }
 0xa7e   :  { %40 = sbr.rel (!%p38_p4) target bundleno = 23 (0x17), region = 199 }
 0xa83   :  { %2770 = vsyncpa [#allocation3], 1 }
 0xa84   :  { %2772 = vsyncpa [#allocation3 + $0x1], 1 }
 0xa85   :  { %2773 = vsyncpa [#allocation6], 1 }
 0xa86   :  { %2775 = vsyncpa [#allocation6 + $0x1], 1 }
 0xa87   :  { %2776 = vsyncpa [#allocation9], 1 }
 0xa88   :  { %2777 = vsyncpa [#allocation12], 1 }
 0xa89   :  { %2778 = vsyncpa [#allocation15], 1 }
 0xa8a   :  { %2779 = vsyncpa [#allocation4], 1 }
 0xa8b   :  { %2781 = vsyncpa [#allocation4 + $0x1], 1 }
 0xa8c   :  { %2782 = vsyncpa [#allocation18], 1 }
 0xa8d   :  { %2784 = vsyncpa [#allocation18 + $0x1], 1 }
 0xa8e   :  { %2785 = vsyncpa [#allocation21], 1 }
 0xa8f   :  { %2787 = vsyncpa [#allocation21 + $0x1], 1 }

</bundles_post_ra>
